<compile_context>
chip_gen: v7x
topology: tpu7x:2x2x1
jax: 0.10.0
libtpu: 0.0.40
codegen_flags: <defaults>
</compile_context>

<pallas_src>
import functools

import jax
import jax.numpy as jnp
from jax.experimental import pallas as pl
from jax.experimental.pallas import tpu as pltpu


# ----------------------------------------------------------------------------
# Pallas kernels
# ----------------------------------------------------------------------------
def _bn1_stats_kernel(x_ref, st_ref):
    """Per-image sum / sum-of-squares per lane of the phase-decomposed input."""
    x = x_ref[...].astype(jnp.float32)                     # (hps, wps, s*s*cin_p)
    c = x.shape[-1]
    st_ref[0:1, :] = jnp.sum(x, axis=(0, 1)).reshape(1, c)
    st_ref[1:2, :] = jnp.sum(x * x, axis=(0, 1)).reshape(1, c)


def _conv1_taps_acc(x_ref, w_ref, taps, ho, wo, cout_p, cdt):
    """3x3 conv via contiguous phase-layout taps, f32 accumulation on the MXU."""
    m = ho * wo
    acc = jnp.zeros((m, cout_p), jnp.float32)
    for g, (ro, co, ch, kw) in enumerate(taps):
        tap = x_ref[pl.ds(ro, ho), pl.ds(co, wo), pl.ds(ch, kw)]
        acc = acc + jnp.dot(tap.reshape(m, kw).astype(cdt), w_ref[g, :kw, :],
                            preferred_element_type=jnp.float32)
    return acc


def _conv1_down_kernel(x_ref, w1_ref, dw_ref, sc1_ref, sh1_ref,
                       c1_ref, id_ref, st_ref, *, taps, s, ho, wo, cin_p, cout_p, cdt):
    """conv1(raw x) + downsample(relu(bn1(x))) + bn2 partial stats (one x pass)."""
    m = ho * wo

    # ---- identity = 1x1 conv (stride s) applied to relu(bn1(x)) ----------------
    ph, off = 1 % s, 1 // s
    xs = x_ref[pl.ds(off, ho), pl.ds(off, wo), pl.ds((ph * s + ph) * cin_p, cin_p)]
    sc = sc1_ref[...].reshape(1, 1, cin_p)
    sh = sh1_ref[...].reshape(1, 1, cin_p)
    xs = jnp.maximum(xs.astype(jnp.float32) * sc + sh, 0.0)
    ident = jnp.dot(xs.astype(cdt).reshape(m, cin_p), dw_ref[...],
                    preferred_element_type=jnp.float32)
    id_ref[...] = ident.reshape(ho, wo, cout_p).astype(id_ref.dtype)

    # ---- conv1 on raw x (phase taps; K=2*cin_p paired dots when stride==2) ------
    acc = _conv1_taps_acc(x_ref, w1_ref, taps, ho, wo, cout_p, cdt)
    c1_ref[...] = acc.reshape(ho, wo, cout_p).astype(c1_ref.dtype)

    # ---- fused bn2 partial statistics (f32, reduced across images in plain JAX) -
    st_ref[0:1, :] = jnp.sum(acc, axis=0, keepdims=True)
    st_ref[1:2, :] = jnp.sum(acc * acc, axis=0, keepdims=True)


def _conv1_kernel(x_ref, w1_ref, c1_ref, st_ref, *, taps, ho, wo, cout_p, cdt):
    """conv1(raw x) + bn2 partial stats (no-downsample variant)."""
    acc = _conv1_taps_acc(x_ref, w1_ref, taps, ho, wo, cout_p, cdt)
    c1_ref[...] = acc.reshape(ho, wo, cout_p).astype(c1_ref.dtype)
    st_ref[0:1, :] = jnp.sum(acc, axis=0, keepdims=True)
    st_ref[1:2, :] = jnp.sum(acc * acc, axis=0, keepdims=True)


def _bn2_conv2_add_kernel(c1_ref, id_ref, w2_ref, sc2_ref, sh2_ref,
                          out_ref, hbuf, *, ho, wo, cp, cdt):
    """relu(bn2(c1)) -> 3x3 conv (stride 1, pad 1) -> + identity, single c1 pass."""
    m = ho * wo
    sc = sc2_ref[...].reshape(1, 1, cp)
    sh = sh2_ref[...].reshape(1, 1, cp)
    h = jnp.maximum(c1_ref[...].astype(jnp.float32) * sc + sh, 0.0)

    # Zero only the 1-pixel halo (4 thin slabs), then write the interior once.
    hbuf[0:1, :, :] = jnp.zeros((1, wo + 2, cp), cdt)
    hbuf[ho + 1:ho + 2, :, :] = jnp.zeros((1, wo + 2, cp), cdt)
    hbuf[:, 0:1, :] = jnp.zeros((ho + 2, 1, cp), cdt)
    hbuf[:, wo + 1:wo + 2, :] = jnp.zeros((ho + 2, 1, cp), cdt)
    hbuf[1:1 + ho, 1:1 + wo, :] = h.astype(cdt)

    acc = id_ref[...].astype(jnp.float32).reshape(m, cp)    # residual, f32 accumulate
    for ky in range(3):
        for kx in range(3):
            tap = hbuf[pl.ds(ky, ho), pl.ds(kx, wo), :]
            acc = acc + jnp.dot(tap.reshape(m, cp), w2_ref[ky * 3 + kx],
                                preferred_element_type=jnp.float32)
    out_ref[...] = acc.reshape(ho, wo, cp).astype(out_ref.dtype)


# ----------------------------------------------------------------------------
# Wrapper
# ----------------------------------------------------------------------------
def _cdiv(a, b):
    return (a + b - 1) // b


def _round_up(a, b):
    return _cdiv(a, b) * b


def _pack_conv1(w_hwio, s, cin, planes, cin_p, cout_p, cdt):
    """Pack conv1 weights for the phase layout.

    Returns (taps, w) where taps is a static tuple of
    (row_off, col_off, chan_off, k_width) and w is a (G, Kmax, cout_p) array
    (rows past k_width are zero and never read).
    """
    w = jnp.pad(w_hwio, ((0, 0), (0, 0), (0, cin_p - cin), (0, cout_p - planes)))
    taps, mats = [], []
    if s == 2:
        # Pair (kx=0, kx=1): their phase channels are contiguous in x_ph, giving a
        # single K = 2*cin_p matmul (fills the 256-deep v6e/v7x MXU contraction).
        for ky in range(3):
            ph = ky % 2
            taps.append((ky // 2, 0, (ph * 2) * cin_p, 2 * cin_p))
            mats.append(jnp.concatenate([w[ky, 0], w[ky, 1]], axis=0))
            taps.append((ky // 2, 1, (ph * 2) * cin_p, cin_p))       # kx = 2, K = cin_p
            mats.append(jnp.pad(w[ky, 2], ((0, cin_p), (0, 0))))
    else:
        for ky in range(3):
            for kx in range(3):
                p = (ky % s) * s + (kx % s)
                taps.append((ky // s, kx // s, p * cin_p, cin_p))
                mats.append(w[ky, kx])
    return tuple(taps), jnp.stack(mats, axis=0).astype(cdt)


def preact_basic_block(x_nchw, params, stride, eps=1e-5, compute_dtype=jnp.bfloat16):
    """Forward of PreActBasicBlock.  Input/output in NCHW (PyTorch convention)."""
    x = jnp.transpose(x_nchw, (0, 2, 3, 1))                           # NHWC
    n, h, w, cin = x.shape
    planes = params["conv1_w"].shape[-1]
    s = int(stride)
    cdt = compute_dtype
    ho = (h - 1) // s + 1
    wo = (w - 1) // s + 1
    cin_p = _round_up(cin, 128)
    cout_p = _round_up(planes, 128)
    need_down = (s != 1) or (cin != planes)

    # bf16 NHWC copy of the input; feeds the phase layout and the identity stream.
    x_bf = x.astype(cdt)

    # Space-to-depth ("phase") re-layout of the spatially zero-padded,
    # channel-padded input: x_ph[n, i, j, (ph*s+pw)*cin_p + c] = x_pad[n, i*s+ph, j*s+pw, c]
    # so that every 3x3 tap (and the strided 1x1 downsample read) is a contiguous,
    # lane-aligned slice inside the kernel, for any stride.  wps padded to mult. of 8.
    hps = _cdiv(h + 2, s)
    wps = _round_up(_cdiv(w + 2, s), 8)
    hp, wp = s * hps, s * wps
    x_pad = jnp.pad(x_bf, ((0, 0), (1, hp - h - 1), (1, wp - w - 1), (0, cin_p - cin)))
    x_ph = x_pad.reshape(n, hps, s, wps, s, cin_p).transpose(0, 1, 3, 2, 4, 5)
    x_ph = x_ph.reshape(n, hps, wps, s * s * cin_p)

    par = pltpu.CompilerParams(dimension_semantics=("parallel",))

    # conv weights -> lane-dense MXU operands (bf16).
    taps1, w1p = _pack_conv1(params["conv1_w"], s, cin, planes, cin_p, cout_p, cdt)
    g1, k1 = w1p.shape[0], w1p.shape[1]
    w2p = jnp.pad(params["conv2_w"],
                  ((0, 0), (0, 0), (0, cout_p - planes), (0, cout_p - planes)))
    w2p = w2p.reshape(9, cout_p, cout_p).astype(cdt)

    if need_down:
        # ---- kernel 1: bn1 batch statistics (per-image partials, 'parallel') ----
        st1 = pl.pallas_call(
            _bn1_stats_kernel,
            out_shape=jax.ShapeDtypeStruct((n, 2, s * s * cin_p), jnp.float32),
            grid=(n,),
            in_specs=[pl.BlockSpec((None, hps, wps, s * s * cin_p),
                                   lambda i: (i, 0, 0, 0))],
            out_specs=pl.BlockSpec((None, 2, s * s * cin_p), lambda i: (i, 0, 0)),
            compiler_params=par,
        )(x_ph)
        tot1 = jnp.sum(st1, axis=0)                                   # (2, s*s*cin_p)
        cnt1 = float(n * h * w)
        sum1 = jnp.sum(tot1[0].reshape(s * s, cin_p), axis=0)
        sq1 = jnp.sum(tot1[1].reshape(s * s, cin_p), axis=0)
        mean1 = sum1 / cnt1
        var1 = sq1 / cnt1 - mean1 * mean1
        g1v = jnp.pad(params["bn1_gamma"], (0, cin_p - cin), constant_values=1.0)
        b1v = jnp.pad(params["bn1_beta"], (0, cin_p - cin))
        inv1 = g1v * jax.lax.rsqrt(var1 + eps)
        scale1 = inv1.reshape(1, cin_p)
        shift1 = (b1v - mean1 * inv1).reshape(1, cin_p)
        dwp = jnp.pad(params["down_w"],
                      ((0, cin_p - cin), (0, cout_p - planes))).astype(cdt)

        # ---- kernel 2: conv1(x) + downsample(relu(bn1(x))) + bn2 partial stats --
        kern2 = functools.partial(_conv1_down_kernel, taps=taps1, s=s, ho=ho, wo=wo,
                                  cin_p=cin_p, cout_p=cout_p, cdt=cdt)
        c1, ident, st2 = pl.pallas_call(
            kern2,
            out_shape=(jax.ShapeDtypeStruct((n, ho, wo, cout_p), cdt),
                       jax.ShapeDtypeStruct((n, ho, wo, cout_p), cdt),
                       jax.ShapeDtypeStruct((n, 2, cout_p), jnp.float32)),
            grid=(n,),
            in_specs=[pl.BlockSpec((None, hps, wps, s * s * cin_p),
                                   lambda i: (i, 0, 0, 0)),
                      pl.BlockSpec((g1, k1, cout_p), lambda i: (0, 0, 0)),
                      pl.BlockSpec((cin_p, cout_p), lambda i: (0, 0)),
                      pl.BlockSpec((1, cin_p), lambda i: (0, 0)),
                      pl.BlockSpec((1, cin_p), lambda i: (0, 0))],
            out_specs=(pl.BlockSpec((None, ho, wo, cout_p), lambda i: (i, 0, 0, 0)),
                       pl.BlockSpec((None, ho, wo, cout_p), lambda i: (i, 0, 0, 0)),
                       pl.BlockSpec((None, 2, cout_p), lambda i: (i, 0, 0))),
            compiler_params=par,
        )(x_ph, w1p, dwp, scale1, shift1)
    else:
        # No downsample: bn1 never reaches the output (module quirk);
        # identity is the raw (channel-padded, bf16) input.
        kern2 = functools.partial(_conv1_kernel, taps=taps1, ho=ho, wo=wo,
                                  cout_p=cout_p, cdt=cdt)
        c1, st2 = pl.pallas_call(
            kern2,
            out_shape=(jax.ShapeDtypeStruct((n, ho, wo, cout_p), cdt),
                       jax.ShapeDtypeStruct((n, 2, cout_p), jnp.float32)),
            grid=(n,),
            in_specs=[pl.BlockSpec((None, hps, wps, s * s * cin_p),
                                   lambda i: (i, 0, 0, 0)),
                      pl.BlockSpec((g1, k1, cout_p), lambda i: (0, 0, 0))],
            out_specs=(pl.BlockSpec((None, ho, wo, cout_p), lambda i: (i, 0, 0, 0)),
                       pl.BlockSpec((None, 2, cout_p), lambda i: (i, 0, 0))),
            compiler_params=par,
        )(x_ph, w1p)
        ident = x_bf if cin == cout_p else jnp.pad(
            x_bf, ((0, 0), (0, 0), (0, 0), (0, cout_p - cin)))

    # bn2 scale/shift from the fused partial statistics (f32, training-mode stats).
    tot2 = jnp.sum(st2, axis=0)                                       # (2, cout_p)
    cnt2 = float(n * ho * wo)
    mean2 = tot2[0] / cnt2
    var2 = tot2[1] / cnt2 - mean2 * mean2
    g2 = jnp.pad(params["bn2_gamma"], (0, cout_p - planes), constant_values=1.0)
    b2 = jnp.pad(params["bn2_beta"], (0, cout_p - planes))
    inv2 = g2 * jax.lax.rsqrt(var2 + eps)
    scale2 = inv2.reshape(1, cout_p)
    shift2 = (b2 - mean2 * inv2).reshape(1, cout_p)

    # ---- kernel 3: relu(bn2(c1)) -> conv2 -> + identity --------------------------
    kern3 = functools.partial(_bn2_conv2_add_kernel, ho=ho, wo=wo, cp=cout_p, cdt=cdt)
    out = pl.pallas_call(
        kern3,
        out_shape=jax.ShapeDtypeStruct((n, ho, wo, cout_p), cdt),
        grid=(n,),
        in_specs=[pl.BlockSpec((None, ho, wo, cout_p), lambda i: (i, 0, 0, 0)),
                  pl.BlockSpec((None, ho, wo, cout_p), lambda i: (i, 0, 0, 0)),
                  pl.BlockSpec((9, cout_p, cout_p), lambda i: (0, 0, 0)),
                  pl.BlockSpec((1, cout_p), lambda i: (0, 0)),
                  pl.BlockSpec((1, cout_p), lambda i: (0, 0))],
        out_specs=pl.BlockSpec((None, ho, wo, cout_p), lambda i: (i, 0, 0, 0)),
        scratch_shapes=[pltpu.VMEM((ho + 2, wo + 2, cout_p), cdt)],
        compiler_params=par,
    )(c1, ident, w2p, scale2, shift2)

    out = out[:, :, :, :planes]
    return jnp.transpose(out, (0, 3, 1, 2)).astype(jnp.float32)       # NCHW, f32


# ----------------------------------------------------------------------------
# Parameters & pure-JAX reference (correctness check)
# ----------------------------------------------------------------------------
def make_params(key, inplanes, planes):
    ks = jax.random.split(key, 7)
    return dict(
        conv1_w=0.1 * jax.random.normal(ks[0], (3, 3, inplanes, planes), jnp.float32),
        conv2_w=0.1 * jax.random.normal(ks[1], (3, 3, planes, planes), jnp.float32),
        down_w=0.1 * jax.random.normal(ks[2], (inplanes, planes), jnp.float32),
        bn1_gamma=1.0 + 0.1 * jax.random.normal(ks[3], (inplanes,), jnp.float32),
        bn1_beta=0.1 * jax.random.normal(ks[4], (inplanes,), jnp.float32),
        bn2_gamma=1.0 + 0.1 * jax.random.normal(ks[5], (planes,), jnp.float32),
        bn2_beta=0.1 * jax.random.normal(ks[6], (planes,), jnp.float32),
    )


def reference_forward(x_nchw, params, stride, eps=1e-5):
    dn = ("NHWC", "HWIO", "NHWC")
    x = jnp.transpose(x_nchw, (0, 2, 3, 1))
    cin = x.shape[-1]
    planes = params["conv1_w"].shape[-1]

    mean1 = jnp.mean(x, axis=(0, 1, 2))
    var1 = jnp.var(x, axis=(0, 1, 2))
    hpre = jnp.maximum(
        (x - mean1) / jnp.sqrt(var1 + eps) * params["bn1_gamma"] + params["bn1_beta"], 0.0
    )
    if stride != 1 or cin != planes:
        dw = params["down_w"].reshape(1, 1, cin, planes)
        identity = jax.lax.conv_general_dilated(
            hpre, dw, (stride, stride), "VALID", dimension_numbers=dn
        )
    else:
        identity = x

    c1 = jax.lax.conv_general_dilated(
        x, params["conv1_w"], (stride, stride), ((1, 1), (1, 1)), dimension_numbers=dn
    )
    mean2 = jnp.mean(c1, axis=(0, 1, 2))
    var2 = jnp.var(c1, axis=(0, 1, 2))
    h2 = jnp.maximum(
        (c1 - mean2) / jnp.sqrt(var2 + eps) * params["bn2_gamma"] + params["bn2_beta"], 0.0
    )
    out = (
        jax.lax.conv_general_dilated(
            h2, params["conv2_w"], (1, 1), ((1, 1), (1, 1)), dimension_numbers=dn
        )
        + identity
    )
    return jnp.transpose(out, (0, 3, 1, 2))


# ----------------------------------------------------------------------------
if __name__ == "__main__":
    key = jax.random.PRNGKey(0)
    kx_, kp_ = jax.random.split(key)

    # --- config 1: downsample path (stride 2, inplanes != planes) ---------------
    inplanes, planes, stride = 4, 8, 2
    x = jax.random.normal(kx_, (2, inplanes, 16, 16), jnp.float32)     # NCHW
    params = make_params(kp_, inplanes, planes)

    fwd = jax.jit(lambda a, p: preact_basic_block(a, p, stride))
    out = jax.block_until_ready(fwd(x, params))
    assert out.shape == (2, planes, 8, 8), out.shape

    ref = jax.block_until_ready(reference_forward(x, params, stride))
    err = float(jnp.max(jnp.abs(out - ref)))
    # bf16 streams / MXU operands (f32 accumulation and f32 BN statistics).
    assert err < 1e-1, f"max abs err {err}"

    # --- config 2: identity path (stride 1, inplanes == planes) -----------------
    params2 = make_params(kp_, planes, planes)
    x2 = jax.random.normal(kx_, (2, planes, 8, 8), jnp.float32)
    fwd2 = jax.jit(lambda a, p: preact_basic_block(a, p, 1))
    out2 = jax.block_until_ready(fwd2(x2, params2))
    assert out2.shape == (2, planes, 8, 8), out2.shape
    ref2 = jax.block_until_ready(reference_forward(x2, params2, 1))
    err2 = float(jnp.max(jnp.abs(out2 - ref2)))
    assert err2 < 1e-1, f"max abs err {err2}"

    print("KERNEL_OK")
</pallas_src>

<mosaic_0001>
module attributes {stable_mosaic.version = 11 : i64} {
  func.func @_bn1_stats_kernel(%arg0: i32, %arg1: memref<1x9x16x512xbf16, #tpu.memory_space<vmem>>, %arg2: memref<1x2x512xf32, #tpu.memory_space<vmem>>) attributes {dimension_semantics = [#tpu.dimension_semantics<parallel>], iteration_bounds = array<i64: 2>, scalar_prefetch = 0 : i64, scratch_operands = 0 : i64, tpu.core_type = #tpu.core_type<tc>, window_params = [{transform_indices = @transform_0, window_bounds = array<i64: 1, 9, 16, 512>}, {transform_indices = @transform_1, window_bounds = array<i64: 1, 2, 512>}]} {
    %c0 = arith.constant 0 : index
    %c0_0 = arith.constant 0 : index
    %c0_1 = arith.constant 0 : index
    %c0_2 = arith.constant 0 : index
    %0 = vector.load %arg1[%c0, %c0_0, %c0_1, %c0_2] : memref<1x9x16x512xbf16, #tpu.memory_space<vmem>>, vector<1x9x16x512xbf16>
    %1 = vector.shape_cast %0 : vector<1x9x16x512xbf16> to vector<9x16x512xbf16>
    %2 = arith.extf %1 : vector<9x16x512xbf16> to vector<9x16x512xf32>
    %cst = arith.constant dense<0.000000e+00> : vector<512xf32>
    %3 = vector.multi_reduction <add>, %2, %cst [0, 1] : vector<9x16x512xf32> to vector<512xf32>
    %4 = vector.shape_cast %3 : vector<512xf32> to vector<1x512xf32>
    %c0_3 = arith.constant 0 : index
    %c0_4 = arith.constant 0 : index
    %c0_5 = arith.constant 0 : index
    %5 = vector.load %arg2[%c0_3, %c0_4, %c0_5] : memref<1x2x512xf32, #tpu.memory_space<vmem>>, vector<1x1x512xf32>
    %6 = vector.shape_cast %5 : vector<1x1x512xf32> to vector<1x512xf32>
    %7 = vector.shape_cast %4 : vector<1x512xf32> to vector<1x1x512xf32>
    tpu.vector_store %arg2[%c0_3, %c0_4, %c0_5], %7 {strides = array<i32>} : memref<1x2x512xf32, #tpu.memory_space<vmem>>, vector<1x1x512xf32>,
    %8 = arith.mulf %2, %2 : vector<9x16x512xf32>
    %cst_6 = arith.constant dense<0.000000e+00> : vector<512xf32>
    %9 = vector.multi_reduction <add>, %8, %cst_6 [0, 1] : vector<9x16x512xf32> to vector<512xf32>
    %10 = vector.shape_cast %9 : vector<512xf32> to vector<1x512xf32>
    %c0_7 = arith.constant 0 : index
    %c1 = arith.constant 1 : index
    %c0_8 = arith.constant 0 : index
    %11 = vector.load %arg2[%c0_7, %c1, %c0_8] : memref<1x2x512xf32, #tpu.memory_space<vmem>>, vector<1x1x512xf32>
    %12 = vector.shape_cast %11 : vector<1x1x512xf32> to vector<1x512xf32>
    %13 = vector.shape_cast %10 : vector<1x512xf32> to vector<1x1x512xf32>
    tpu.vector_store %arg2[%c0_7, %c1, %c0_8], %13 {strides = array<i32>} : memref<1x2x512xf32, #tpu.memory_space<vmem>>, vector<1x1x512xf32>,
    return
  }
  func.func @transform_0(%arg0: i32) -> (i32, i32, i32, i32) {
    %c0_i32 = arith.constant 0 : i32
    %c0_i32_0 = arith.constant 0 : i32
    %c0_i32_1 = arith.constant 0 : i32
    %c0_i32_2 = arith.constant 0 : i32
    return %arg0, %c0_i32, %c0_i32_0, %c0_i32_1 : i32, i32, i32, i32
  }
  func.func @transform_1(%arg0: i32) -> (i32, i32, i32) {
    %c0_i32 = arith.constant 0 : i32
    %c0_i32_0 = arith.constant 0 : i32
    %c0_i32_1 = arith.constant 0 : i32
    return %arg0, %c0_i32, %c0_i32_0 : i32, i32, i32
  }
}

module attributes {stable_mosaic.version = 11 : i64} {
  func.func @_conv1_down_kernel(%arg0: i32, %arg1: memref<1x9x16x512xbf16, #tpu.memory_space<vmem>>, %arg2: memref<6x256x128xbf16, #tpu.memory_space<vmem>>, %arg3: memref<128x128xbf16, #tpu.memory_space<vmem>>, %arg4: memref<1x128xf32, #tpu.memory_space<vmem>>, %arg5: memref<1x128xf32, #tpu.memory_space<vmem>>, %arg6: memref<1x8x8x128xbf16, #tpu.memory_space<vmem>>, %arg7: memref<1x8x8x128xbf16, #tpu.memory_space<vmem>>, %arg8: memref<1x2x128xf32, #tpu.memory_space<vmem>>) attributes {dimension_semantics = [#tpu.dimension_semantics<parallel>], iteration_bounds = array<i64: 2>, scalar_prefetch = 0 : i64, scratch_operands = 0 : i64, tpu.core_type = #tpu.core_type<tc>, window_params = [{transform_indices = @transform_0, window_bounds = array<i64: 1, 9, 16, 512>}, {pipeline_mode = #tpu.pipeline_mode<synchronous>, transform_indices = @transform_1, window_bounds = array<i64: 6, 256, 128>}, {pipeline_mode = #tpu.pipeline_mode<synchronous>, transform_indices = @transform_2, window_bounds = array<i64: 128, 128>}, {pipeline_mode = #tpu.pipeline_mode<synchronous>, transform_indices = @transform_3, window_bounds = array<i64: 1, 128>}, {pipeline_mode = #tpu.pipeline_mode<synchronous>, transform_indices = @transform_4, window_bounds = array<i64: 1, 128>}, {transform_indices = @transform_5, window_bounds = array<i64: 1, 8, 8, 128>}, {transform_indices = @transform_6, window_bounds = array<i64: 1, 8, 8, 128>}, {transform_indices = @transform_7, window_bounds = array<i64: 1, 2, 128>}]} {
    %c0 = arith.constant 0 : index
    %c0_0 = arith.constant 0 : index
    %c0_1 = arith.constant 0 : index
    %c384 = arith.constant 384 : index
    %0 = vector.load %arg1[%c0, %c0_0, %c0_1, %c384] : memref<1x9x16x512xbf16, #tpu.memory_space<vmem>>, vector<1x8x8x128xbf16>
    %1 = vector.shape_cast %0 : vector<1x8x8x128xbf16> to vector<8x8x128xbf16>
    %c0_2 = arith.constant 0 : index
    %c0_3 = arith.constant 0 : index
    %2 = vector.load %arg4[%c0_2, %c0_3] : memref<1x128xf32, #tpu.memory_space<vmem>>, vector<1x128xf32>
    %3 = vector.shape_cast %2 : vector<1x128xf32> to vector<1x1x128xf32>
    %c0_4 = arith.constant 0 : index
    %c0_5 = arith.constant 0 : index
    %4 = vector.load %arg5[%c0_4, %c0_5] : memref<1x128xf32, #tpu.memory_space<vmem>>, vector<1x128xf32>
    %5 = vector.shape_cast %4 : vector<1x128xf32> to vector<1x1x128xf32>
    %6 = arith.extf %1 : vector<8x8x128xbf16> to vector<8x8x128xf32>
    %7 = vector.broadcast %3 : vector<1x1x128xf32> to vector<8x8x128xf32>
    %8 = arith.mulf %6, %7 : vector<8x8x128xf32>
    %9 = vector.broadcast %5 : vector<1x1x128xf32> to vector<8x8x128xf32>
    %10 = arith.addf %8, %9 : vector<8x8x128xf32>
    %cst = arith.constant 0.000000e+00 : f32
    %11 = vector.broadcast %cst : f32 to vector<8x8x128xf32>
    %12 = arith.maximumf %10, %11 : vector<8x8x128xf32>
    %13 = arith.truncf %12 : vector<8x8x128xf32> to vector<8x8x128xbf16>
    %14 = vector.shape_cast %13 : vector<8x8x128xbf16> to vector<64x128xbf16>
    %c0_6 = arith.constant 0 : index
    %c0_7 = arith.constant 0 : index
    %15 = vector.load %arg3[%c0_6, %c0_7] : memref<128x128xbf16, #tpu.memory_space<vmem>>, vector<128x128xbf16>
    %cst_8 = arith.constant dense<0.000000e+00> : vector<64x128xf32>
    %16 = tpu.matmul %14, %15, %cst_8 {dimension_numbers = #tpu.dot_dimension_numbers<[1], [0], [0], [1], [0, 0, 1, 1], [], []>} : vector<64x128xbf16>, vector<128x128xbf16>, vector<64x128xf32> -> vector<64x128xf32>
    %17 = vector.shape_cast %16 : vector<64x128xf32> to vector<8x8x128xf32>
    %18 = arith.truncf %17 : vector<8x8x128xf32> to vector<8x8x128xbf16>
    %c0_9 = arith.constant 0 : index
    %c0_10 = arith.constant 0 : index
    %c0_11 = arith.constant 0 : index
    %c0_12 = arith.constant 0 : index
    %19 = vector.load %arg7[%c0_9, %c0_10, %c0_11, %c0_12] : memref<1x8x8x128xbf16, #tpu.memory_space<vmem>>, vector<1x8x8x128xbf16>
    %20 = vector.shape_cast %19 : vector<1x8x8x128xbf16> to vector<8x8x128xbf16>
    %21 = vector.shape_cast %18 : vector<8x8x128xbf16> to vector<1x8x8x128xbf16>
    tpu.vector_store %arg7[%c0_9, %c0_10, %c0_11, %c0_12], %21 {strides = array<i32>} : memref<1x8x8x128xbf16, #tpu.memory_space<vmem>>, vector<1x8x8x128xbf16>,
    %cst_13 = arith.constant 0.000000e+00 : f32
    %22 = vector.broadcast %cst_13 : f32 to vector<64x128xf32>
    %c0_14 = arith.constant 0 : index
    %c0_15 = arith.constant 0 : index
    %c0_16 = arith.constant 0 : index
    %c0_17 = arith.constant 0 : index
    %23 = vector.load %arg1[%c0_14, %c0_15, %c0_16, %c0_17] : memref<1x9x16x512xbf16, #tpu.memory_space<vmem>>, vector<1x8x8x256xbf16>
    %24 = vector.shape_cast %23 : vector<1x8x8x256xbf16> to vector<8x8x256xbf16>
    %25 = vector.shape_cast %24 : vector<8x8x256xbf16> to vector<64x256xbf16>
    %c0_18 = arith.constant 0 : index
    %c0_19 = arith.constant 0 : index
    %c0_20 = arith.constant 0 : index
    %26 = vector.load %arg2[%c0_18, %c0_19, %c0_20] : memref<6x256x128xbf16, #tpu.memory_space<vmem>>, vector<1x256x128xbf16>
    %27 = vector.shape_cast %26 : vector<1x256x128xbf16> to vector<256x128xbf16>
    %cst_21 = arith.constant dense<0.000000e+00> : vector<64x128xf32>
    %28 = tpu.matmul %25, %27, %cst_21 {dimension_numbers = #tpu.dot_dimension_numbers<[1], [0], [0], [1], [0, 0, 1, 1], [], []>} : vector<64x256xbf16>, vector<256x128xbf16>, vector<64x128xf32> -> vector<64x128xf32>
    %29 = arith.addf %22, %28 : vector<64x128xf32>
    %c0_22 = arith.constant 0 : index
    %c0_23 = arith.constant 0 : index
    %c1 = arith.constant 1 : index
    %c0_24 = arith.constant 0 : index
    %30 = vector.load %arg1[%c0_22, %c0_23, %c1, %c0_24] : memref<1x9x16x512xbf16, #tpu.memory_space<vmem>>, vector<1x8x8x128xbf16>
    %31 = vector.shape_cast %30 : vector<1x8x8x128xbf16> to vector<8x8x128xbf16>
    %32 = vector.shape_cast %31 : vector<8x8x128xbf16> to vector<64x128xbf16>
    %c1_25 = arith.constant 1 : index
    %c0_26 = arith.constant 0 : index
    %c0_27 = arith.constant 0 : index
    %33 = vector.load %arg2[%c1_25, %c0_26, %c0_27] : memref<6x256x128xbf16, #tpu.memory_space<vmem>>, vector<1x128x128xbf16>
    %34 = vector.shape_cast %33 : vector<1x128x128xbf16> to vector<128x128xbf16>
    %cst_28 = arith.constant dense<0.000000e+00> : vector<64x128xf32>
    %35 = tpu.matmul %32, %34, %cst_28 {dimension_numbers = #tpu.dot_dimension_numbers<[1], [0], [0], [1], [0, 0, 1, 1], [], []>} : vector<64x128xbf16>, vector<128x128xbf16>, vector<64x128xf32> -> vector<64x128xf32>
    %36 = arith.addf %29, %35 : vector<64x128xf32>
    %c0_29 = arith.constant 0 : index
    %c0_30 = arith.constant 0 : index
    %c0_31 = arith.constant 0 : index
    %c256 = arith.constant 256 : index
    %37 = vector.load %arg1[%c0_29, %c0_30, %c0_31, %c256] : memref<1x9x16x512xbf16, #tpu.memory_space<vmem>>, vector<1x8x8x256xbf16>
    %38 = vector.shape_cast %37 : vector<1x8x8x256xbf16> to vector<8x8x256xbf16>
    %39 = vector.shape_cast %38 : vector<8x8x256xbf16> to vector<64x256xbf16>
    %c2 = arith.constant 2 : index
    %c0_32 = arith.constant 0 : index
    %c0_33 = arith.constant 0 : index
    %40 = vector.load %arg2[%c2, %c0_32, %c0_33] : memref<6x256x128xbf16, #tpu.memory_space<vmem>>, vector<1x256x128xbf16>
    %41 = vector.shape_cast %40 : vector<1x256x128xbf16> to vector<256x128xbf16>
    %cst_34 = arith.constant dense<0.000000e+00> : vector<64x128xf32>
    %42 = tpu.matmul %39, %41, %cst_34 {dimension_numbers = #tpu.dot_dimension_numbers<[1], [0], [0], [1], [0, 0, 1, 1], [], []>} : vector<64x256xbf16>, vector<256x128xbf16>, vector<64x128xf32> -> vector<64x128xf32>
    %43 = arith.addf %36, %42 : vector<64x128xf32>
    %c0_35 = arith.constant 0 : index
    %c0_36 = arith.constant 0 : index
    %c1_37 = arith.constant 1 : index
    %c256_38 = arith.constant 256 : index
    %44 = vector.load %arg1[%c0_35, %c0_36, %c1_37, %c256_38] : memref<1x9x16x512xbf16, #tpu.memory_space<vmem>>, vector<1x8x8x128xbf16>
    %45 = vector.shape_cast %44 : vector<1x8x8x128xbf16> to vector<8x8x128xbf16>
    %46 = vector.shape_cast %45 : vector<8x8x128xbf16> to vector<64x128xbf16>
    %c3 = arith.constant 3 : index
    %c0_39 = arith.constant 0 : index
    %c0_40 = arith.constant 0 : index
    %47 = vector.load %arg2[%c3, %c0_39, %c0_40] : memref<6x256x128xbf16, #tpu.memory_space<vmem>>, vector<1x128x128xbf16>
    %48 = vector.shape_cast %47 : vector<1x128x128xbf16> to vector<128x128xbf16>
    %cst_41 = arith.constant dense<0.000000e+00> : vector<64x128xf32>
    %49 = tpu.matmul %46, %48, %cst_41 {dimension_numbers = #tpu.dot_dimension_numbers<[1], [0], [0], [1], [0, 0, 1, 1], [], []>} : vector<64x128xbf16>, vector<128x128xbf16>, vector<64x128xf32> -> vector<64x128xf32>
    %50 = arith.addf %43, %49 : vector<64x128xf32>
    %c0_42 = arith.constant 0 : index
    %c1_43 = arith.constant 1 : index
    %c0_44 = arith.constant 0 : index
    %c0_45 = arith.constant 0 : index
    %51 = vector.load %arg1[%c0_42, %c1_43, %c0_44, %c0_45] : memref<1x9x16x512xbf16, #tpu.memory_space<vmem>>, vector<1x8x8x256xbf16>
    %52 = vector.shape_cast %51 : vector<1x8x8x256xbf16> to vector<8x8x256xbf16>
    %53 = vector.shape_cast %52 : vector<8x8x256xbf16> to vector<64x256xbf16>
    %c4 = arith.constant 4 : index
    %c0_46 = arith.constant 0 : index
    %c0_47 = arith.constant 0 : index
    %54 = vector.load %arg2[%c4, %c0_46, %c0_47] : memref<6x256x128xbf16, #tpu.memory_space<vmem>>, vector<1x256x128xbf16>
    %55 = vector.shape_cast %54 : vector<1x256x128xbf16> to vector<256x128xbf16>
    %cst_48 = arith.constant dense<0.000000e+00> : vector<64x128xf32>
    %56 = tpu.matmul %53, %55, %cst_48 {dimension_numbers = #tpu.dot_dimension_numbers<[1], [0], [0], [1], [0, 0, 1, 1], [], []>} : vector<64x256xbf16>, vector<256x128xbf16>, vector<64x128xf32> -> vector<64x128xf32>
    %57 = arith.addf %50, %56 : vector<64x128xf32>
    %c0_49 = arith.constant 0 : index
    %c1_50 = arith.constant 1 : index
    %c1_51 = arith.constant 1 : index
    %c0_52 = arith.constant 0 : index
    %58 = vector.load %arg1[%c0_49, %c1_50, %c1_51, %c0_52] : memref<1x9x16x512xbf16, #tpu.memory_space<vmem>>, vector<1x8x8x128xbf16>
    %59 = vector.shape_cast %58 : vector<1x8x8x128xbf16> to vector<8x8x128xbf16>
    %60 = vector.shape_cast %59 : vector<8x8x128xbf16> to vector<64x128xbf16>
    %c5 = arith.constant 5 : index
    %c0_53 = arith.constant 0 : index
    %c0_54 = arith.constant 0 : index
    %61 = vector.load %arg2[%c5, %c0_53, %c0_54] : memref<6x256x128xbf16, #tpu.memory_space<vmem>>, vector<1x128x128xbf16>
    %62 = vector.shape_cast %61 : vector<1x128x128xbf16> to vector<128x128xbf16>
    %cst_55 = arith.constant dense<0.000000e+00> : vector<64x128xf32>
    %63 = tpu.matmul %60, %62, %cst_55 {dimension_numbers = #tpu.dot_dimension_numbers<[1], [0], [0], [1], [0, 0, 1, 1], [], []>} : vector<64x128xbf16>, vector<128x128xbf16>, vector<64x128xf32> -> vector<64x128xf32>
    %64 = arith.addf %57, %63 : vector<64x128xf32>
    %65 = vector.shape_cast %64 : vector<64x128xf32> to vector<8x8x128xf32>
    %66 = arith.truncf %65 : vector<8x8x128xf32> to vector<8x8x128xbf16>
    %c0_56 = arith.constant 0 : index
    %c0_57 = arith.constant 0 : index
    %c0_58 = arith.constant 0 : index
    %c0_59 = arith.constant 0 : index
    %67 = vector.load %arg6[%c0_56, %c0_57, %c0_58, %c0_59] : memref<1x8x8x128xbf16, #tpu.memory_space<vmem>>, vector<1x8x8x128xbf16>
    %68 = vector.shape_cast %67 : vector<1x8x8x128xbf16> to vector<8x8x128xbf16>
    %69 = vector.shape_cast %66 : vector<8x8x128xbf16> to vector<1x8x8x128xbf16>
    tpu.vector_store %arg6[%c0_56, %c0_57, %c0_58, %c0_59], %69 {strides = array<i32>} : memref<1x8x8x128xbf16, #tpu.memory_space<vmem>>, vector<1x8x8x128xbf16>,
    %cst_60 = arith.constant dense<0.000000e+00> : vector<128xf32>
    %70 = vector.multi_reduction <add>, %64, %cst_60 [0] : vector<64x128xf32> to vector<128xf32>
    %71 = vector.shape_cast %70 : vector<128xf32> to vector<1x128xf32>
    %c0_61 = arith.constant 0 : index
    %c0_62 = arith.constant 0 : index
    %c0_63 = arith.constant 0 : index
    %72 = vector.load %arg8[%c0_61, %c0_62, %c0_63] : memref<1x2x128xf32, #tpu.memory_space<vmem>>, vector<1x1x128xf32>
    %73 = vector.shape_cast %72 : vector<1x1x128xf32> to vector<1x128xf32>
    %74 = vector.shape_cast %71 : vector<1x128xf32> to vector<1x1x128xf32>
    tpu.vector_store %arg8[%c0_61, %c0_62, %c0_63], %74 {strides = array<i32>} : memref<1x2x128xf32, #tpu.memory_space<vmem>>, vector<1x1x128xf32>,
    %75 = arith.mulf %64, %64 : vector<64x128xf32>
    %cst_64 = arith.constant dense<0.000000e+00> : vector<128xf32>
    %76 = vector.multi_reduction <add>, %75, %cst_64 [0] : vector<64x128xf32> to vector<128xf32>
    %77 = vector.shape_cast %76 : vector<128xf32> to vector<1x128xf32>
    %c0_65 = arith.constant 0 : index
    %c1_66 = arith.constant 1 : index
    %c0_67 = arith.constant 0 : index
    %78 = vector.load %arg8[%c0_65, %c1_66, %c0_67] : memref<1x2x128xf32, #tpu.memory_space<vmem>>, vector<1x1x128xf32>
    %79 = vector.shape_cast %78 : vector<1x1x128xf32> to vector<1x128xf32>
    %80 = vector.shape_cast %77 : vector<1x128xf32> to vector<1x1x128xf32>
    tpu.vector_store %arg8[%c0_65, %c1_66, %c0_67], %80 {strides = array<i32>} : memref<1x2x128xf32, #tpu.memory_space<vmem>>, vector<1x1x128xf32>,
    return
  }
  func.func @transform_0(%arg0: i32) -> (i32, i32, i32, i32) {
    %c0_i32 = arith.constant 0 : i32
    %c0_i32_0 = arith.constant 0 : i32
    %c0_i32_1 = arith.constant 0 : i32
    %c0_i32_2 = arith.constant 0 : i32
    return %arg0, %c0_i32, %c0_i32_0, %c0_i32_1 : i32, i32, i32, i32
  }
  func.func @transform_1(%arg0: i32) -> (i32, i32, i32) {
    %c0_i32 = arith.constant 0 : i32
    %c0_i32_0 = arith.constant 0 : i32
    %c0_i32_1 = arith.constant 0 : i32
    %c0_i32_2 = arith.constant 0 : i32
    return %c0_i32, %c0_i32_0, %c0_i32_1 : i32, i32, i32
  }
  func.func @transform_2(%arg0: i32) -> (i32, i32) {
    %c0_i32 = arith.constant 0 : i32
    %c0_i32_0 = arith.constant 0 : i32
    %c0_i32_1 = arith.constant 0 : i32
    return %c0_i32, %c0_i32_0 : i32, i32
  }
  func.func @transform_3(%arg0: i32) -> (i32, i32) {
    %c0_i32 = arith.constant 0 : i32
    %c0_i32_0 = arith.constant 0 : i32
    %c0_i32_1 = arith.constant 0 : i32
    return %c0_i32, %c0_i32_0 : i32, i32
  }
  func.func @transform_4(%arg0: i32) -> (i32, i32) {
    %c0_i32 = arith.constant 0 : i32
    %c0_i32_0 = arith.constant 0 : i32
    %c0_i32_1 = arith.constant 0 : i32
    return %c0_i32, %c0_i32_0 : i32, i32
  }
  func.func @transform_5(%arg0: i32) -> (i32, i32, i32, i32) {
    %c0_i32 = arith.constant 0 : i32
    %c0_i32_0 = arith.constant 0 : i32
    %c0_i32_1 = arith.constant 0 : i32
    %c0_i32_2 = arith.constant 0 : i32
    return %arg0, %c0_i32, %c0_i32_0, %c0_i32_1 : i32, i32, i32, i32
  }
  func.func @transform_6(%arg0: i32) -> (i32, i32, i32, i32) {
    %c0_i32 = arith.constant 0 : i32
    %c0_i32_0 = arith.constant 0 : i32
    %c0_i32_1 = arith.constant 0 : i32
    %c0_i32_2 = arith.constant 0 : i32
    return %arg0, %c0_i32, %c0_i32_0, %c0_i32_1 : i32, i32, i32, i32
  }
  func.func @transform_7(%arg0: i32) -> (i32, i32, i32) {
    %c0_i32 = arith.constant 0 : i32
    %c0_i32_0 = arith.constant 0 : i32
    %c0_i32_1 = arith.constant 0 : i32
    return %arg0, %c0_i32, %c0_i32_0 : i32, i32, i32
  }
}

module attributes {stable_mosaic.version = 11 : i64} {
  func.func @_bn2_conv2_add_kernel(%arg0: i32, %arg1: memref<1x8x8x128xbf16, #tpu.memory_space<vmem>>, %arg2: memref<1x8x8x128xbf16, #tpu.memory_space<vmem>>, %arg3: memref<9x128x128xbf16, #tpu.memory_space<vmem>>, %arg4: memref<1x128xf32, #tpu.memory_space<vmem>>, %arg5: memref<1x128xf32, #tpu.memory_space<vmem>>, %arg6: memref<1x8x8x128xbf16, #tpu.memory_space<vmem>>, %arg7: memref<10x10x128xbf16, #tpu.memory_space<vmem>>) attributes {dimension_semantics = [#tpu.dimension_semantics<parallel>], iteration_bounds = array<i64: 2>, scalar_prefetch = 0 : i64, scratch_operands = 1 : i64, tpu.core_type = #tpu.core_type<tc>, window_params = [{transform_indices = @transform_0, window_bounds = array<i64: 1, 8, 8, 128>}, {transform_indices = @transform_1, window_bounds = array<i64: 1, 8, 8, 128>}, {pipeline_mode = #tpu.pipeline_mode<synchronous>, transform_indices = @transform_2, window_bounds = array<i64: 9, 128, 128>}, {pipeline_mode = #tpu.pipeline_mode<synchronous>, transform_indices = @transform_3, window_bounds = array<i64: 1, 128>}, {pipeline_mode = #tpu.pipeline_mode<synchronous>, transform_indices = @transform_4, window_bounds = array<i64: 1, 128>}, {transform_indices = @transform_5, window_bounds = array<i64: 1, 8, 8, 128>}]} {
    %c0 = arith.constant 0 : index
    %c0_0 = arith.constant 0 : index
    %0 = vector.load %arg4[%c0, %c0_0] : memref<1x128xf32, #tpu.memory_space<vmem>>, vector<1x128xf32>
    %1 = vector.shape_cast %0 : vector<1x128xf32> to vector<1x1x128xf32>
    %c0_1 = arith.constant 0 : index
    %c0_2 = arith.constant 0 : index
    %2 = vector.load %arg5[%c0_1, %c0_2] : memref<1x128xf32, #tpu.memory_space<vmem>>, vector<1x128xf32>
    %3 = vector.shape_cast %2 : vector<1x128xf32> to vector<1x1x128xf32>
    %c0_3 = arith.constant 0 : index
    %c0_4 = arith.constant 0 : index
    %c0_5 = arith.constant 0 : index
    %c0_6 = arith.constant 0 : index
    %4 = vector.load %arg1[%c0_3, %c0_4, %c0_5, %c0_6] : memref<1x8x8x128xbf16, #tpu.memory_space<vmem>>, vector<1x8x8x128xbf16>
    %5 = vector.shape_cast %4 : vector<1x8x8x128xbf16> to vector<8x8x128xbf16>
    %6 = arith.extf %5 : vector<8x8x128xbf16> to vector<8x8x128xf32>
    %7 = vector.broadcast %1 : vector<1x1x128xf32> to vector<8x8x128xf32>
    %8 = arith.mulf %6, %7 : vector<8x8x128xf32>
    %9 = vector.broadcast %3 : vector<1x1x128xf32> to vector<8x8x128xf32>
    %10 = arith.addf %8, %9 : vector<8x8x128xf32>
    %cst = arith.constant 0.000000e+00 : f32
    %11 = vector.broadcast %cst : f32 to vector<8x8x128xf32>
    %12 = arith.maximumf %10, %11 : vector<8x8x128xf32>
    %cst_7 = arith.constant 0.000000e+00 : bf16
    %13 = vector.broadcast %cst_7 : bf16 to vector<1x10x128xbf16>
    %c0_8 = arith.constant 0 : index
    %c0_9 = arith.constant 0 : index
    %c0_10 = arith.constant 0 : index
    %14 = vector.load %arg7[%c0_8, %c0_9, %c0_10] : memref<10x10x128xbf16, #tpu.memory_space<vmem>>, vector<1x10x128xbf16>
    tpu.vector_store %arg7[%c0_8, %c0_9, %c0_10], %13 {strides = array<i32>} : memref<10x10x128xbf16, #tpu.memory_space<vmem>>, vector<1x10x128xbf16>,
    %cst_11 = arith.constant 0.000000e+00 : bf16
    %15 = vector.broadcast %cst_11 : bf16 to vector<1x10x128xbf16>
    %c9 = arith.constant 9 : index
    %c0_12 = arith.constant 0 : index
    %c0_13 = arith.constant 0 : index
    %16 = vector.load %arg7[%c9, %c0_12, %c0_13] : memref<10x10x128xbf16, #tpu.memory_space<vmem>>, vector<1x10x128xbf16>
    tpu.vector_store %arg7[%c9, %c0_12, %c0_13], %15 {strides = array<i32>} : memref<10x10x128xbf16, #tpu.memory_space<vmem>>, vector<1x10x128xbf16>,
    %cst_14 = arith.constant 0.000000e+00 : bf16
    %17 = vector.broadcast %cst_14 : bf16 to vector<10x1x128xbf16>
    %c0_15 = arith.constant 0 : index
    %c0_16 = arith.constant 0 : index
    %c0_17 = arith.constant 0 : index
    %18 = vector.load %arg7[%c0_15, %c0_16, %c0_17] : memref<10x10x128xbf16, #tpu.memory_space<vmem>>, vector<10x1x128xbf16>
    tpu.vector_store %arg7[%c0_15, %c0_16, %c0_17], %17 {strides = array<i32>} : memref<10x10x128xbf16, #tpu.memory_space<vmem>>, vector<10x1x128xbf16>,
    %cst_18 = arith.constant 0.000000e+00 : bf16
    %19 = vector.broadcast %cst_18 : bf16 to vector<10x1x128xbf16>
    %c0_19 = arith.constant 0 : index
    %c9_20 = arith.constant 9 : index
    %c0_21 = arith.constant 0 : index
    %20 = vector.load %arg7[%c0_19, %c9_20, %c0_21] : memref<10x10x128xbf16, #tpu.memory_space<vmem>>, vector<10x1x128xbf16>
    tpu.vector_store %arg7[%c0_19, %c9_20, %c0_21], %19 {strides = array<i32>} : memref<10x10x128xbf16, #tpu.memory_space<vmem>>, vector<10x1x128xbf16>,
    %21 = arith.truncf %12 : vector<8x8x128xf32> to vector<8x8x128xbf16>
    %c1 = arith.constant 1 : index
    %c1_22 = arith.constant 1 : index
    %c0_23 = arith.constant 0 : index
    %22 = vector.load %arg7[%c1, %c1_22, %c0_23] : memref<10x10x128xbf16, #tpu.memory_space<vmem>>, vector<8x8x128xbf16>
    tpu.vector_store %arg7[%c1, %c1_22, %c0_23], %21 {strides = array<i32>} : memref<10x10x128xbf16, #tpu.memory_space<vmem>>, vector<8x8x128xbf16>,
    %c0_24 = arith.constant 0 : index
    %c0_25 = arith.constant 0 : index
    %c0_26 = arith.constant 0 : index
    %c0_27 = arith.constant 0 : index
    %23 = vector.load %arg2[%c0_24, %c0_25, %c0_26, %c0_27] : memref<1x8x8x128xbf16, #tpu.memory_space<vmem>>, vector<1x8x8x128xbf16>
    %24 = vector.shape_cast %23 : vector<1x8x8x128xbf16> to vector<8x8x128xbf16>
    %25 = arith.extf %24 : vector<8x8x128xbf16> to vector<8x8x128xf32>
    %26 = vector.shape_cast %25 : vector<8x8x128xf32> to vector<64x128xf32>
    %c0_28 = arith.constant 0 : index
    %c0_29 = arith.constant 0 : index
    %c0_30 = arith.constant 0 : index
    %27 = vector.load %arg7[%c0_28, %c0_29, %c0_30] : memref<10x10x128xbf16, #tpu.memory_space<vmem>>, vector<8x8x128xbf16>
    %28 = vector.shape_cast %27 : vector<8x8x128xbf16> to vector<64x128xbf16>
    %c0_31 = arith.constant 0 : index
    %c0_32 = arith.constant 0 : index
    %c0_33 = arith.constant 0 : index
    %29 = vector.load %arg3[%c0_31, %c0_32, %c0_33] : memref<9x128x128xbf16, #tpu.memory_space<vmem>>, vector<1x128x128xbf16>
    %30 = vector.shape_cast %29 : vector<1x128x128xbf16> to vector<128x128xbf16>
    %cst_34 = arith.constant dense<0.000000e+00> : vector<64x128xf32>
    %31 = tpu.matmul %28, %30, %cst_34 {dimension_numbers = #tpu.dot_dimension_numbers<[1], [0], [0], [1], [0, 0, 1, 1], [], []>} : vector<64x128xbf16>, vector<128x128xbf16>, vector<64x128xf32> -> vector<64x128xf32>
    %32 = arith.addf %26, %31 : vector<64x128xf32>
    %c0_35 = arith.constant 0 : index
    %c1_36 = arith.constant 1 : index
    %c0_37 = arith.constant 0 : index
    %33 = vector.load %arg7[%c0_35, %c1_36, %c0_37] : memref<10x10x128xbf16, #tpu.memory_space<vmem>>, vector<8x8x128xbf16>
    %34 = vector.shape_cast %33 : vector<8x8x128xbf16> to vector<64x128xbf16>
    %c1_38 = arith.constant 1 : index
    %c0_39 = arith.constant 0 : index
    %c0_40 = arith.constant 0 : index
    %35 = vector.load %arg3[%c1_38, %c0_39, %c0_40] : memref<9x128x128xbf16, #tpu.memory_space<vmem>>, vector<1x128x128xbf16>
    %36 = vector.shape_cast %35 : vector<1x128x128xbf16> to vector<128x128xbf16>
    %cst_41 = arith.constant dense<0.000000e+00> : vector<64x128xf32>
    %37 = tpu.matmul %34, %36, %cst_41 {dimension_numbers = #tpu.dot_dimension_numbers<[1], [0], [0], [1], [0, 0, 1, 1], [], []>} : vector<64x128xbf16>, vector<128x128xbf16>, vector<64x128xf32> -> vector<64x128xf32>
    %38 = arith.addf %32, %37 : vector<64x128xf32>
    %c0_42 = arith.constant 0 : index
    %c2 = arith.constant 2 : index
    %c0_43 = arith.constant 0 : index
    %39 = vector.load %arg7[%c0_42, %c2, %c0_43] : memref<10x10x128xbf16, #tpu.memory_space<vmem>>, vector<8x8x128xbf16>
    %40 = vector.shape_cast %39 : vector<8x8x128xbf16> to vector<64x128xbf16>
    %c2_44 = arith.constant 2 : index
    %c0_45 = arith.constant 0 : index
    %c0_46 = arith.constant 0 : index
    %41 = vector.load %arg3[%c2_44, %c0_45, %c0_46] : memref<9x128x128xbf16, #tpu.memory_space<vmem>>, vector<1x128x128xbf16>
    %42 = vector.shape_cast %41 : vector<1x128x128xbf16> to vector<128x128xbf16>
    %cst_47 = arith.constant dense<0.000000e+00> : vector<64x128xf32>
    %43 = tpu.matmul %40, %42, %cst_47 {dimension_numbers = #tpu.dot_dimension_numbers<[1], [0], [0], [1], [0, 0, 1, 1], [], []>} : vector<64x128xbf16>, vector<128x128xbf16>, vector<64x128xf32> -> vector<64x128xf32>
    %44 = arith.addf %38, %43 : vector<64x128xf32>
    %c1_48 = arith.constant 1 : index
    %c0_49 = arith.constant 0 : index
    %c0_50 = arith.constant 0 : index
    %45 = vector.load %arg7[%c1_48, %c0_49, %c0_50] : memref<10x10x128xbf16, #tpu.memory_space<vmem>>, vector<8x8x128xbf16>
    %46 = vector.shape_cast %45 : vector<8x8x128xbf16> to vector<64x128xbf16>
    %c3 = arith.constant 3 : index
    %c0_51 = arith.constant 0 : index
    %c0_52 = arith.constant 0 : index
    %47 = vector.load %arg3[%c3, %c0_51, %c0_52] : memref<9x128x128xbf16, #tpu.memory_space<vmem>>, vector<1x128x128xbf16>
    %48 = vector.shape_cast %47 : vector<1x128x128xbf16> to vector<128x128xbf16>
    %cst_53 = arith.constant dense<0.000000e+00> : vector<64x128xf32>
    %49 = tpu.matmul %46, %48, %cst_53 {dimension_numbers = #tpu.dot_dimension_numbers<[1], [0], [0], [1], [0, 0, 1, 1], [], []>} : vector<64x128xbf16>, vector<128x128xbf16>, vector<64x128xf32> -> vector<64x128xf32>
    %50 = arith.addf %44, %49 : vector<64x128xf32>
    %c1_54 = arith.constant 1 : index
    %c1_55 = arith.constant 1 : index
    %c0_56 = arith.constant 0 : index
    %51 = vector.load %arg7[%c1_54, %c1_55, %c0_56] : memref<10x10x128xbf16, #tpu.memory_space<vmem>>, vector<8x8x128xbf16>
    %52 = vector.shape_cast %51 : vector<8x8x128xbf16> to vector<64x128xbf16>
    %c4 = arith.constant 4 : index
    %c0_57 = arith.constant 0 : index
    %c0_58 = arith.constant 0 : index
    %53 = vector.load %arg3[%c4, %c0_57, %c0_58] : memref<9x128x128xbf16, #tpu.memory_space<vmem>>, vector<1x128x128xbf16>
    %54 = vector.shape_cast %53 : vector<1x128x128xbf16> to vector<128x128xbf16>
    %cst_59 = arith.constant dense<0.000000e+00> : vector<64x128xf32>
    %55 = tpu.matmul %52, %54, %cst_59 {dimension_numbers = #tpu.dot_dimension_numbers<[1], [0], [0], [1], [0, 0, 1, 1], [], []>} : vector<64x128xbf16>, vector<128x128xbf16>, vector<64x128xf32> -> vector<64x128xf32>
    %56 = arith.addf %50, %55 : vector<64x128xf32>
    %c1_60 = arith.constant 1 : index
    %c2_61 = arith.constant 2 : index
    %c0_62 = arith.constant 0 : index
    %57 = vector.load %arg7[%c1_60, %c2_61, %c0_62] : memref<10x10x128xbf16, #tpu.memory_space<vmem>>, vector<8x8x128xbf16>
    %58 = vector.shape_cast %57 : vector<8x8x128xbf16> to vector<64x128xbf16>
    %c5 = arith.constant 5 : index
    %c0_63 = arith.constant 0 : index
    %c0_64 = arith.constant 0 : index
    %59 = vector.load %arg3[%c5, %c0_63, %c0_64] : memref<9x128x128xbf16, #tpu.memory_space<vmem>>, vector<1x128x128xbf16>
    %60 = vector.shape_cast %59 : vector<1x128x128xbf16> to vector<128x128xbf16>
    %cst_65 = arith.constant dense<0.000000e+00> : vector<64x128xf32>
    %61 = tpu.matmul %58, %60, %cst_65 {dimension_numbers = #tpu.dot_dimension_numbers<[1], [0], [0], [1], [0, 0, 1, 1], [], []>} : vector<64x128xbf16>, vector<128x128xbf16>, vector<64x128xf32> -> vector<64x128xf32>
    %62 = arith.addf %56, %61 : vector<64x128xf32>
    %c2_66 = arith.constant 2 : index
    %c0_67 = arith.constant 0 : index
    %c0_68 = arith.constant 0 : index
    %63 = vector.load %arg7[%c2_66, %c0_67, %c0_68] : memref<10x10x128xbf16, #tpu.memory_space<vmem>>, vector<8x8x128xbf16>
    %64 = vector.shape_cast %63 : vector<8x8x128xbf16> to vector<64x128xbf16>
    %c6 = arith.constant 6 : index
    %c0_69 = arith.constant 0 : index
    %c0_70 = arith.constant 0 : index
    %65 = vector.load %arg3[%c6, %c0_69, %c0_70] : memref<9x128x128xbf16, #tpu.memory_space<vmem>>, vector<1x128x128xbf16>
    %66 = vector.shape_cast %65 : vector<1x128x128xbf16> to vector<128x128xbf16>
    %cst_71 = arith.constant dense<0.000000e+00> : vector<64x128xf32>
    %67 = tpu.matmul %64, %66, %cst_71 {dimension_numbers = #tpu.dot_dimension_numbers<[1], [0], [0], [1], [0, 0, 1, 1], [], []>} : vector<64x128xbf16>, vector<128x128xbf16>, vector<64x128xf32> -> vector<64x128xf32>
    %68 = arith.addf %62, %67 : vector<64x128xf32>
    %c2_72 = arith.constant 2 : index
    %c1_73 = arith.constant 1 : index
    %c0_74 = arith.constant 0 : index
    %69 = vector.load %arg7[%c2_72, %c1_73, %c0_74] : memref<10x10x128xbf16, #tpu.memory_space<vmem>>, vector<8x8x128xbf16>
    %70 = vector.shape_cast %69 : vector<8x8x128xbf16> to vector<64x128xbf16>
    %c7 = arith.constant 7 : index
    %c0_75 = arith.constant 0 : index
    %c0_76 = arith.constant 0 : index
    %71 = vector.load %arg3[%c7, %c0_75, %c0_76] : memref<9x128x128xbf16, #tpu.memory_space<vmem>>, vector<1x128x128xbf16>
    %72 = vector.shape_cast %71 : vector<1x128x128xbf16> to vector<128x128xbf16>
    %cst_77 = arith.constant dense<0.000000e+00> : vector<64x128xf32>
    %73 = tpu.matmul %70, %72, %cst_77 {dimension_numbers = #tpu.dot_dimension_numbers<[1], [0], [0], [1], [0, 0, 1, 1], [], []>} : vector<64x128xbf16>, vector<128x128xbf16>, vector<64x128xf32> -> vector<64x128xf32>
    %74 = arith.addf %68, %73 : vector<64x128xf32>
    %c2_78 = arith.constant 2 : index
    %c2_79 = arith.constant 2 : index
    %c0_80 = arith.constant 0 : index
    %75 = vector.load %arg7[%c2_78, %c2_79, %c0_80] : memref<10x10x128xbf16, #tpu.memory_space<vmem>>, vector<8x8x128xbf16>
    %76 = vector.shape_cast %75 : vector<8x8x128xbf16> to vector<64x128xbf16>
    %c8 = arith.constant 8 : index
    %c0_81 = arith.constant 0 : index
    %c0_82 = arith.constant 0 : index
    %77 = vector.load %arg3[%c8, %c0_81, %c0_82] : memref<9x128x128xbf16, #tpu.memory_space<vmem>>, vector<1x128x128xbf16>
    %78 = vector.shape_cast %77 : vector<1x128x128xbf16> to vector<128x128xbf16>
    %cst_83 = arith.constant dense<0.000000e+00> : vector<64x128xf32>
    %79 = tpu.matmul %76, %78, %cst_83 {dimension_numbers = #tpu.dot_dimension_numbers<[1], [0], [0], [1], [0, 0, 1, 1], [], []>} : vector<64x128xbf16>, vector<128x128xbf16>, vector<64x128xf32> -> vector<64x128xf32>
    %80 = arith.addf %74, %79 : vector<64x128xf32>
    %81 = vector.shape_cast %80 : vector<64x128xf32> to vector<8x8x128xf32>
    %82 = arith.truncf %81 : vector<8x8x128xf32> to vector<8x8x128xbf16>
    %c0_84 = arith.constant 0 : index
    %c0_85 = arith.constant 0 : index
    %c0_86 = arith.constant 0 : index
    %c0_87 = arith.constant 0 : index
    %83 = vector.load %arg6[%c0_84, %c0_85, %c0_86, %c0_87] : memref<1x8x8x128xbf16, #tpu.memory_space<vmem>>, vector<1x8x8x128xbf16>
    %84 = vector.shape_cast %83 : vector<1x8x8x128xbf16> to vector<8x8x128xbf16>
    %85 = vector.shape_cast %82 : vector<8x8x128xbf16> to vector<1x8x8x128xbf16>
    tpu.vector_store %arg6[%c0_84, %c0_85, %c0_86, %c0_87], %85 {strides = array<i32>} : memref<1x8x8x128xbf16, #tpu.memory_space<vmem>>, vector<1x8x8x128xbf16>,
    return
  }
  func.func @transform_0(%arg0: i32) -> (i32, i32, i32, i32) {
    %c0_i32 = arith.constant 0 : i32
    %c0_i32_0 = arith.constant 0 : i32
    %c0_i32_1 = arith.constant 0 : i32
    %c0_i32_2 = arith.constant 0 : i32
    return %arg0, %c0_i32, %c0_i32_0, %c0_i32_1 : i32, i32, i32, i32
  }
  func.func @transform_1(%arg0: i32) -> (i32, i32, i32, i32) {
    %c0_i32 = arith.constant 0 : i32
    %c0_i32_0 = arith.constant 0 : i32
    %c0_i32_1 = arith.constant 0 : i32
    %c0_i32_2 = arith.constant 0 : i32
    return %arg0, %c0_i32, %c0_i32_0, %c0_i32_1 : i32, i32, i32, i32
  }
  func.func @transform_2(%arg0: i32) -> (i32, i32, i32) {
    %c0_i32 = arith.constant 0 : i32
    %c0_i32_0 = arith.constant 0 : i32
    %c0_i32_1 = arith.constant 0 : i32
    %c0_i32_2 = arith.constant 0 : i32
    return %c0_i32, %c0_i32_0, %c0_i32_1 : i32, i32, i32
  }
  func.func @transform_3(%arg0: i32) -> (i32, i32) {
    %c0_i32 = arith.constant 0 : i32
    %c0_i32_0 = arith.constant 0 : i32
    %c0_i32_1 = arith.constant 0 : i32
    return %c0_i32, %c0_i32_0 : i32, i32
  }
  func.func @transform_4(%arg0: i32) -> (i32, i32) {
    %c0_i32 = arith.constant 0 : i32
    %c0_i32_0 = arith.constant 0 : i32
    %c0_i32_1 = arith.constant 0 : i32
    return %c0_i32, %c0_i32_0 : i32, i32
  }
  func.func @transform_5(%arg0: i32) -> (i32, i32, i32, i32) {
    %c0_i32 = arith.constant 0 : i32
    %c0_i32_0 = arith.constant 0 : i32
    %c0_i32_1 = arith.constant 0 : i32
    %c0_i32_2 = arith.constant 0 : i32
    return %arg0, %c0_i32, %c0_i32_0, %c0_i32_1 : i32, i32, i32, i32
  }
}

</mosaic_0001>

<bundles_post_ra>
// kernel: _lambda_.3
= control target key start
LH: loop header
LB: loop body
LE: loop exit
PB: predicated region body
PF: predicated region fallthrough
CT: control target
= control target key end

     0   :  { %s711_s6 = smov 0   ;;  %s1068_s0 = inlined_call_operand.vmem [shape: bf16[2,9,16,512], index: 0, kind: input, shape index: {}]   ;;  %s1069_s1 = inlined_call_operand.vmem [shape: f32[2,2,512], index: 1, kind: output, shape index: {}]  }
   0x1 LB: > { %s601_s7 = sadd.s32 4294967295, %s697_s6   ;;  %p605_p0 = scmp.ge.s32.totalorder %s697_s6, 1  ;;  %s697_s6 = sphi %s711_s6, %s11_s6  }
   0x2   : > { %p87_p1 = scmp.lt.s32.totalorder %s697_s6, 3 }
   0x4   : > { %p88_p2 = pnand %p605_p0, %p87_p1 }
   0x6   : > { %91 = sbr.rel (%p88_p2) target bundleno = 102 (0x66), region = 24 }
   0xd   : > { %p107_p3 = scmp.lt.s32.totalorder %s601_s7, 1  ;;  %v699_v0 = vmov 1966171168   ;;  %v1070_v2 = vlaneseq }
   0xe   : > { %v324_v1 = vunpack.c.l.s4 %v699_v0 }
   0xf   : > { %s1161_s7 = smov (!%p107_p3, %s601_s7), 1  ;;  %v728_v4 = vshrl.u32 %v1070_v2, 7 }
  0x10   : > { %s613_s8 = smul.u32 288, %s1161_s7  ;;  %v325_v3 = vunpack.c.0.s8 %v324_v1  ;;  %s612_s12 = sshll.u32 %s1161_s7, 3 }
  0x11   : > { %1092 = vst [vmem:[#allocation2_spill] sm:$0xff] %v728_v4  ;;  %s1012_s15 = scalar_lea.vmem %s1069_s1, %s612_s12 }
  0x12   : > { %s725_s11 = scalar_lea.vmem %s1068_s0, %s613_s8  ;;  %v754_v14 = vsub.s32 %v325_v3, %v728_v4 }
  0x13   : > { %v731_v5 = vld [vmem:[%s725_s11] sm:$0xff]  ;;  %v734_v6 = vld [vmem:[%s725_s11 + $0x8] sm:$0xff]  ;;  %v737_v7 = vld [vmem:[%s725_s11 + $0x10] sm:$0xff] }
  0x14   : > { %v740_v8 = vld [vmem:[%s725_s11 + $0x18] sm:$0xff]  ;;  %v743_v9 = vld [vmem:[%s725_s11 + $0x20] sm:$0xff]  ;;  %v746_v10 = vld [vmem:[%s725_s11 + $0x28] sm:$0xff]  ;;  %v153_v12 = vunpack.c.l.bf16 %v731_v5  ;;  %v154_v13 = vunpack.c.h.bf16 %v731_v5  ;;  %v155_v17 = vunpack.c.l.bf16 %v734_v6  ;;  %v156_v18 = vunpack.c.h.bf16 %v734_v6 }
  0x15   : > { %v749_v11 = vld [vmem:[%s725_s11 + $0x30] sm:$0xff]  ;;  %v757_v15 = vld [vmem:[%s725_s11 + $0x38] sm:$0xff]  ;;  %v760_v16 = vld [vmem:[%s725_s11 + $0x40] sm:$0xff]  ;;  %v157_v19 = vunpack.c.l.bf16 %v737_v7  ;;  %v158_v20 = vunpack.c.h.bf16 %v737_v7  ;;  %v159_v23 = vunpack.c.l.bf16 %v740_v8  ;;  %v160_v24 = vunpack.c.h.bf16 %v740_v8 }
  0x16   : > { %v767_v21 = vld [vmem:[%s725_s11 + $0x48] sm:$0xff]  ;;  %v770_v22 = vld [vmem:[%s725_s11 + $0x50] sm:$0xff]  ;;  %v161_v25 = vunpack.c.l.bf16 %v743_v9  ;;  %v162_v26 = vunpack.c.h.bf16 %v743_v9  ;;  %v777_v27 = vld [vmem:[%s725_s11 + $0x58] sm:$0xff]  ;;  %v163_v29 = vunpack.c.l.bf16 %v746_v10  ;;  %v164_v30 = vunpack.c.h.bf16 %v746_v10 }
  0x17   : > { %v780_v28 = vld [vmem:[%s725_s11 + $0x60] sm:$0xff]  ;;  %v165_v31 = vunpack.c.l.bf16 %v749_v11  ;;  %v166_v32 = vunpack.c.h.bf16 %v749_v11  ;;  %v787_v33 = vld [vmem:[%s725_s11 + $0x68] sm:$0xff]  ;;  %v790_v34 = vld [vmem:[%s725_s11 + $0x70] sm:$0xff]  ;;  %v167_v35 = vunpack.c.l.bf16 %v757_v15  ;;  %v168_v36 = vunpack.c.h.bf16 %v757_v15 }
  0x18   : > { %v169_v37 = vunpack.c.l.bf16 %v760_v16  ;;  %v170_v38 = vunpack.c.h.bf16 %v760_v16  ;;  %v797_v39 = vld [vmem:[%s725_s11 + $0x78] sm:$0xff]  ;;  %v800_v40 = vld [vmem:[%s725_s11 + $0x80] sm:$0xff]  ;;  %v171_v41 = vunpack.c.l.bf16 %v767_v21  ;;  %v172_v42 = vunpack.c.h.bf16 %v767_v21  ;;  %v807_v45 = vld [vmem:[%s725_s11 + $0x88] sm:$0xff] }
  0x19   : > { %1093 = vst [vmem:[#allocation3_spill] sm:$0xff] %v800_v40  ;;  %v173_v43 = vunpack.c.l.bf16 %v770_v22  ;;  %v174_v44 = vunpack.c.h.bf16 %v770_v22  ;;  %1094 = vst [vmem:[#allocation4_spill] sm:$0xff] %v807_v45  ;;  %v810_v46 = vld [vmem:[%s725_s11 + $0x90] sm:$0xff]  ;;  %v175_v47 = vunpack.c.l.bf16 %v777_v27  ;;  %v176_v48 = vunpack.c.h.bf16 %v777_v27  ;;  %v821_v55 = vld [vmem:[%s725_s11 + $0x98] sm:$0xff] }
  0x1a   : > { %1095 = vst [vmem:[#allocation5_spill] sm:$0xff] %v810_v46  ;;  %v177_v49 = vunpack.c.l.bf16 %v780_v28  ;;  %v178_v50 = vunpack.c.h.bf16 %v780_v28  ;;  %v179_v51 = vunpack.c.l.bf16 %v787_v33  ;;  %1096 = vst [vmem:[#allocation6_spill] sm:$0xff] %v821_v55  ;;  %v824_v56 = vld [vmem:[%s725_s11 + $0xa0] sm:$0xff]  ;;  %v835_v1 = vld [vmem:[%s725_s11 + $0xa8] sm:$0xff]  ;;  %v225_v2 = vadd.f32 %v157_v19, %v153_v12 }
  0x1b   : > { %1097 = vst [vmem:[#allocation7_spill] sm:$0xff] %v824_v56  ;;  %1098 = vst [vmem:[#allocation8_spill] sm:$0xff] %v835_v1  ;;  %v838_v3 = vld [vmem:[%s725_s11 + $0xb0] sm:$0xff]  ;;  %v248_v58 = vadd.f32 %v158_v20, %v154_v13  ;;  %v271_v57 = vadd.f32 %v159_v23, %v155_v17  ;;  %v294_v59 = vadd.f32 %v160_v24, %v156_v18  ;;  %v845_v54 = vld [vmem:[%s725_s11 + $0xb8] sm:$0xff] }
  0x1c   : > { %1099 = vst [vmem:[#allocation9_spill] sm:$0xff] %v838_v3  ;;  %1100 = vst [vmem:[#allocation10_spill] sm:$0xff] %v845_v54  ;;  %v848_v0 = vld [vmem:[%s725_s11 + $0xc0] sm:$0xff]  ;;  %v226_v53 = vadd.f32 %v225_v2, %v161_v25  ;;  %v855_v23 = vld [vmem:[%s725_s11 + $0xc8] sm:$0xff]  ;;  %627 = vmul.bf16.f32.vacc0 %v731_v5, %v731_v5  ;;  %661 = vmul.bf16.f32.vacc1 %v734_v6, %v734_v6 }
  0x1d   : > { %1101 = vst [vmem:[#allocation11_spill] sm:$0xff] %v848_v0  ;;  %v249_v52 = vadd.f32 %v248_v58, %v162_v26  ;;  %v272_v12 = vadd.f32 %v271_v57, %v163_v29  ;;  %v295_v13 = vadd.f32 %v294_v59, %v164_v30  ;;  %1102 = vst [vmem:[#allocation12_spill] sm:$0xff] %v855_v23  ;;  %v858_v24 = vld [vmem:[%s725_s11 + $0xd0] sm:$0xff]  ;;  %v865_v58 = vld [vmem:[%s725_s11 + $0xd8] sm:$0xff] }
  0x1e   : > { %1103 = vst [vmem:[#allocation13_spill] sm:$0xff] %v858_v24  ;;  %v227_v63 = vadd.f32 %v226_v53, %v165_v31  ;;  %1104 = vst [vmem:[#allocation14_spill] sm:$0xff] %v865_v58  ;;  %v868_v59 = vld [vmem:[%s725_s11 + $0xe0] sm:$0xff]  ;;  %v206_v53 = vunpack.c.h.bf16 %v858_v24  ;;  %v889_v57 = vld [vmem:[%s725_s11 + $0xf8] sm:$0xff]  ;;  %628 = vmac.bf16.f32.vacc0 %v737_v7, %v737_v7  ;;  %662 = vmac.bf16.f32.vacc1 %v740_v8, %v740_v8 }
  0x1f   : > { %v250_v62 = vadd.f32 %v249_v52, %v166_v32  ;;  %v273_v2 = vadd.f32 %v272_v12, %v167_v35  ;;  %v296_v25 = vadd.f32 %v295_v13, %v168_v36  ;;  %1105 = vst [vmem:[#allocation15_spill] sm:$0xff] %v868_v59  ;;  %v203_v35 = vunpack.c.l.bf16 %v855_v23  ;;  %v875_v12 = vld [vmem:[%s725_s11 + $0xe8] sm:$0xff]  ;;  %v878_v13 = vld [vmem:[%s725_s11 + $0xf0] sm:$0xff]  ;;  %1108 = vst [vmem:[#allocation18_spill] sm:$0xff] %v889_v57 }
  0x20   : > { %v228_v20 = vadd.f32 %v227_v63, %v169_v37  ;;  %v204_v36 = vunpack.c.h.bf16 %v855_v23  ;;  %v205_v52 = vunpack.c.l.bf16 %v858_v24  ;;  %1106 = vst [vmem:[#allocation16_spill] sm:$0xff] %v875_v12  ;;  %1107 = vst [vmem:[#allocation17_spill] sm:$0xff] %v878_v13  ;;  %v208_v63 = vunpack.c.h.bf16 %v865_v58  ;;  %v892_v30 = vld [vmem:[%s725_s11 + $0x100] sm:$0xff]  ;;  %v907_v26 = vld [vmem:[%s725_s11 + $0x108] sm:$0xff] }
  0x21   : > { %v251_v19 = vadd.f32 %v250_v62, %v170_v38  ;;  %v274_v31 = vadd.f32 %v273_v2, %v171_v41  ;;  %v297_v32 = vadd.f32 %v296_v25, %v172_v42  ;;  %v207_v62 = vunpack.c.l.bf16 %v865_v58  ;;  %1109 = vst [vmem:[#allocation19_spill] sm:$0xff] %v892_v30  ;;  %1111 = vst [vmem:[#allocation20_spill] sm:$0xff] %v907_v26 }
  0x22   : > { %v229_v37 = vadd.f32 %v228_v20, %v173_v43  ;;  %v209_v2 = vunpack.c.l.bf16 %v868_v59  ;;  %v210_v25 = vunpack.c.h.bf16 %v868_v59  ;;  %v211_v20 = vunpack.c.l.bf16 %v875_v12 }
  0x23   : > { %v252_v38 = vadd.f32 %v251_v19, %v174_v44  ;;  %v275_v41 = vadd.f32 %v274_v31, %v175_v47  ;;  %v298_v42 = vadd.f32 %v297_v32, %v176_v48  ;;  %v1110_v48 = vunpack.c.h.bf16 %v787_v33 }
  0x24   : > { %v230_v43 = vadd.f32 %v229_v37, %v177_v49  ;;  %v212_v31 = vunpack.c.h.bf16 %v875_v12  ;;  %v213_v32 = vunpack.c.l.bf16 %v878_v13  ;;  %v214_v29 = vunpack.c.h.bf16 %v878_v13  ;;  %v910_v49 = vld [vmem:[%s725_s11 + $0x110] sm:$0xff]  ;;  %v925_v13 = vld [vmem:[%s725_s11 + $0x118] sm:$0xff] }
  0x25   : > { %v253_v44 = vadd.f32 %v252_v38, %v178_v50  ;;  %v276_v47 = vadd.f32 %v275_v41, %v179_v51  ;;  %v299_v19 = vadd.f32 %v298_v42, %v1110_v48  ;;  %1112 = vst [vmem:[#allocation21_spill] sm:$0xff] %v910_v49  ;;  %v1113_v50 = vunpack.c.l.bf16 %v790_v34  ;;  %1117 = vst [vmem:[#allocation22_spill] sm:$0xff] %v925_v13 }
  0x26   : > { %v1114_v51 = vunpack.c.h.bf16 %v790_v34  ;;  %v1115_v41 = vunpack.c.l.bf16 %v797_v39  ;;  %v1116_v48 = vunpack.c.h.bf16 %v797_v39  ;;  %v215_v17 = vunpack.c.l.bf16 %v889_v57 }
  0x27   : > { %v231_v37 = vadd.f32 %v230_v43, %v1113_v50  ;;  %v216_v61 = vunpack.c.h.bf16 %v889_v57  ;;  %v217_v60 = vunpack.c.l.bf16 %v892_v30  ;;  %v218_v4 = vunpack.c.h.bf16 %v892_v30 }
  0x28   : > { %v254_v38 = vadd.f32 %v253_v44, %v1114_v51  ;;  %v277_v42 = vadd.f32 %v276_v47, %v1115_v41  ;;  %v300_v18 = vadd.f32 %v299_v19, %v1116_v48  ;;  %v1118_v43 = vunpack.c.l.bf16 %v800_v40 }
  0x29   : > { %v1119_v44 = vunpack.c.h.bf16 %v800_v40  ;;  %v1120_v47 = vunpack.c.l.bf16 %v807_v45  ;;  %v1121_v19 = vunpack.c.h.bf16 %v807_v45  ;;  %v219_v57 = vunpack.c.l.bf16 %v907_v26 }
  0x2a   : > { %v232_v50 = vadd.f32 %v231_v37, %v1118_v43  ;;  %v220_v12 = vunpack.c.h.bf16 %v907_v26  ;;  %v221_v30 = vunpack.c.l.bf16 %v910_v49  ;;  %v222_v59 = vunpack.c.h.bf16 %v910_v49 }
  0x2b   : > { %v255_v51 = vadd.f32 %v254_v38, %v1119_v44  ;;  %v278_v41 = vadd.f32 %v277_v42, %v1120_v47  ;;  %v301_v48 = vadd.f32 %v300_v18, %v1121_v19  ;;  %v1122_v58 = vunpack.c.l.bf16 %v810_v46 }
  0x2c   : > { %v1123_v43 = vunpack.c.h.bf16 %v810_v46  ;;  %v1124_v44 = vunpack.c.l.bf16 %v821_v55  ;;  %v1125_v47 = vunpack.c.h.bf16 %v821_v55  ;;  %v223_v19 = vunpack.c.l.bf16 %v925_v13 }
  0x2d   : > { %v233_v37 = vadd.f32 %v232_v50, %v1122_v58  ;;  %v224_v26 = vunpack.c.h.bf16 %v925_v13  ;;  %v1126_v24 = vunpack.c.l.bf16 %v824_v56  ;;  %v1127_v49 = vunpack.c.h.bf16 %v824_v56 }
  0x2e   : > { %v256_v38 = vadd.f32 %v255_v51, %v1123_v43  ;;  %v279_v42 = vadd.f32 %v278_v41, %v1124_v44  ;;  %v302_v18 = vadd.f32 %v301_v48, %v1125_v47  ;;  %v1128_v58 = vunpack.c.l.bf16 %v835_v1 }
  0x2f   : > { %v234_v23 = vadd.f32 %v233_v37, %v1126_v24  ;;  %v1129_v51 = vunpack.c.h.bf16 %v835_v1  ;;  %v1130_v41 = vunpack.c.l.bf16 %v838_v3  ;;  %v1131_v48 = vunpack.c.h.bf16 %v838_v3 }
  0x30   : > { %v257_v45 = vadd.f32 %v256_v38, %v1127_v49  ;;  %v280_v50 = vadd.f32 %v279_v42, %v1128_v58  ;;  %v1132_v13 = vunpack.c.l.bf16 %v845_v54  ;;  %v1133_v24 = vunpack.c.h.bf16 %v845_v54 }
  0x31   : > { %v303_v43 = vadd.f32 %v302_v18, %v1129_v51  ;;  %v235_v44 = vadd.f32 %v234_v23, %v1130_v41  ;;  %v1134_v49 = vunpack.c.l.bf16 %v848_v0  ;;  %v1135_v42 = vunpack.c.h.bf16 %v848_v0 }
  0x32   : > { %v258_v47 = vadd.f32 %v257_v45, %v1131_v48  ;;  %v281_v55 = vadd.f32 %v280_v50, %v1132_v13  ;;  %629 = vmac.bf16.f32.vacc0 %v743_v9, %v743_v9  ;;  %663 = vmac.bf16.f32.vacc1 %v746_v10, %v746_v10 }
  0x33   : > { %v304_v37 = vadd.f32 %v303_v43, %v1133_v24  ;;  %v236_v38 = vadd.f32 %v235_v44, %v1134_v49  ;;  %630 = vmac.bf16.f32.vacc0 %v749_v11, %v749_v11  ;;  %664 = vmac.bf16.f32.vacc1 %v757_v15, %v757_v15 }
  0x34   : > { %v259_v58 = vadd.f32 %v258_v47, %v1135_v42  ;;  %v282_v1 = vadd.f32 %v281_v55, %v203_v35  ;;  %631 = vmac.bf16.f32.vacc0 %v760_v16, %v760_v16  ;;  %665 = vmac.bf16.f32.vacc1 %v767_v21, %v767_v21  ;;  %v1153_v42 = vld [vmem:[#allocation17_spill] sm:$0xff] }
  0x35   : > { %v305_v18 = vadd.f32 %v304_v37, %v204_v36  ;;  %v237_v51 = vadd.f32 %v236_v38, %v205_v52  ;;  %632 = vmac.bf16.f32.vacc0 %v770_v22, %v770_v22  ;;  %666 = vmac.bf16.f32.vacc1 %v777_v27, %v777_v27  ;;  %v1139_v27 = vld [vmem:[#allocation3_spill] sm:$0xff]  ;;  %v1152_v38 = vld [vmem:[#allocation16_spill] sm:$0xff] }
  0x36   : > { %v260_v56 = vadd.f32 %v259_v58, %v206_v53  ;;  %v283_v23 = vadd.f32 %v282_v1, %v207_v62  ;;  %633 = vmac.bf16.f32.vacc0 %v780_v28, %v780_v28  ;;  %667 = vmac.bf16.f32.vacc1 %v787_v33, %v787_v33  ;;  %v1140_v28 = vld [vmem:[#allocation4_spill] sm:$0xff]  ;;  %v1151_v37 = vld [vmem:[#allocation15_spill] sm:$0xff]  ;;  %v1154_v58 = vld [vmem:[#allocation18_spill] sm:$0xff] }
  0x37   : > { %v306_v41 = vadd.f32 %v305_v18, %v208_v63  ;;  %v238_v3 = vadd.f32 %v237_v51, %v209_v2  ;;  %634 = vmac.bf16.f32.vacc0 %v790_v34, %v790_v34  ;;  %668 = vmac.bf16.f32.vacc1 %v797_v39, %v797_v39  ;;  %v1142_v34 = vld [vmem:[#allocation6_spill] sm:$0xff]  ;;  %v1143_v39 = vld [vmem:[#allocation7_spill] sm:$0xff]  ;;  %v1156_v51 = vld [vmem:[#allocation20_spill] sm:$0xff] }
  0x38   : > { %v261_v45 = vadd.f32 %v260_v56, %v210_v25  ;;  %v284_v48 = vadd.f32 %v283_v23, %v211_v20  ;;  %635 = vmac.bf16.f32.vacc0 %v1139_v27, %v1139_v27  ;;  %669 = vmac.bf16.f32.vacc1 %v1140_v28, %v1140_v28  ;;  %v1146_v25 = vld [vmem:[#allocation10_spill] sm:$0xff]  ;;  %v1147_v20 = vld [vmem:[#allocation11_spill] sm:$0xff]  ;;  %v1157_v23 = vld [vmem:[#allocation21_spill] sm:$0xff] }
  0x39   : > { %v307_v46 = vadd.f32 %v306_v41, %v212_v31  ;;  %v239_v13 = vadd.f32 %v238_v3, %v213_v32  ;;  %670 = vmac.bf16.f32.vacc1 %v1142_v34, %v1142_v34  ;;  %v1148_v31 = vld [vmem:[#allocation12_spill] sm:$0xff]  ;;  %v1149_v32 = vld [vmem:[#allocation13_spill] sm:$0xff]  ;;  %v1155_v18 = vld [vmem:[#allocation19_spill] sm:$0xff] }
  0x3a   : > { %v262_v50 = vadd.f32 %v261_v45, %v214_v29  ;;  %v285_v54 = vadd.f32 %v284_v48, %v215_v17  ;;  %v1136_v17 = vlaneseq }
  0x3b   : > { %v308_v43 = vadd.f32 %v307_v46, %v216_v61  ;;  %v240_v24 = vadd.f32 %v239_v13, %v217_v60 }
  0x3c   : > { %v263_v40 = vadd.f32 %v262_v50, %v218_v4  ;;  %v286_v44 = vadd.f32 %v285_v54, %v219_v57  ;;  %vm986_vm0 = vcmp.lt.s32.totalorder %v1136_v17, 512  ;;  %v1141_v57 = vld [vmem:[#allocation5_spill] sm:$0xff]  ;;  %v700_v50 = vmov 1935823168  }
  0x3d   : > { %v309_v49 = vadd.f32 %v308_v43, %v220_v12  ;;  %v241_v0 = vadd.f32 %v240_v24, %v221_v30  ;;  %636 = vmac.bf16.f32.vacc0 %v1141_v57, %v1141_v57  ;;  %v1145_v12 = vld [vmem:[#allocation9_spill] sm:$0xff]  ;;  %v649_v43 = vunpack.c.l.s4 %v700_v50 }
  0x3e   : > { %v264_v47 = vadd.f32 %v263_v40, %v222_v59  ;;  %v287_v55 = vadd.f32 %v286_v44, %v223_v19  ;;  %637 = vmac.bf16.f32.vacc0 %v1143_v39, %v1143_v39  ;;  %v1144_v59 = vld [vmem:[#allocation8_spill] sm:$0xff]  ;;  %v1150_v19 = vld [vmem:[#allocation14_spill] sm:$0xff] }
  0x3f   : > { %v310_v35 = vadd.f32 %v309_v49, %v224_v26  ;;  %v242_v36 = vrot.slane %v241_v0, 4  ;;  %671 = vmac.bf16.f32.vacc1 %v1144_v59, %v1144_v59  ;;  %638 = vmac.bf16.f32.vacc0 %v1145_v12, %v1145_v12  ;;  %v1158_v44 = vld [vmem:[#allocation2_spill] sm:$0xff] }
  0x40   : > { %v265_v52 = vrot.slane %v264_v47, 4  ;;  %v288_v1 = vrot.slane %v287_v55, 4  ;;  %672 = vmac.bf16.f32.vacc1 %v1146_v25, %v1146_v25  ;;  %639 = vmac.bf16.f32.vacc0 %v1147_v20, %v1147_v20 }
  0x41   : > { %v311_v53 = vrot.slane %v310_v35, 4  ;;  %v243_v62 = vadd.f32 %v242_v36, %v241_v0  ;;  %673 = vmac.bf16.f32.vacc1 %v1148_v31, %v1148_v31  ;;  %640 = vmac.bf16.f32.vacc0 %v1149_v32, %v1149_v32 }
  0x42   : > { %v266_v56 = vadd.f32 %v265_v52, %v264_v47  ;;  %v289_v63 = vadd.f32 %v288_v1, %v287_v55  ;;  %674 = vmac.bf16.f32.vacc1 %v1150_v19, %v1150_v19  ;;  %641 = vmac.bf16.f32.vacc0 %v1151_v37, %v1151_v37 }
  0x43   : > { %v312_v2 = vadd.f32 %v311_v53, %v310_v35  ;;  %v244_v4 = vrot.slane %v243_v62, 2  ;;  %675 = vmac.bf16.f32.vacc1 %v1152_v38, %v1152_v38  ;;  %642 = vmac.bf16.f32.vacc0 %v1153_v42, %v1153_v42  ;;  %v1159_v35 = vld [vmem:[#allocation22_spill] sm:$0xff] }
  0x44   : > { %v267_v40 = vrot.slane %v266_v56, 2  ;;  %v290_v46 = vrot.slane %v289_v63, 2  ;;  %676 = vmac.bf16.f32.vacc1 %v1154_v58, %v1154_v58  ;;  %643 = vmac.bf16.f32.vacc0 %v1155_v18, %v1155_v18 }
  0x45   : > { %v313_v54 = vrot.slane %v312_v2, 2  ;;  %v245_v5 = vadd.f32 %v244_v4, %v243_v62  ;;  %677 = vmac.bf16.f32.vacc1 %v1156_v51, %v1156_v51  ;;  %644 = vmac.bf16.f32.vacc0 %v1157_v23, %v1157_v23 }
  0x46   : > { %v268_v60 = vadd.f32 %v267_v40, %v266_v56  ;;  %v291_v61 = vadd.f32 %v290_v46, %v289_v63  ;;  %v650_v24 = vunpack.c.0.s8 %v649_v43  ;;  %678 = vmac.bf16.f32.vacc1 %v1159_v35, %v1159_v35 }
  0x47   : > { %v314_v7 = vadd.f32 %v313_v54, %v312_v2  ;;  %v246_v6 = vrot.slane %v245_v5, 1  ;;  %v645_v41 = vmovacc.add.low.vacc0 }
  0x48   : > { %v269_v8 = vrot.slane %v268_v60, 1  ;;  %v292_v0 = vrot.slane %v291_v61, 1  ;;  %v646_v45 = vmovacc.add.high.vacc0  ;;  %v653_v49 = vsub.s32 %v650_v24, %v1158_v44 }
  0x49   : > { %v315_v3 = vrot.slane %v314_v7, 1  ;;  %v247_v10 = vadd.f32 %v246_v6, %v245_v5  ;;  %v679_v36 = vmovacc.add.low.vacc1 }
  0x4a   : > { %v270_v11 = vadd.f32 %v269_v8, %v268_v60  ;;  %v293_v26 = vadd.f32 %v292_v0, %v291_v61  ;;  %v647_v48 = vcombine.low %v645_v41, %v646_v45  ;;  %v648_v13 = vcombine.high %v645_v41, %v646_v45 }
  0x4b   : > { %v316_v15 = vadd.f32 %v315_v3, %v314_v7  ;;  %v680_v52 = vmovacc.add.high.vacc1 }
  0x4c   : > { %v321_v29 = vcombine.low %v247_v10, %v270_v11  ;;  %v654_v47 = vrot.slane %v647_v48, %v653_v49  ;;  %v660_v55 = vrot.slane %v648_v13, %v653_v49 }
  0x4d   : > { %v322_v30 = vcombine.low %v293_v26, %v316_v15  ;;  %v681_v1 = vcombine.low %v679_v36, %v680_v52  ;;  %v682_v53 = vcombine.high %v679_v36, %v680_v52 }
  0x4e   : > { %v329_v16 = vrot.slane %v321_v29, %v754_v14  ;;  %v440_v63 = vrot.slane %v654_v47, 4  ;;  %v463_v2 = vrot.slane %v660_v55, 4 }
  0x4f   : > { %v336_v21 = vrot.slane %v322_v30, %v754_v14  ;;  %v688_v62 = vrot.slane %v681_v1, %v653_v49  ;;  %v694_v56 = vrot.slane %v682_v53, %v653_v49 }
  0x50   : > { %v441_v46 = vadd.f32 %v654_v47, %v440_v63  ;;  %v464_v54 = vadd.f32 %v660_v55, %v463_v2 }
  0x51   : > { %v337_v22 = vcombine.low %v329_v16, %v336_v21  ;;  %v486_v4 = vrot.slane %v688_v62, 4  ;;  %v509_v40 = vrot.slane %v694_v56, 4 }
  0x52   : > { %v442_v61 = vrot.slane %v441_v46, 2  ;;  %v465_v7 = vrot.slane %v464_v54, 2 }
  0x53   : > { %v344_v33 = vrot.slane %v337_v22, %v754_v14  ;;  %v487_v5 = vadd.f32 %v688_v62, %v486_v4  ;;  %v510_v60 = vadd.f32 %v694_v56, %v509_v40 }
  0x54   : > { %v443_v0 = vadd.f32 %v442_v61, %v441_v46  ;;  %v466_v3 = vadd.f32 %v465_v7, %v464_v54 }
  0x55   : > { %350 = vst.msk [vmem:[%s1012_s15] ss:$2 sm:$0xf] %vm986_vm0, %v344_v33  ;;  %v488_v6 = vrot.slane %v487_v5, 2  ;;  %v511_v8 = vrot.slane %v510_v60, 2 }
  0x56   : > { %v444_v11 = vrot.slane %v443_v0, 1  ;;  %v467_v26 = vrot.slane %v466_v3, 1 }
  0x57   : > { %v489_v17 = vadd.f32 %v488_v6, %v487_v5  ;;  %v512_v10 = vadd.f32 %v511_v8, %v510_v60 }
  0x58   : > { %v445_v30 = vadd.f32 %v444_v11, %v443_v0  ;;  %v468_v16 = vadd.f32 %v467_v26, %v466_v3 }
  0x59   : > { %v490_v15 = vrot.slane %v489_v17, 1  ;;  %v513_v29 = vrot.slane %v512_v10, 1 }
  0x5a   : > { %v519_v27 = vcombine.low %v445_v30, %v468_v16 }
  0x5b   : > { %v491_v21 = vadd.f32 %v490_v15, %v489_v17  ;;  %v514_v22 = vadd.f32 %v513_v29, %v512_v10 }
  0x5c   : > { %v527_v33 = vrot.slane %v519_v27, %v754_v14 }
  0x5d   : > { %v520_v28 = vcombine.low %v491_v21, %v514_v22 }
  0x5f   : > { %v534_v57 = vrot.slane %v520_v28, %v754_v14 }
  0x61   : > { %v535_v34 = vcombine.low %v527_v33, %v534_v57 }
  0x63   : > { %v542_v39 = vrot.slane %v535_v34, %v754_v14 }
  0x65   : > { %609 = vst.msk [vmem:[%s1012_s15 + $0x1] ss:$2 sm:$0xf] %vm986_vm0, %v542_v39 }
  0x66 PF: > { %s11_s6 = sadd.s32 1, %s697_s6  }
  0x67   : > { %p8_p4 = scmp.ge.s32.totalorder %s11_s6, 4  }
  0x69   :  { %10 = sbr.rel (!%p8_p4) target bundleno = 1 (0x1), region = 55 }

// kernel: _lambda_.4
= control target key start
LH: loop header
LB: loop body
LE: loop exit
PB: predicated region body
PF: predicated region fallthrough
CT: control target
= control target key end

     0   :  { %s3068_s24 = smov 0   ;;  %s3597_s0 = inlined_call_operand.vmem [shape: bf16[2,9,16,512], index: 0, kind: input, shape index: {}]   ;;  %s3598_s1 = inlined_call_operand.vmem [shape: bf16[6,256,128], index: 1, kind: input, shape index: {}]   ;;  %s3599_s2 = inlined_call_operand.vmem [shape: bf16[128,128], index: 2, kind: input, shape index: {}]   ;;  %s3600_s3 = inlined_call_operand.vmem [shape: f32[1,128], index: 3, kind: input, shape index: {}]   ;;  %s3601_s4 = inlined_call_operand.vmem [shape: f32[1,128], index: 4, kind: input, shape index: {}]   ;;  %s3602_s5 = inlined_call_operand.vmem [shape: bf16[2,8,8,128], index: 5, kind: output, shape index: {0}]   ;;  %s3603_s6 = inlined_call_operand.vmem [shape: bf16[2,8,8,128], index: 6, kind: output, shape index: {1}]   ;;  %s3604_s7 = inlined_call_operand.vmem [shape: f32[2,2,128], index: 7, kind: output, shape index: {2}]  }
   0x1 LB: > { %s2288_s25 = sadd.s32 4294967295, %s3026_s24   ;;  %p2292_p0 = scmp.ge.s32.totalorder %s3026_s24, 1  ;;  %s3026_s24 = sphi %s3068_s24, %s18_s24  }
   0x2   : > { %p242_p1 = scmp.lt.s32.totalorder %s3026_s24, 3 }
   0x4   : > { %p243_p2 = pnand %p2292_p0, %p242_p1 }
   0x5   : > { %v2940_v0 = vld [vmem:[%s3599_s2] sm:$0xff] (!%p243_p2)   ;;  %p283_p3 = scmp.lt.s32.totalorder (!%p243_p2), %s2288_s25, 1  ;;  %v2942_v2 = vld [vmem:[%s3599_s2 + $0x8] sm:$0xff] (!%p243_p2)   ;;  %v2944_v4 = vld [vmem:[%s3599_s2 + $0x10] sm:$0xff] (!%p243_p2)   ;;  %vm590_vm0 = vsmask.f32 (!%p243_p2), 3328 }
   0x6   : > { %246 = sbr.rel (%p243_p2) target bundleno = 383 (0x17f), region = 40  ;;  %v2941_v1 = vld [vmem:[%s3598_s1 + $0x80] sm:$0xff] (!%p243_p2)   ;;  %2779 = vmatprep.subr.bf16.mxu0 (!%p243_p2), %v2940_v0  ;;  %v2943_v3 = vld [vmem:[%s3598_s1 + $0x88] sm:$0xff] (!%p243_p2)   ;;  %v2945_v5 = vld [vmem:[%s3598_s1 + $0x90] sm:$0xff] (!%p243_p2)   ;;  %vm591_vm1 = vsmask.f32 (!%p243_p2), 7440 }
   0x7   : > { %2803 = vmatprep.subr.bf16.mxu1 (!%p243_p2), %v2941_v1  ;;  %2780 = vmatpush3.bf16.msra.mxu0 (!%p243_p2), %v2940_v0  ;;  %v2946_v6 = vld [vmem:[%s3599_s2 + $0x18] sm:$0xff] (!%p243_p2)   ;;  %v2948_v8 = vld [vmem:[%s3599_s2 + $0x20] sm:$0xff] (!%p243_p2)   ;;  %v2950_v10 = vld [vmem:[%s3599_s2 + $0x28] sm:$0xff] (!%p243_p2)  }
   0x8   : > { %2804 = vmatpush3.bf16.msra.mxu1 (!%p243_p2), %v2941_v1  ;;  %2781 = vmatprep.subr.bf16.mxu0 (!%p243_p2), %v2942_v2  ;;  %v2947_v7 = vld [vmem:[%s3598_s1 + $0x98] sm:$0xff] (!%p243_p2)   ;;  %v2949_v9 = vld [vmem:[%s3598_s1 + $0xa0] sm:$0xff] (!%p243_p2)   ;;  %v2951_v11 = vld [vmem:[%s3598_s1 + $0xa8] sm:$0xff] (!%p243_p2)  }
   0x9   : > { %2805 = vmatprep.subr.bf16.mxu1 (!%p243_p2), %v2943_v3  ;;  %v3125_v14 = vld [vmem:[%s3600_s3] ss:$0 sm:$0xff] (!%p243_p2)  ;;  %v2952_v25 = vld [vmem:[%s3599_s2 + $0x30] sm:$0xff] (!%p243_p2)   ;;  %v2954_v47 = vld [vmem:[%s3599_s2 + $0x38] sm:$0xff] (!%p243_p2)  }
   0xa   : > { %v3130_v15 = vld [vmem:[%s3601_s4] ss:$0 sm:$0xff] (!%p243_p2)  ;;  %v2953_v26 = vld [vmem:[%s3598_s1 + $0xb0] sm:$0xff] (!%p243_p2)   ;;  %v2955_v53 = vld [vmem:[%s3598_s1 + $0xb8] sm:$0xff] (!%p243_p2)  }
   0xb   : > { %2782 = vmatpush3.bf16.msra.mxu0 (!%p243_p2), %v2942_v2  ;;  %v2956_v62 = vld [vmem:[%s3598_s1 + $0x40] sm:$0xff] (!%p243_p2)   ;;  %vm3167_vm2 = vmor (!%p243_p2), %vm590_vm0, %vm591_vm1 }
   0xc   : > { %2806 = vmatpush3.bf16.msra.mxu1 (!%p243_p2), %v2943_v3  ;;  %2783 = vmatprep.subr.bf16.mxu0 (!%p243_p2), %v2944_v4  ;;  %v2957_v2 = vld [vmem:[%s3598_s1 + $0x140] sm:$0xff] (!%p243_p2)  }
   0xd   : > { %s3608_s25 = smov (!%p283_p3, %s2288_s25), 1  ;;  %2807 = vmatprep.subr.bf16.mxu1 %v2945_v5 }
   0xe   : > { %s2931_s19 = smul.u32 288, %s3608_s25  ;;  %s2298_s16 = sshll.u32 %s3608_s25, 1 }
   0xf   : > { %2784 = vmatpush3.bf16.msra.mxu0 %v2944_v4 }
  0x10   : > { %2808 = vmatpush3.bf16.msra.mxu1 %v2945_v5  ;;  %2785 = vmatprep.subr.bf16.mxu0 %v2946_v6  ;;  %s3112_s28 = scalar_lea.vmem %s3597_s0, %s2931_s19  ;;  %s301_s19 = scalar_lea.vmem %s3604_s7, %s2298_s16 }
  0x11   : > { %2809 = vmatprep.subr.bf16.mxu1 %v2947_v7  ;;  %v303_v12 = vld [vmem:[%s3112_s28 + $0xc] sm:$0xf]  ;;  %v574_v22 = vld [vmem:[%s3112_s28] sm:$0xf]  ;;  %v575_v23 = vld [vmem:[%s3112_s28 + $0x10] sm:$0x1] }
  0x12   : > { %v304_v13 = vld [vmem:[%s3112_s28 + $0x2c] sm:$0xf]  ;;  %v313_v16 = vunpack.c.l.bf16 %v303_v12  ;;  %v576_v24 = vld [vmem:[%s3112_s28 + $0x20] sm:$0xf]  ;;  %v594_v31 = vshrl.u32 %v574_v22, 16  ;;  %v597_v32 = vshll.u32 %v574_v22, 16 }
  0x13   : > { %2786 = vmatpush3.bf16.msra.mxu0 %v2946_v6  ;;  %v314_v17 = vunpack.c.l.bf16 %v304_v13  ;;  %v305_v18 = vld [vmem:[%s3112_s28 + $0x4c] sm:$0xf]  ;;  %v577_v35 = vld [vmem:[%s3112_s28 + $0x30] sm:$0x1]  ;;  %v603_v36 = vshll.u32 %v575_v23, 16  ;;  %v608_v37 = vshrl.u32 %v576_v24, 16 }
  0x14   : > { %2810 = vmatpush3.bf16.msra.mxu1 %v2947_v7  ;;  %2787 = vmatprep.subr.bf16.mxu0 %v2948_v8  ;;  %v306_v19 = vld [vmem:[%s3112_s28 + $0x6c] sm:$0xf]  ;;  %v315_v20 = vunpack.c.l.bf16 %v305_v18  ;;  %v327_v27 = vmul.f32 %v3125_v14, %v313_v16  ;;  %v596_v40 = vrot.slane %v594_v31, 4  ;;  %v599_v41 = vrot.slane %v597_v32, 5  ;;  %v578_v42 = vld [vmem:[%s3112_s28 + $0x40] sm:$0xf] }
  0x15   : > { %2811 = vmatprep.subr.bf16.mxu1 %v2949_v9  ;;  %v316_v21 = vunpack.c.l.bf16 %v306_v19  ;;  %v328_v28 = vmul.f32 %v3125_v14, %v314_v17  ;;  %v605_v45 = vrot.slane %v603_v36, 5  ;;  %v579_v46 = vld [vmem:[%s3112_s28 + $0x50] sm:$0x1]  ;;  %v610_v50 = vrot.slane %v608_v37, 4  ;;  %v580_v52 = vld [vmem:[%s3112_s28 + $0x60] sm:$0xf] }
  0x16   : > { %v329_v29 = vmul.f32 %v3125_v14, %v315_v20  ;;  %v341_v33 = vadd.f32 %v3130_v15, %v327_v27  ;;  %v600_v49 = vor.u32 %v599_v41, %v596_v40  ;;  %v611_v51 = vshll.u32 %v576_v24, 16  ;;  %v581_v56 = vld [vmem:[%s3112_s28 + $0x70] sm:$0x1]  ;;  %v2958_v20 = vld [vmem:[%s3598_s1] sm:$0xff]   ;;  %v2961_v32 = vld [vmem:[%s3598_s1 + $0x148] sm:$0xff]  }
  0x17   : > { %2788 = vmatpush3.bf16.msra.mxu0 %v2948_v8  ;;  %v330_v30 = vmul.f32 %v3125_v14, %v316_v21  ;;  %v342_v34 = vadd.f32 %v3130_v15, %v328_v28  ;;  %v617_v55 = vshll.u32 %v577_v35, 16  ;;  %v622_v57 = vshrl.u32 %v578_v42, 16  ;;  %v2960_v21 = vld [vmem:[%s3598_s1 + $0x48] sm:$0xff]   ;;  %v2959_v27 = vld [vmem:[%s3598_s1 + $0x100] sm:$0xff]   ;;  %v2968_v35 = vld [vmem:[%s3598_s1 + $0x58] sm:$0xff]  }
  0x18   : > { %2812 = vmatpush3.bf16.msra.mxu1 %v2949_v9  ;;  %2789 = vmatprep.subr.bf16.mxu0 %v2950_v10  ;;  %v343_v38 = vadd.f32 %v3130_v15, %v329_v29  ;;  %v349_v43 = vmax.f32 %v341_v33, 0.0  ;;  %v625_v58 = vshll.u32 %v578_v42, 16  ;;  %v601_v60 = vrot.slane %v600_v49, 4  ;;  %v2962_v28 = vld [vmem:[%s3598_s1 + $0x8] sm:$0xff]   ;;  %v2965_v36 = vld [vmem:[%s3598_s1 + $0x150] sm:$0xff]   ;;  %v2969_v40 = vld [vmem:[%s3598_s1 + $0x158] sm:$0xff]  }
  0x19   : > { %2813 = vmatprep.subr.bf16.mxu1 %v2951_v11  ;;  %v344_v39 = vadd.f32 %v3130_v15, %v330_v30  ;;  %v350_v44 = vmax.f32 %v342_v34, 0.0  ;;  %v613_v61 = vrot.slane %v611_v51, 5  ;;  %v631_v63 = vshll.u32 %v579_v46, 16  ;;  %v2964_v30 = vld [vmem:[%s3598_s1 + $0x50] sm:$0xff]   ;;  %v2963_v33 = vld [vmem:[%s3598_s1 + $0x108] sm:$0xff]   ;;  %v2971_v41 = vld [vmem:[%s3598_s1 + $0x118] sm:$0xff]  }
  0x1a   : > { %v351_v48 = vmax.f32 %v343_v38, 0.0  ;;  %v619_v1 = vrot.slane %v617_v55, 5  ;;  %v624_v3 = vrot.slane %v622_v57, 4  ;;  %v627_v4 = vrot.slane %v625_v58, 5  ;;  %v2966_v34 = vld [vmem:[%s3598_s1 + $0x10] sm:$0xff]   ;;  %v2970_v38 = vld [vmem:[%s3598_s1 + $0x18] sm:$0xff]  }
  0x1b   : > { %2790 = vmatpush3.bf16.msra.mxu0 %v2950_v10  ;;  %v2561_v54 = vpack.c.bf16 %v350_v44, %v349_v43  ;;  %v352_v59 = vmax.f32 %v344_v39, 0.0  ;;  %v636_v5 = vshrl.u32 %v580_v52, 16  ;;  %v614_v6 = vor.u32 %v613_v61, %v610_v50  ;;  %v2967_v37 = vld [vmem:[%s3598_s1 + $0x110] sm:$0xff]   ;;  %v2972_v39 = vld [vmem:[%s3598_s1 + $0x60] sm:$0xff]   ;;  %v307_v43 = vld [vmem:[%s3112_s28 + $0x8c] sm:$0xf] }
  0x1c   : > { %2814 = vmatpush3.bf16.msra.mxu1 %v2951_v11  ;;  %2791 = vmatprep.subr.bf16.mxu0 %v2952_v25  ;;  %v633_v7 = vrot.slane %v631_v63, 5  ;;  %v639_v8 = vshll.u32 %v580_v52, 16  ;;  %v628_v9 = vor.u32 %v627_v4, %v624_v3  ;;  %v645_v11 = vshll.u32 %v581_v56, 16  ;;  %v2974_v42 = vld [vmem:[%s3598_s1 + $0x20] sm:$0xff]   ;;  %v308_v44 = vld [vmem:[%s3112_s28 + $0xac] sm:$0xf] }
  0x1d   : > { %2815 = vmatprep.subr.bf16.mxu1 %v2953_v26  ;;  %2795 = vmatprep.mubr.bf16.mxu0 %v2561_v54  ;;  %v638_v10 = vrot.slane %v636_v5, 4  ;;  %v2562_v12 = vpack.c.bf16 %v352_v59, %v351_v48  ;;  %v606_v13 = vsel %vm3167_vm2, %v601_v60, %v605_v45  ;;  %v615_v16 = vrot.slane %v614_v6, 4  ;;  %v2976_v45 = vld [vmem:[%s3598_s1 + $0x68] sm:$0xff]   ;;  %v2973_v48 = vld [vmem:[%s3598_s1 + $0x160] sm:$0xff]   ;;  %v583_v57 = vld [vmem:[%s3112_s28 + $0x90] sm:$0x1] }
  0x1e   : > { %v641_v17 = vrot.slane %v639_v8, 5  ;;  %v629_v18 = vrot.slane %v628_v9, 4  ;;  %v647_v19 = vrot.slane %v645_v11, 5  ;;  %v317_v46 = vunpack.c.l.bf16 %v307_v43  ;;  %v309_v51 = vld [vmem:[%s3112_s28 + $0xcc] sm:$0xf]  ;;  %v2975_v59 = vld [vmem:[%s3598_s1 + $0x120] sm:$0xff]  }
  0x1f   : > { %2792 = vmatpush3.bf16.msra.mxu0 %v2952_v25  ;;  %v620_v22 = vsel %vm3167_vm2, %v615_v16, %v619_v1  ;;  %v310_v52 = vld [vmem:[%s3112_s28 + $0xec] sm:$0xf]  ;;  %v319_v55 = vunpack.c.l.bf16 %v309_v51  ;;  %v584_v58 = vld [vmem:[%s3112_s28 + $0xa0] sm:$0xf]  ;;  %v585_v63 = vld [vmem:[%s3112_s28 + $0xb0] sm:$0x1] }
  0x20   : > { %2816 = vmatpush3.bf16.msra.mxu1 %v2953_v26  ;;  %2793 = vmatprep.subr.bf16.mxu0 %v2954_v47  ;;  %v642_v23 = vor.u32 %v641_v17, %v638_v10  ;;  %v2329_v24 = vcombine.low %v606_v13, %v620_v22  ;;  %v634_v25 = vsel %vm3167_vm2, %v629_v18, %v633_v7  ;;  %v2978_v54 = vld [vmem:[%s3598_s1 + $0x28] sm:$0xff]   ;;  %v320_v56 = vunpack.c.l.bf16 %v310_v52  ;;  %v586_v7 = vld [vmem:[%s3112_s28 + $0xc0] sm:$0xf]  ;;  %v587_v8 = vld [vmem:[%s3112_s28 + $0xd0] sm:$0x1] }
  0x21   : > { %2817 = vmatprep.subr.bf16.mxu1 %v2955_v53  ;;  %v331_v49 = vmul.f32 %v3125_v14, %v317_v46  ;;  %v2977_v60 = vld [vmem:[%s3598_s1 + $0x168] sm:$0xff]   ;;  %v333_v3 = vmul.f32 %v3125_v14, %v319_v55  ;;  %v659_v5 = vshll.u32 %v583_v57, 16  ;;  %v664_v6 = vshrl.u32 %v584_v58, 16  ;;  %v588_v16 = vld [vmem:[%s3112_s28 + $0xe0] sm:$0xf]  ;;  %v2984_v43 = vld [vmem:[%s3598_s1 + $0x78] sm:$0xff]  }
  0x22   : > { %v643_v26 = vrot.slane %v642_v23, 4  ;;  %2819 = vmatprep.mubr.bf16.mxu1 %v2329_v24  ;;  %v334_v4 = vmul.f32 %v3125_v14, %v320_v56  ;;  %v2979_v11 = vld [vmem:[%s3598_s1 + $0x128] sm:$0xff]   ;;  %v667_v24 = vshll.u32 %v584_v58, 16  ;;  %v2985_v52 = vld [vmem:[%s3598_s1 + $0x178] sm:$0xff]   ;;  %v534_v58 = vld [vmem:[%s3112_s28] sm:$0xff] }
  0x23   : > { %2794 = vmatpush3.bf16.msra.mxu0 %v2954_v47  ;;  %v318_v47 = vunpack.c.l.bf16 %v308_v44  ;;  %v345_v61 = vadd.f32 %v3130_v15, %v331_v49  ;;  %v347_v17 = vadd.f32 %v3130_v15, %v333_v3  ;;  %v2987_v57 = vld [vmem:[%s3598_s1 + $0x138] sm:$0xff]   ;;  %v2988_v3 = vld [vmem:[%s3598_s1 + $0x180] sm:$0xff]  }
  0x24   : > { %2818 = vmatpush3.bf16.msra.mxu1 %v2955_v53  ;;  %2635 = vmatprep.subr.bf16.mxu0 %v2956_v62  ;;  %v648_v29 = vsel %vm3167_vm2, %v643_v26, %v647_v19  ;;  %v582_v53 = vld [vmem:[%s3112_s28 + $0x80] sm:$0xf]  ;;  %v348_v18 = vadd.f32 %v3130_v15, %v334_v4  ;;  %v666_v19 = vrot.slane %v664_v6, 4  ;;  %v589_v26 = vld [vmem:[%s3112_s28 + $0xf0] sm:$0x1] }
  0x25   : > { %2675 = vmatprep.subr.bf16.mxu1 %v2957_v2  ;;  %v2330_v31 = vcombine.low %v634_v25, %v648_v29  ;;  %v332_v50 = vmul.f32 %v3125_v14, %v318_v47  ;;  %v650_v1 = vshrl.u32 %v582_v53, 16  ;;  %v653_v2 = vshll.u32 %v582_v53, 16  ;;  %v2986_v53 = vld [vmem:[%s3598_s1 + $0x38] sm:$0xff]   ;;  %v2989_v6 = vld [vmem:[%s3598_s1 + $0x240] sm:$0xff]  }
  0x26   : > { %2796 = vmatmul.mubr.bf16.vlgmr.msra.gmra.mrb[0].mxu0 %v2562_v12  ;;  %v353_v9 = vmax.f32 %v345_v61, 0.0  ;;  %v661_v14 = vrot.slane %v659_v5, 5  ;;  %v673_v25 = vshll.u32 %v585_v63, 16  ;;  %v681_v29 = vshll.u32 %v586_v7, 16 }
  0x27   : > { %2636 = vmatpush3.bf16.msra.mxu0 %v2958_v20  ;;  %2820 = vmatmul.mubr.bf16.vlgmr.msra.gmra.mrb[0].mxu1 %v2330_v31  ;;  %v346_v62 = vadd.f32 %v3130_v15, %v332_v50  ;;  %v652_v12 = vrot.slane %v650_v1, 4  ;;  %v655_v13 = vrot.slane %v653_v2, 5  ;;  %v2980_v20 = vld [vmem:[%s3598_s1 + $0x70] sm:$0xff]   ;;  %v678_v15 = vshrl.u32 %v586_v7, 16  ;;  %v1052_v1 = vld [vmem:[%s3112_s28 + $0x8] sm:$0xff] }
  0x28   : > { %2637 = vmatprep.subr.bf16.mxu0 %v2960_v21  ;;  %2676 = vmatpush3.bf16.msra.mxu1 %v2959_v27  ;;  %v2981_v21 = vld [vmem:[%s3598_s1 + $0x170] sm:$0xff]   ;;  %v355_v27 = vmax.f32 %v347_v17, 0.0  ;;  %v669_v31 = vrot.slane %v667_v24, 5  ;;  %v701_v46 = vshll.u32 %v589_v26, 16  ;;  %v1053_v2 = vld [vmem:[%s3112_s28 + $0x28] sm:$0xff]  ;;  %v3354_v26 = vld [vmem:[%s3112_s28 + $0x80] sm:$0xff] }
  0x29   : > { %2677 = vmatprep.subr.bf16.mxu1 %v2961_v32  ;;  %v354_v10 = vmax.f32 %v346_v62, 0.0  ;;  %v656_v23 = vor.u32 %v655_v13, %v652_v12  ;;  %v675_v32 = vrot.slane %v673_v25, 5  ;;  %v2398_v5 = vcombine.high %v1052_v1, %v1053_v2  ;;  %v3327_v12 = vld [vmem:[%s3112_s28 + $0x60] sm:$0xff]  ;;  %v1054_v13 = vld [vmem:[%s3112_s28 + $0x48] sm:$0xff]  ;;  %v2994_v24 = vld [vmem:[%s3598_s1 + $0x190] sm:$0xff]  }
  0x2a   : > { %v703_v51 = vrot.slane %v701_v46, 5  ;;  %v2999_v25 = vld [vmem:[%s3598_s1 + $0x218] sm:$0xff]  }
  0x2b   : > { %2638 = vmatpush3.bf16.msra.mxu0 %v2962_v28  ;;  %v2563_v22 = vpack.c.bf16 %v354_v10, %v353_v9  ;;  %v356_v28 = vmax.f32 %v348_v18, 0.0  ;;  %v2992_v9 = vld [vmem:[%s3598_s1 + $0x248] sm:$0xff]  }
  0x2c   : > { %2639 = vmatprep.subr.bf16.mxu0 %v2964_v30  ;;  %2678 = vmatpush3.bf16.msra.mxu1 %v2963_v33  ;;  %v657_v30 = vrot.slane %v656_v23, 4  ;;  %v687_v33 = vshll.u32 %v587_v8, 16  ;;  %v2990_v8 = vld [vmem:[%s3598_s1 + $0x200] sm:$0xff]   ;;  %v2993_v10 = vld [vmem:[%s3598_s1 + $0x208] sm:$0xff]   ;;  %v2998_v23 = vld [vmem:[%s3598_s1 + $0x258] sm:$0xff]  }
  0x2d   : > { %2679 = vmatprep.subr.bf16.mxu1 %v2965_v36  ;;  %2799 = vmatprep.mubr.bf16.mxu0 %v2563_v22  ;;  %v683_v36 = vrot.slane %v681_v29, 5  ;;  %v2991_v22 = vld [vmem:[%s3598_s1 + $0x188] sm:$0xff]  }
  0x2e   : > { %v662_v47 = vsel %vm3167_vm2, %v657_v30, %v661_v14  ;;  %v2397_v14 = vcombine.low %v1052_v1, %v1053_v2  ;;  %v1057_v29 = vld [vmem:[%s3112_s28 + $0xa8] sm:$0xff] }
  0x2f   : > { %2640 = vmatpush3.bf16.msra.mxu0 %v2966_v34  ;;  %v2564_v34 = vpack.c.bf16 %v356_v28, %v355_v27  ;;  %v3357_v27 = vld [vmem:[%s3112_s28 + $0xa0] sm:$0xff]  ;;  %v1056_v28 = vld [vmem:[%s3112_s28 + $0x88] sm:$0xff] }
  0x30   : > { %2641 = vmatprep.subr.bf16.mxu0 %v2968_v35  ;;  %2680 = vmatpush3.bf16.msra.mxu1 %v2967_v37  ;;  %v680_v35 = vrot.slane %v678_v15, 4  ;;  %v692_v37 = vshrl.u32 %v588_v16, 16  ;;  %v2346_v15 = vcombine.high %v3354_v26, %v3357_v27  ;;  %v2345_v30 = vcombine.low %v3354_v26, %v3357_v27  ;;  %v1306_v1 = vld [vmem:[%s3112_s28 + $0x48] sm:$0xf] }
  0x31   : > { %2681 = vmatprep.subr.bf16.mxu1 %v2969_v40  ;;  %v689_v40 = vrot.slane %v687_v33, 5  ;;  %2800 = vmatmul.mubr.bf16.gmra.mrb[4].mxu0 %v2564_v34  ;;  %v2402_v33 = vcombine.high %v1056_v28, %v1057_v29  ;;  %v3002_v34 = vld [vmem:[%s3598_s1 + $0x220] sm:$0xff]  }
  0x32   : > { %v684_v44 = vor.u32 %v683_v36, %v680_v35  ;;  %v2997_v35 = vld [vmem:[%s3598_s1 + $0x198] sm:$0xff]   ;;  %v3004_v36 = vld [vmem:[%s3598_s1 + $0x268] sm:$0xff]  }
  0x33   : > { %2642 = vmatpush3.bf16.msra.mxu0 %v2970_v38  ;;  %v2982_v38 = vld [vmem:[%s3598_s1 + $0x30] sm:$0xff]  }
  0x34   : > { %2643 = vmatprep.subr.bf16.mxu0 %v2972_v39  ;;  %2682 = vmatpush3.bf16.msra.mxu1 %v2971_v41  ;;  %v670_v39 = vor.u32 %v669_v31, %v666_v19  ;;  %v695_v41 = vshll.u32 %v588_v16, 16  ;;  %v685_v50 = vrot.slane %v684_v44, 4  ;;  %v1055_v16 = vld [vmem:[%s3112_s28 + $0x68] sm:$0xff]  ;;  %v2995_v19 = vld [vmem:[%s3598_s1 + $0x250] sm:$0xff]  }
  0x35   : > { %2683 = vmatprep.subr.bf16.mxu1 %v2973_v48  ;;  %v2399_v31 = vcombine.low %v1054_v13, %v1055_v16 }
  0x36   : > { %v671_v48 = vrot.slane %v670_v39, 4  ;;  %v697_v49 = vrot.slane %v695_v41, 5  ;;  %v3384_v39 = vld [vmem:[%s3112_s28 + $0xe0] sm:$0xff] }
  0x37   : > { %2644 = vmatpush3.bf16.msra.mxu0 %v2974_v42  ;;  %v2983_v42 = vld [vmem:[%s3598_s1 + $0x130] sm:$0xff]  }
  0x38   : > { %2645 = vmatprep.subr.bf16.mxu0 %v2976_v45  ;;  %2684 = vmatpush3.bf16.msra.mxu1 %v2975_v59  ;;  %v694_v45 = vrot.slane %v692_v37, 4  ;;  %v3298_v59 = vld [vmem:[%s3112_s28 + $0x20] sm:$0xff]  ;;  %v3005_v37 = vld [vmem:[%s3598_s1 + $0x228] sm:$0xff]  }
  0x39   : > { %2685 = vmatprep.subr.bf16.mxu1 %v2977_v60  ;;  %v690_v60 = vsel %vm3167_vm2, %v685_v50, %v689_v40  ;;  %v2341_v62 = vcombine.low %v534_v58, %v3298_v59  ;;  %v2342_v63 = vcombine.high %v534_v58, %v3298_v59  ;;  %v3000_v40 = vld [vmem:[%s3598_s1 + $0x1a0] sm:$0xff]  }
  0x3a   : > { %v698_v55 = vor.u32 %v697_v49, %v694_v45  ;;  %v3007_v45 = vld [vmem:[%s3598_s1 + $0x270] sm:$0xff]   ;;  %v3003_v49 = vld [vmem:[%s3598_s1 + $0x1a8] sm:$0xff]  }
  0x3b   : > { %2646 = vmatpush3.bf16.msra.mxu0 %v2978_v54  ;;  %v676_v54 = vsel %vm3167_vm2, %v671_v48, %v675_v32  ;;  %1019 = vmatprep.mubr.bf16.mxu0 %v2342_v63  ;;  %v3001_v32 = vld [vmem:[%s3598_s1 + $0x260] sm:$0xff]   ;;  %v3008_v48 = vld [vmem:[%s3598_s1 + $0x230] sm:$0xff]  }
  0x3c   : > { %2647 = vmatprep.subr.bf16.mxu0 %v2980_v20  ;;  %2686 = vmatpush3.bf16.msra.mxu1 %v2979_v11  ;;  %v2331_v56 = vcombine.low %v662_v47, %v676_v54  ;;  %v699_v61 = vrot.slane %v698_v55, 4  ;;  %v3324_v11 = vld [vmem:[%s3112_s28 + $0x40] sm:$0xff]  ;;  %v2400_v20 = vcombine.high %v1054_v13, %v1055_v16  ;;  %v2401_v47 = vcombine.low %v1056_v28, %v1057_v29  ;;  %v3006_v54 = vld [vmem:[%s3598_s1 + $0x1b0] sm:$0xff]   ;;  %v1303_v55 = vld [vmem:[%s3112_s28 + $0x18] sm:$0x1] }
  0x3d   : > { %2687 = vmatprep.subr.bf16.mxu1 %v2981_v21  ;;  %v2344_v17 = vcombine.high %v3324_v11, %v3327_v12  ;;  %v2343_v18 = vcombine.low %v3324_v11, %v3327_v12  ;;  %v2996_v21 = vld [vmem:[%s3598_s1 + $0x210] sm:$0xff]   ;;  %v2490_v46 = vcombine.high %v3298_v59, %v3324_v11  ;;  %v2489_v58 = vcombine.low %v3298_v59, %v3324_v11  ;;  %v1309_v11 = vld [vmem:[%s3112_s28 + $0x78] sm:$0x1]  ;;  %v3446_v29 = vld [vmem:[%s3598_s1 + $0x288] sm:$0xff]  }
  0x3e   : > { %2823 = vmatprep.mubr.bf16.mxu1 %v2331_v56  ;;  %v704_v4 = vsel %vm3167_vm2, %v699_v61, %v703_v51  ;;  %v3010_v51 = vld [vmem:[%s3598_s1 + $0x278] sm:$0xff]   ;;  %v1304_v56 = vld [vmem:[%s3112_s28 + $0x28] sm:$0xf]  ;;  %v2492_v59 = vcombine.high %v3327_v12, %v3354_v26 }
  0x3f   : > { %2648 = vmatpush3.bf16.msra.mxu0 %v2982_v38  ;;  %v2332_v7 = vcombine.low %v690_v60, %v704_v4  ;;  %v3381_v38 = vld [vmem:[%s3112_s28 + $0xc0] sm:$0xff]  ;;  %v1333_v63 = vshrl.u32 %v1304_v56, 16  ;;  %v3009_v13 = vld [vmem:[%s3598_s1 + $0x1b8] sm:$0xff]  }
  0x40   : > { %2649 = vmatprep.subr.bf16.mxu0 %v2984_v43  ;;  %2688 = vmatpush3.bf16.msra.mxu1 %v2983_v42  ;;  %v2348_v41 = vcombine.high %v3381_v38, %v3384_v39  ;;  %v3392_v42 = vld [vmem:[%s3112_s28 + $0xc8] sm:$0xff]  ;;  %v2347_v44 = vcombine.low %v3381_v38, %v3384_v39 }
  0x41   : > { %2689 = vmatprep.subr.bf16.mxu1 %v2985_v52  ;;  %2824 = vmatmul.mubr.bf16.gmra.mrb[4].mxu1 %v2332_v7  ;;  %v3395_v43 = vld [vmem:[%s3112_s28 + $0xe8] sm:$0xff]  ;;  %v3011_v52 = vld [vmem:[%s3598_s1 + $0x238] sm:$0xff]  }
  0x42   : > { %1261 = vmatprep.mubr.bf16.mxu1 %v2398_v5  ;;  %v2404_v50 = vcombine.high %v3392_v42, %v3395_v43  ;;  %v2403_v2 = vcombine.low %v3392_v42, %v3395_v43  ;;  %v1307_v5 = vld [vmem:[%s3112_s28 + $0x58] sm:$0x1]  ;;  %v3458_v43 = vld [vmem:[%s3598_s1 + $0x290] sm:$0xff]  }
  0x43   : > { %2650 = vmatpush3.bf16.msra.mxu0 %v2986_v53  ;;  %v1302_v53 = vld [vmem:[%s3112_s28 + $0x8] sm:$0xf] }
  0x44   : > { %2690 = vmatpush3.bf16.msra.mxu1 %v2987_v57  ;;  %2727 = vmatprep.subr.bf16.mxu0 %v2989_v6  ;;  %v1305_v57 = vld [vmem:[%s3112_s28 + $0x38] sm:$0x1]  ;;  %v1319_v60 = vshrl.u32 %v1302_v53, 16  ;;  %v1322_v61 = vshll.u32 %v1302_v53, 16  ;;  %v1308_v6 = vld [vmem:[%s3112_s28 + $0x68] sm:$0xf] }
  0x45   : > { %2827 = vmatprep.subr.bf16.mxu1 %v2988_v3  ;;  %v1342_v4 = vshll.u32 %v1305_v57, 16 }
  0x46   : > { %1020 = vmatmul.mubr.bf16.vlgmr.msra.gmra.mrb[8].mxu0 %v2341_v62  ;;  %v1328_v62 = vshll.u32 %v1303_v55, 16  ;;  %v1321_v7 = vrot.slane %v1319_v60, 4 }
  0x47   : > { %2728 = vmatpush3.bf16.msra.mxu0 %v2990_v8  ;;  %1027 = vmatprep.mubr.bf16.mxu0 %v2344_v17  ;;  %v1324_v8 = vrot.slane %v1322_v61, 5  ;;  %v1344_v17 = vrot.slane %v1342_v4, 5 }
  0x48   : > { %2729 = vmatprep.subr.bf16.mxu0 %v2992_v9  ;;  %v1330_v9 = vrot.slane %v1328_v62, 5 }
  0x49   : > { %1262 = vmatmul.mubr.bf16.vlgmr.msra.gmra.mrb[8].mxu1 %v2397_v14  ;;  %v1350_v14 = vshll.u32 %v1306_v1, 16 }
  0x4a   : > { %2828 = vmatpush3.bf16.msra.mxu1 %v2988_v3  ;;  %1269 = vmatprep.mubr.bf16.mxu1 %v2400_v20  ;;  %v1336_v3 = vshll.u32 %v1304_v56, 16  ;;  %v1356_v20 = vshll.u32 %v1307_v5, 16  ;;  %v1316_v5 = vld [vmem:[%s3112_s28 + $0xe8] sm:$0xf] }
  0x4b   : > { %2730 = vmatpush3.bf16.msra.mxu0 %v2993_v10  ;;  %2829 = vmatprep.subr.bf16.mxu1 %v2991_v22  ;;  %v1335_v10 = vrot.slane %v1333_v63, 4  ;;  %v1352_v28 = vrot.slane %v1350_v14, 5 }
  0x4c   : > { %2731 = vmatprep.subr.bf16.mxu0 %v2995_v19  ;;  %v1338_v16 = vrot.slane %v1336_v3, 5  ;;  %v1325_v19 = vor.u32 %v1324_v8, %v1321_v7  ;;  %v1317_v8 = vld [vmem:[%s3112_s28 + $0xf8] sm:$0x1] }
  0x4e   : > { %1028 = vmatmul.mubr.bf16.gmra.mrb[12].mxu0 %v2343_v18  ;;  %2830 = vmatpush3.bf16.msra.mxu1 %v2991_v22  ;;  %v1347_v18 = vshrl.u32 %v1306_v1, 16  ;;  %v1364_v22 = vshll.u32 %v1308_v6, 16  ;;  %v1315_v1 = vld [vmem:[%s3112_s28 + $0xd8] sm:$0x1] }
  0x4f   : > { %2732 = vmatpush3.bf16.msra.mxu0 %v2996_v21  ;;  %1035 = vmatprep.mubr.bf16.mxu0 %v2346_v15  ;;  %v1361_v21 = vshrl.u32 %v1308_v6, 16  ;;  %v1370_v15 = vshll.u32 %v1309_v11, 16  ;;  %v3490_v11 = vld [vmem:[%s3598_s1 + $0x2a0] sm:$0xff]  }
  0x50   : > { %2733 = vmatprep.subr.bf16.mxu0 %v2998_v23  ;;  %2831 = vmatprep.subr.bf16.mxu1 %v2994_v24  ;;  %v3441_v23 = vld [vmem:[%s3598_s1 + $0x280] sm:$0xff]  }
  0x51   : > { %1270 = vmatmul.mubr.bf16.gmra.mrb[12].mxu1 %v2399_v31  ;;  %v1363_v31 = vrot.slane %v1361_v21, 4  ;;  %v3494_v21 = vld [vmem:[%s3112_s28 + $0x100] sm:$0xff] }
  0x52   : > { %2832 = vmatpush3.bf16.msra.mxu1 %v2994_v24  ;;  %1277 = vmatprep.mubr.bf16.mxu1 %v2402_v33  ;;  %v1339_v24 = vor.u32 %v1338_v16, %v1335_v10  ;;  %v1412_v10 = vshll.u32 %v1315_v1, 16 }
  0x53   : > { %2734 = vmatpush3.bf16.msra.mxu0 %v2999_v25  ;;  %2833 = vmatprep.subr.bf16.mxu1 %v2997_v35  ;;  %v1349_v25 = vrot.slane %v1347_v18, 4  ;;  %v1420_v18 = vshll.u32 %v1316_v5, 16 }
  0x54   : > { %2735 = vmatprep.subr.bf16.mxu0 %v3001_v32  ;;  %v1366_v32 = vrot.slane %v1364_v22, 5  ;;  %v1340_v33 = vrot.slane %v1339_v24, 4  ;;  %v2493_v22 = vcombine.low %v3357_v27, %v3381_v38 }
  0x56   : > { %1036 = vmatmul.mubr.bf16.gmra.mrb[16].mxu0 %v2345_v30  ;;  %2834 = vmatpush3.bf16.msra.mxu1 %v2997_v35  ;;  %v1326_v30 = vrot.slane %v1325_v19, 4  ;;  %v1358_v35 = vrot.slane %v1356_v20, 5  ;;  %v1426_v20 = vshll.u32 %v1317_v8, 16 }
  0x57   : > { %2736 = vmatpush3.bf16.msra.mxu0 %v3002_v34  ;;  %1043 = vmatprep.mubr.bf16.mxu0 %v2348_v41  ;;  %v1353_v34 = vor.u32 %v1352_v28, %v1349_v25  ;;  %v1345_v41 = vsel %vm3167_vm2, %v1340_v33, %v1344_v17  ;;  %v1417_v17 = vshrl.u32 %v1316_v5, 16  ;;  %v1422_v25 = vrot.slane %v1420_v18, 5  ;;  %v3501_v28 = vld [vmem:[%s3598_s1 + $0x2a8] sm:$0xff]   ;;  %v3541_v5 = vld [vmem:[%s3598_s1 + $0x2b8] sm:$0xff]   ;;  %v2519_v18 = vld [vmem:[%s3112_s28 + $0x80] sm:$0xf] }
  0x58   : > { %2737 = vmatprep.subr.bf16.mxu0 %v3004_v36  ;;  %2835 = vmatprep.subr.bf16.mxu1 %v3000_v40  ;;  %v1331_v36 = vsel %vm3167_vm2, %v1326_v30, %v1330_v9  ;;  %v2496_v33 = vcombine.high %v3384_v39, %v3494_v21 }
  0x59   : > { %1278 = vmatmul.mubr.bf16.gmra.mrb[16].mxu1 %v2401_v47  ;;  %v1354_v42 = vrot.slane %v1353_v34, 4  ;;  %v1310_v47 = vld [vmem:[%s3112_s28 + $0x88] sm:$0xf]  ;;  %v1419_v24 = vrot.slane %v1417_v17, 4  ;;  %v2513_v34 = vld [vmem:[%s3112_s28 + $0x20] sm:$0xf] }
  0x5a   : > { %2836 = vmatpush3.bf16.msra.mxu1 %v3000_v40  ;;  %1285 = vmatprep.mubr.bf16.mxu1 %v2404_v50  ;;  %v1372_v40 = vrot.slane %v1370_v15, 5  ;;  %v2494_v50 = vcombine.high %v3357_v27, %v3381_v38  ;;  %v1375_v53 = vshrl.u32 %v1310_v47, 16 }
  0x5b   : > { %2738 = vmatpush3.bf16.msra.mxu0 %v3005_v37  ;;  %2837 = vmatprep.subr.bf16.mxu1 %v3003_v49  ;;  %v1367_v37 = vor.u32 %v1366_v32, %v1363_v31  ;;  %v1414_v31 = vrot.slane %v1412_v10, 5  ;;  %v1428_v32 = vrot.slane %v1426_v20, 5  ;;  %v1423_v38 = vor.u32 %v1422_v25, %v1419_v24 }
  0x5c   : > { %2739 = vmatprep.subr.bf16.mxu0 %v3007_v45  ;;  %v1377_v61 = vrot.slane %v1375_v53, 4 }
  0x5d   : > { %v1368_v45 = vrot.slane %v1367_v37, 4 }
  0x5e   : > { %1044 = vmatmul.mubr.bf16.gmra.mrb[20].mxu0 %v2347_v44  ;;  %2838 = vmatpush3.bf16.msra.mxu1 %v3003_v49  ;;  %v2437_v44 = vcombine.low %v1331_v36, %v1345_v41  ;;  %v1359_v49 = vsel %vm3167_vm2, %v1354_v42, %v1358_v35  ;;  %v2514_v35 = vld [vmem:[%s3112_s28 + $0x30] sm:$0x1]  ;;  %v1852_v42 = vshrl.u32 %v2513_v34, 16 }
  0x5f   : > { %1794 = vmatprep.mubr.bf16.mxu0 %v2490_v46  ;;  %2740 = vmatpush3.bf16.msra.mxu0 %v3008_v48  ;;  %v2491_v46 = vcombine.low %v3327_v12, %v3354_v26  ;;  %v1311_v48 = vld [vmem:[%s3112_s28 + $0x98] sm:$0x1]  ;;  %v1373_v12 = vsel %vm3167_vm2, %v1368_v45, %v1372_v40  ;;  %v2495_v40 = vcombine.low %v3384_v39, %v3494_v21  ;;  %v2516_v41 = vld [vmem:[%s3112_s28 + $0x50] sm:$0x1]  ;;  %v1855_v45 = vshll.u32 %v2513_v34, 16 }
  0x60   : > { %2741 = vmatprep.subr.bf16.mxu0 %v3010_v51  ;;  %2839 = vmatprep.subr.bf16.mxu1 %v3006_v54  ;;  %v1312_v51 = vld [vmem:[%s3112_s28 + $0xa8] sm:$0xf]  ;;  %v3476_v26 = vld [vmem:[%s3598_s1 + $0x298] sm:$0xff]   ;;  %v1384_v55 = vshll.u32 %v1311_v48, 16  ;;  %v2438_v60 = vcombine.low %v1359_v49, %v1373_v12  ;;  %v2521_v48 = vld [vmem:[%s3112_s28 + $0xa0] sm:$0xf] }
  0x61   : > { %1286 = vmatmul.mubr.bf16.gmra.mrb[20].mxu1 %v2403_v2  ;;  %v1389_v56 = vshrl.u32 %v1312_v51, 16  ;;  %v1392_v57 = vshll.u32 %v1312_v51, 16  ;;  %v1875_v39 = vshll.u32 %v2516_v41, 16  ;;  %v1857_v12 = vrot.slane %v1855_v45, 5 }
  0x62   : > { %2840 = vmatpush3.bf16.msra.mxu1 %v3006_v54  ;;  %v1378_v54 = vshll.u32 %v1310_v47, 16  ;;  %2843 = vmatprep.mubr.bf16.mxu1 %v2437_v44  ;;  %v1386_v2 = vrot.slane %v1384_v55, 5  ;;  %v1424_v44 = vrot.slane %v1423_v38, 4  ;;  %v1911_v1 = vshll.u32 %v2521_v48, 16 }
  0x63   : > { %2742 = vmatpush3.bf16.msra.mxu0 %v3011_v52  ;;  %2841 = vmatprep.subr.bf16.mxu1 %v3009_v13  ;;  %v1313_v52 = vld [vmem:[%s3112_s28 + $0xb8] sm:$0x1]  ;;  %v1391_v3 = vrot.slane %v1389_v56, 4  ;;  %v1394_v4 = vrot.slane %v1392_v57, 5  ;;  %v2523_v57 = vld [vmem:[%s3112_s28 + $0xc0] sm:$0xf] }
  0x64   : > { %2851 = vmatprep.subr.bf16.mxu0 %v3441_v23  ;;  %v1380_v62 = vrot.slane %v1378_v54, 5  ;;  %v1398_v63 = vshll.u32 %v1313_v52, 16  ;;  %v2522_v52 = vld [vmem:[%s3112_s28 + $0xb0] sm:$0x1]  ;;  %v1429_v53 = vsel %vm3167_vm2, %v1424_v44, %v1428_v32  ;;  %v1894_v32 = vshrl.u32 %v2519_v18, 16 }
  0x65   : > { %v3531_v54 = vld [vmem:[%s3598_s1 + $0x2b0] sm:$0xff]   ;;  %v2527_v44 = vld [vmem:[%s3112_s28 + $0x100] sm:$0xf] }
  0x66   : > { %1795 = vmatmul.mubr.bf16.vlgmr.msra.gmra.mrb[24].mxu0 %v2489_v58  ;;  %2842 = vmatpush3.bf16.msra.mxu1 %v3009_v13  ;;  %v1314_v58 = vld [vmem:[%s3112_s28 + $0xc8] sm:$0xf]  ;;  %v1400_v7 = vrot.slane %v1398_v63, 5  ;;  %v1395_v13 = vor.u32 %v1394_v4, %v1391_v3  ;;  %v1922_v3 = vshrl.u32 %v2523_v57, 16  ;;  %v2517_v4 = vld [vmem:[%s3112_s28 + $0x60] sm:$0xf] }
  0x67   : > { %2852 = vmatpush3.bf16.msra.mxu0 %v3441_v23  ;;  %1802 = vmatprep.mubr.bf16.mxu0 %v2492_v59  ;;  %v1403_v6 = vshrl.u32 %v1314_v58, 16  ;;  %v1381_v59 = vor.u32 %v1380_v62, %v1377_v61  ;;  %v1406_v9 = vshll.u32 %v1314_v58, 16  ;;  %v2524_v61 = vld [vmem:[%s3112_s28 + $0xd0] sm:$0x1]  ;;  %v1908_v62 = vshrl.u32 %v2521_v48, 16 }
  0x68   : > { %2853 = vmatprep.subr.bf16.mxu0 %v3446_v29  ;;  %2875 = vmatprep.subr.bf16.mxu1 %v3441_v23  ;;  %v1931_v8 = vshll.u32 %v2524_v61, 16  ;;  %v1924_v17 = vrot.slane %v1922_v3, 4  ;;  %v1880_v21 = vshrl.u32 %v2517_v4, 16  ;;  %v1883_v24 = vshll.u32 %v2517_v4, 16 }
  0x69   : > { %2844 = vmatmul.mubr.bf16.vlgmr.msra.gmra.mrb[0].mxu1 %v2438_v60  ;;  %v1405_v16 = vrot.slane %v1403_v6, 4  ;;  %v1382_v14 = vrot.slane %v1381_v59, 4  ;;  %v1408_v19 = vrot.slane %v1406_v9, 5  ;;  %v1877_v60 = vrot.slane %v1875_v39, 5  ;;  %v2518_v9 = vld [vmem:[%s3112_s28 + $0x70] sm:$0x1] }
  0x6a   : > { %2883 = vmatpush3.bf16.msra.mxu1 %v3441_v23  ;;  %v1396_v23 = vrot.slane %v1395_v13, 4  ;;  %v1910_v59 = vrot.slane %v1908_v62, 4  ;;  %v1913_v13 = vrot.slane %v1911_v1, 5  ;;  %v1933_v20 = vrot.slane %v1931_v8, 5 }
  0x6b   : > { %2854 = vmatpush3.bf16.msra.mxu0 %v3446_v29  ;;  %2876 = vmatprep.subr.bf16.mxu1 %v3446_v29  ;;  %v1387_v15 = vsel %vm3167_vm2, %v1382_v14, %v1386_v2  ;;  %v1409_v30 = vor.u32 %v1408_v19, %v1405_v16  ;;  %v1917_v2 = vshll.u32 %v2522_v52, 16  ;;  %v1889_v25 = vshll.u32 %v2518_v9, 16 }
  0x6c   : > { %2855 = vmatprep.subr.bf16.mxu0 %v3458_v43  ;;  %v1401_v27 = vsel %vm3167_vm2, %v1396_v23, %v1400_v7  ;;  %v1925_v7 = vshll.u32 %v2523_v57, 16  ;;  %v2520_v23 = vld [vmem:[%s3112_s28 + $0x90] sm:$0x1]  ;;  %v1885_v34 = vrot.slane %v1883_v24, 5  ;;  %v1953_v57 = vshll.u32 %v2527_v44, 16 }
  0x6d   : > { %v2439_v36 = vcombine.low %v1387_v15, %v1401_v27  ;;  %v1410_v37 = vrot.slane %v1409_v30, 4  ;;  %v1919_v16 = vrot.slane %v1917_v2, 5  ;;  %v2525_v27 = vld [vmem:[%s3112_s28 + $0xe0] sm:$0xf] }
  0x6e   : > { %1803 = vmatmul.mubr.bf16.gmra.mrb[28].mxu0 %v2491_v46  ;;  %2884 = vmatpush3.bf16.msra.mxu1 %v3446_v29  ;;  %v2515_v29 = vld [vmem:[%s3112_s28 + $0x40] sm:$0xf]  ;;  %v1861_v46 = vshll.u32 %v2514_v35, 16  ;;  %v1927_v19 = vrot.slane %v1925_v7, 5  ;;  %v2526_v35 = vld [vmem:[%s3112_s28 + $0xf0] sm:$0x1] }
  0x6f   : > { %2856 = vmatpush3.bf16.msra.mxu0 %v3458_v43  ;;  %1810 = vmatprep.mubr.bf16.mxu0 %v2494_v50  ;;  %v1866_v47 = vshrl.u32 %v2515_v29, 16  ;;  %v1415_v49 = vsel %vm3167_vm2, %v1410_v37, %v1414_v31  ;;  %v1854_v50 = vrot.slane %v1852_v42, 4  ;;  %v1869_v51 = vshll.u32 %v2515_v29, 16 }
  0x70   : > { %2857 = vmatprep.subr.bf16.mxu0 %v3476_v26  ;;  %2877 = vmatprep.subr.bf16.mxu1 %v3458_v43  ;;  %v1863_v55 = vrot.slane %v1861_v46, 5  ;;  %v2440_v58 = vcombine.low %v1415_v49, %v1429_v53  ;;  %v1928_v30 = vor.u32 %v1927_v19, %v1924_v17  ;;  %v1882_v31 = vrot.slane %v1880_v21, 4  ;;  %v2528_v49 = vld [vmem:[%s3112_s28 + $0x110] sm:$0x1]  ;;  %s2559_s28 = sshll.u32 %s3608_s25, 5 }
  0x71   : > { %2847 = vmatprep.mubr.bf16.mxu1 %v2439_v36  ;;  %v1868_v56 = vrot.slane %v1866_v47, 4  ;;  %v1858_v63 = vor.u32 %v1857_v12, %v1854_v50  ;;  %v1896_v37 = vrot.slane %v1894_v32, 4  ;;  %v1903_v29 = vshll.u32 %v2520_v23, 16  ;;  %s297_s12 = scalar_lea.vmem %s3603_s6, %s2559_s28  ;;  %s292_s15 = scalar_lea.vmem %s3602_s5, %s2559_s28 }
  0x72   : > { %2885 = vmatpush3.bf16.msra.mxu1 %v3458_v43  ;;  %v1871_v43 = vrot.slane %v1869_v51, 5  ;;  %v1929_v36 = vrot.slane %v1928_v30, 4  ;;  %v1886_v42 = vor.u32 %v1885_v34, %v1882_v31  ;;  %v1939_v45 = vshll.u32 %v2525_v27, 16 }
  0x73   : > { %2858 = vmatpush3.bf16.msra.mxu0 %v3476_v26  ;;  %2878 = vmatprep.subr.bf16.mxu1 %v3476_v26  ;;  %v1859_v10 = vrot.slane %v1858_v63, 4  ;;  %v1891_v47 = vrot.slane %v1889_v25, 5  ;;  %v1945_v50 = vshll.u32 %v2526_v35, 16 }
  0x74   : > { %2859 = vmatprep.subr.bf16.mxu0 %v3490_v11  ;;  %2848 = vmatmul.mubr.bf16.gmra.mrb[4].mxu1 %v2440_v58  ;;  %v1872_v6 = vor.u32 %v1871_v43, %v1868_v56  ;;  %v1934_v46 = vsel %vm3167_vm2, %v1929_v36, %v1933_v20  ;;  %v1887_v39 = vrot.slane %v1886_v42, 4  ;;  %v1941_v53 = vrot.slane %v1939_v45, 5 }
  0x75   : > { %v1950_v56 = vshrl.u32 %v2527_v44, 16  ;;  %v1947_v43 = vrot.slane %v1945_v50, 5 }
  0x76   : > { %1811 = vmatmul.mubr.bf16.gmra.mrb[32].mxu0 %v2493_v22  ;;  %2886 = vmatpush3.bf16.msra.mxu1 %v3476_v26  ;;  %v1873_v14 = vrot.slane %v1872_v6, 4  ;;  %v1864_v22 = vsel %vm3167_vm2, %v1859_v10, %v1863_v55  ;;  %v1914_v26 = vor.u32 %v1913_v13, %v1910_v59  ;;  %v1905_v55 = vrot.slane %v1903_v29, 5 }
  0x77   : > { %2860 = vmatpush3.bf16.msra.mxu0 %v3490_v11  ;;  %1818 = vmatprep.mubr.bf16.mxu0 %v2496_v33  ;;  %v1892_v61 = vsel %vm3167_vm2, %v1887_v39, %v1891_v47  ;;  %v1952_v63 = vrot.slane %v1950_v56, 4 }
  0x78   : > { %2861 = vmatprep.subr.bf16.mxu0 %v3501_v28  ;;  %2879 = vmatprep.subr.bf16.mxu1 %v3490_v11  ;;  %v1878_v15 = vsel %vm3167_vm2, %v1873_v14, %v1877_v60  ;;  %v1915_v33 = vrot.slane %v1914_v26, 4  ;;  %v1959_v60 = vshll.u32 %v2528_v49, 16 }
  0x79   : > { %v2545_v38 = vcombine.low %v1864_v22, %v1878_v15 }
  0x7a   : > { %2887 = vmatpush3.bf16.msra.mxu1 %v3490_v11  ;;  %v1920_v41 = vsel %vm3167_vm2, %v1915_v33, %v1919_v16  ;;  %v1936_v11 = vshrl.u32 %v2525_v27, 16  ;;  %v1961_v4 = vrot.slane %v1959_v60, 5 }
  0x7b   : > { %2862 = vmatpush3.bf16.msra.mxu0 %v3501_v28  ;;  %2880 = vmatprep.subr.bf16.mxu1 %v3501_v28  ;;  %v2547_v51 = vcombine.low %v1920_v41, %v1934_v46 }
  0x7c   : > { %2863 = vmatprep.subr.bf16.mxu0 %v3531_v54  ;;  %v1938_v52 = vrot.slane %v1936_v11, 4 }
  0x7d   : > { %2871 = vmatprep.mubr.bf16.mxu1 %v2547_v51 }
  0x7e   : > { %1819 = vmatmul.mubr.bf16.gmra.mrb[36].mxu0 %v2495_v40  ;;  %v1897_v40 = vshll.u32 %v2519_v18, 16  ;;  %2888 = vmatpush3.bf16.msra.mxu1 %v3501_v28  ;;  %v1942_v58 = vor.u32 %v1941_v53, %v1938_v52  ;;  %v1955_v28 = vrot.slane %v1953_v57, 5 }
  0x7f   : > { %2864 = vmatpush3.bf16.msra.mxu0 %v3531_v54  ;;  %2867 = vmatprep.mubr.bf16.mxu0 %v2545_v38 }
  0x80   : > { %2865 = vmatprep.subr.bf16.mxu0 %v3541_v5  ;;  %v1899_v48 = vrot.slane %v1897_v40, 5  ;;  %2881 = vmatprep.subr.bf16.mxu1 %v3531_v54  ;;  %v1943_v1 = vrot.slane %v1942_v58, 4  ;;  %v1956_v3 = vor.u32 %v1955_v28, %v1952_v63 }
  0x82   : > { %v1900_v12 = vor.u32 %v1899_v48, %v1896_v37  ;;  %2889 = vmatpush3.bf16.msra.mxu1 %v3531_v54  ;;  %v1948_v59 = vsel %vm3167_vm2, %v1943_v1, %v1947_v43  ;;  %v1957_v7 = vrot.slane %v1956_v3, 4 }
  0x83   : > { %2866 = vmatpush3.bf16.msra.mxu0 %v3541_v5  ;;  %2882 = vmatprep.subr.bf16.mxu1 %v3541_v5 }
  0x84   : > { %v1901_v62 = vrot.slane %v1900_v12, 4  ;;  %v1962_v54 = vsel %vm3167_vm2, %v1957_v7, %v1961_v4 }
  0x85   : > { %v2548_v8 = vcombine.low %v1948_v59, %v1962_v54 }
  0x86   : > { %v1906_v2 = vsel %vm3167_vm2, %v1901_v62, %v1905_v55  ;;  %2890 = vmatpush3.bf16.msra.mxu1 %v3541_v5 }
  0x87   : > { %v2546_v6 = vcombine.low %v1892_v61, %v1906_v2 }
  0x89   : > { %2868 = vmatmul.mubr.bf16.vlgmr.msra.gmra.mrb[40].mxu0 %v2546_v6  ;;  %2872 = vmatmul.mubr.bf16.vlgmr.msra.gmra.mrb[4].mxu1 %v2548_v8 }
  0xf9   : > { %v2797_v9 = vpop.f32.mrb[0].mxu0 }
  0xfa   : > { %v487_v10 = vpop.f32.mrb[1].mxu0 }
  0xfb   : > { %v2798_v13 = vpop.f32.mrb[2].mxu0 }
  0xfc   : > { %v2573_v16 = vpack.c.bf16 %v2798_v13, %v2797_v9  ;;  %v490_v17 = vpop.f32.mrb[3].mxu0 }
  0xfd   : > { %v2568_v18 = vpack.c.bf16 %v490_v17, %v487_v10 }
  0xfe   : > { %2605 = vst [vmem:[%s297_s12 + $0x8] sm:$0xff] %v2573_v16  }
  0xff   : > { %2569 = vst [vmem:[%s297_s12] sm:$0xff] %v2568_v18  }
 0x104   : > { %v2801_v5 = vpop.f32.mrb[4].mxu0 }
 0x105   : > { %v503_v14 = vpop.f32.mrb[5].mxu0 }
 0x106   : > { %v2802_v0 = vpop.f32.mrb[6].mxu0 }
 0x107   : > { %v2583_v19 = vpack.c.bf16 %v2802_v0, %v2801_v5  ;;  %v506_v20 = vpop.f32.mrb[7].mxu0 }
 0x108   : > { %v2578_v21 = vpack.c.bf16 %v506_v20, %v503_v14 }
 0x109   : > { %2607 = vst [vmem:[%s297_s12 + $0x18] sm:$0xff] %v2583_v19  }
 0x10a   : > { %2606 = vst [vmem:[%s297_s12 + $0x10] sm:$0xff] %v2578_v21  }
 0x119   : > { %v2651_v22 = vpop.f32.mrb[8].mxu0 }
 0x11a   : > { %v2652_v26 = vpop.f32.mrb[9].mxu0 }
 0x11b   : > { %v2653_v23 = vadd.f32 %v2652_v26, %v2651_v22  ;;  %v2654_v24 = vpop.f32.mrb[10].mxu0 }
 0x11c   : > { %v2655_v25 = vpop.f32.mrb[11].mxu0  ;;  %v2691_v32 = vpop.f32.mrb[8].mxu1 }
 0x11d   : > { %v2656_v15 = vadd.f32 %v2655_v25, %v2654_v24  ;;  %v2692_v33 = vpop.f32.mrb[9].mxu1 }
 0x11e   : > { %v2693_v35 = vadd.f32 %v2692_v33, %v2691_v32  ;;  %v2694_v36 = vpop.f32.mrb[10].mxu1 }
 0x11f   : > { %v2695_v40 = vpop.f32.mrb[11].mxu1 }
 0x120   : > { %v2696_v29 = vadd.f32 %v2695_v40, %v2694_v36  ;;  %v2895_v41 = vadd.f32 %v2693_v35, %v2653_v23 }
 0x121   : > { %v2657_v30 = vpop.f32.mrb[12].mxu0 }
 0x122   : > { %v2658_v31 = vpop.f32.mrb[13].mxu0  ;;  %v2903_v44 = vadd.f32 %v2696_v29, %v2656_v15 }
 0x123   : > { %v2659_v27 = vadd.f32 %v2658_v31, %v2657_v30  ;;  %v2660_v38 = vpop.f32.mrb[14].mxu0 }
 0x124   : > { %v2661_v34 = vpop.f32.mrb[15].mxu0  ;;  %v2697_v45 = vpop.f32.mrb[12].mxu1 }
 0x125   : > { %v2662_v37 = vadd.f32 %v2661_v34, %v2660_v38  ;;  %v2698_v48 = vpop.f32.mrb[13].mxu1 }
 0x126   : > { %v2699_v50 = vadd.f32 %v2698_v48, %v2697_v45  ;;  %v2700_v51 = vpop.f32.mrb[14].mxu1 }
 0x127   : > { %v2701_v52 = vpop.f32.mrb[15].mxu1 }
 0x128   : > { %v2702_v53 = vadd.f32 %v2701_v52, %v2700_v51  ;;  %v2891_v12 = vadd.f32 %v2699_v50, %v2659_v27 }
 0x129   : > { %v2663_v42 = vpop.f32.mrb[16].mxu0 }
 0x12a   : > { %v2664_v11 = vpop.f32.mrb[17].mxu0  ;;  %v2899_v56 = vadd.f32 %v2702_v53, %v2662_v37 }
 0x12b   : > { %v2665_v46 = vadd.f32 %v2664_v11, %v2663_v42  ;;  %v2666_v47 = vpop.f32.mrb[18].mxu0 }
 0x12c   : > { %v2667_v49 = vpop.f32.mrb[19].mxu0  ;;  %v2703_v58 = vpop.f32.mrb[16].mxu1 }
 0x12d   : > { %v2668_v39 = vadd.f32 %v2667_v49, %v2666_v47  ;;  %v2704_v61 = vpop.f32.mrb[17].mxu1 }
 0x12e   : > { %v2705_v63 = vadd.f32 %v2704_v61, %v2703_v58  ;;  %v2706_v28 = vpop.f32.mrb[18].mxu1 }
 0x12f   : > { %v2707_v2 = vpop.f32.mrb[19].mxu1 }
 0x130   : > { %v2910_v3 = vadd.f32 %v2705_v63, %v2665_v46  ;;  %v2708_v4 = vadd.f32 %v2707_v2, %v2706_v28 }
 0x131   : > { %v2669_v55 = vpop.f32.mrb[20].mxu0 }
 0x132   : > { %v2670_v57 = vpop.f32.mrb[21].mxu0  ;;  %v2916_v6 = vadd.f32 %v2708_v4, %v2668_v39 }
 0x133   : > { %v2671_v43 = vadd.f32 %v2670_v57, %v2669_v55  ;;  %v2672_v60 = vpop.f32.mrb[22].mxu0 }
 0x134   : > { %v2673_v62 = vpop.f32.mrb[23].mxu0  ;;  %v2709_v7 = vpop.f32.mrb[20].mxu1 }
 0x135   : > { %v2674_v1 = vadd.f32 %v2673_v62, %v2672_v60  ;;  %v2710_v8 = vpop.f32.mrb[21].mxu1 }
 0x136   : > { %v2711_v13 = vadd.f32 %v2710_v8, %v2709_v7  ;;  %v2712_v16 = vpop.f32.mrb[22].mxu1 }
 0x137   : > { %v2713_v18 = vpop.f32.mrb[23].mxu1 }
 0x138   : > { %v2907_v14 = vadd.f32 %v2711_v13, %v2671_v43  ;;  %v2714_v0 = vadd.f32 %v2713_v18, %v2712_v16 }
 0x139   : > { %v2743_v59 = vpop.f32.mrb[24].mxu0 }
 0x13a   : > { %v2744_v54 = vpop.f32.mrb[25].mxu0  ;;  %v2913_v19 = vadd.f32 %v2714_v0, %v2674_v1 }
 0x13b   : > { %v2745_v9 = vadd.f32 %v2744_v54, %v2743_v59  ;;  %v2746_v10 = vpop.f32.mrb[26].mxu0 }
 0x13c   : > { %v2747_v17 = vpop.f32.mrb[27].mxu0  ;;  %v2845_v21 = vpop.f32.mrb[0].mxu1 }
 0x13d   : > { %v2748_v5 = vadd.f32 %v2747_v17, %v2746_v10  ;;  %v2892_v26 = vadd.f32 %v2891_v12, %v2845_v21  ;;  %v1545_v23 = vpop.f32.mrb[1].mxu1 }
 0x13e   : > { %v2896_v15 = vadd.f32 %v2895_v41, %v1545_v23  ;;  %v2846_v30 = vpop.f32.mrb[2].mxu1 }
 0x13f   : > { %v2900_v32 = vadd.f32 %v2899_v56, %v2846_v30  ;;  %v1548_v27 = vpop.f32.mrb[3].mxu1 }
 0x140   : > { %v2904_v34 = vadd.f32 %v2903_v44, %v1548_v27  ;;  %v2897_v35 = vadd.f32 %v2896_v15, %v2745_v9 }
 0x141   : > { %v2749_v20 = vpop.f32.mrb[28].mxu0 }
 0x142   : > { %v2750_v22 = vpop.f32.mrb[29].mxu0  ;;  %v2905_v37 = vadd.f32 %v2904_v34, %v2748_v5 }
 0x143   : > { %v2751_v24 = vadd.f32 %v2750_v22, %v2749_v20  ;;  %v2752_v25 = vpop.f32.mrb[30].mxu0 }
 0x144   : > { %v2753_v31 = vpop.f32.mrb[31].mxu0 }
 0x145   : > { %v2754_v38 = vadd.f32 %v2753_v31, %v2752_v25  ;;  %v2893_v33 = vadd.f32 %v2892_v26, %v2751_v24 }
 0x147   : > { %v2901_v36 = vadd.f32 %v2900_v32, %v2754_v38 }
 0x149   : > { %v2755_v40 = vpop.f32.mrb[32].mxu0 }
 0x14a   : > { %v2756_v29 = vpop.f32.mrb[33].mxu0 }
 0x14b   : > { %v2757_v42 = vadd.f32 %v2756_v29, %v2755_v40  ;;  %v2758_v11 = vpop.f32.mrb[34].mxu0 }
 0x14c   : > { %v2759_v45 = vpop.f32.mrb[35].mxu0 }
 0x14d   : > { %v2760_v46 = vadd.f32 %v2759_v45, %v2758_v11  ;;  %v2911_v47 = vadd.f32 %v2910_v3, %v2757_v42 }
 0x14f   : > { %v2917_v48 = vadd.f32 %v2916_v6, %v2760_v46 }
 0x151   : > { %v2761_v41 = vpop.f32.mrb[36].mxu0 }
 0x152   : > { %v2762_v49 = vpop.f32.mrb[37].mxu0 }
 0x153   : > { %v2763_v50 = vadd.f32 %v2762_v49, %v2761_v41  ;;  %v2764_v51 = vpop.f32.mrb[38].mxu0 }
 0x154   : > { %v2765_v39 = vpop.f32.mrb[39].mxu0 }
 0x155   : > { %v2766_v52 = vadd.f32 %v2765_v39, %v2764_v51  ;;  %v2908_v53 = vadd.f32 %v2907_v14, %v2763_v50 }
 0x157   : > { %v2914_v44 = vadd.f32 %v2913_v19, %v2766_v52 }
 0x15c   : > { %v2869_v12 = vpop.f32.mrb[40].mxu0  ;;  %v2873_v61 = vpop.f32.mrb[4].mxu1 }
 0x15d   : > { %v2894_v55 = vadd.f32 %v2893_v33, %v2869_v12  ;;  %v2078_v56 = vpop.f32.mrb[41].mxu0  ;;  %v2909_v63 = vadd.f32 %v2908_v53, %v2873_v61  ;;  %v2094_v1 = vpop.f32.mrb[5].mxu1 }
 0x15e   : > { %v2898_v57 = vadd.f32 %v2897_v35, %v2078_v56  ;;  %v2870_v58 = vpop.f32.mrb[42].mxu0  ;;  %v2912_v3 = vadd.f32 %v2911_v47, %v2094_v1  ;;  %v2874_v4 = vpop.f32.mrb[6].mxu1 }
 0x15f   : > { %v2902_v43 = vadd.f32 %v2901_v36, %v2870_v58  ;;  %v2081_v60 = vpop.f32.mrb[43].mxu0  ;;  %v2915_v54 = vadd.f32 %v2914_v44, %v2874_v4  ;;  %v2097_v8 = vpop.f32.mrb[7].mxu1  ;;  %v2149_v9 = vmul.f32 %v2894_v55, %v2894_v55  ;;  %v2153_v24 = vmul.f32 %v2909_v63, %v2909_v63 }
 0x160   : > { %v2906_v62 = vadd.f32 %v2905_v37, %v2081_v60  ;;  %v2147_v28 = vmul.f32 %v2898_v57, %v2898_v57  ;;  %v2918_v16 = vadd.f32 %v2917_v48, %v2097_v8  ;;  %v2151_v19 = vmul.f32 %v2912_v3, %v2912_v3 }
 0x161   : > { %v2593_v2 = vpack.c.bf16 %v2902_v43, %v2894_v55  ;;  %v2603_v17 = vpack.c.bf16 %v2915_v54, %v2909_v63  ;;  %v2150_v18 = vmul.f32 %v2902_v43, %v2902_v43  ;;  %v2154_v30 = vmul.f32 %v2915_v54, %v2915_v54 }
 0x162   : > { %v2588_v6 = vpack.c.bf16 %v2906_v62, %v2898_v57  ;;  %v2133_v59 = vadd.f32 %v2906_v62, %v2898_v57  ;;  %v2148_v7 = vmul.f32 %v2906_v62, %v2906_v62  ;;  %v2598_v14 = vpack.c.bf16 %v2918_v16, %v2912_v3 }
 0x163   : > { %2608 = vst [vmem:[%s292_s15 + $0x8] sm:$0xff] %v2593_v2   ;;  %2610 = vst [vmem:[%s292_s15 + $0x18] sm:$0xff] %v2603_v17   ;;  %v2152_v26 = vmul.f32 %v2918_v16, %v2918_v16 }
 0x164   : > { %2589 = vst [vmem:[%s292_s15] sm:$0xff] %v2588_v6   ;;  %v2134_v10 = vadd.f32 %v2894_v55, %v2133_v59  ;;  %v2155_v13 = vadd.f32 %v2148_v7, %v2147_v28  ;;  %2609 = vst [vmem:[%s292_s15 + $0x10] sm:$0xff] %v2598_v14  }
 0x166   : > { %v2156_v5 = vadd.f32 %v2155_v13, %v2149_v9  ;;  %v2135_v0 = vadd.f32 %v2902_v43, %v2134_v10 }
 0x168   : > { %v2136_v20 = vadd.f32 %v2912_v3, %v2135_v0  ;;  %v2157_v21 = vadd.f32 %v2156_v5, %v2150_v18 }
 0x16a   : > { %v2137_v22 = vadd.f32 %v2918_v16, %v2136_v20  ;;  %v2158_v23 = vadd.f32 %v2157_v21, %v2151_v19 }
 0x16c   : > { %v2138_v25 = vadd.f32 %v2909_v63, %v2137_v22  ;;  %v2159_v15 = vadd.f32 %v2158_v23, %v2152_v26 }
 0x16e   : > { %v2139_v31 = vadd.f32 %v2915_v54, %v2138_v25  ;;  %v2160_v32 = vadd.f32 %v2159_v15, %v2153_v24 }
 0x170   : > { %v2140_v27 = vrot.slane %v2139_v31, 4  ;;  %v2161_v38 = vadd.f32 %v2160_v32, %v2154_v30 }
 0x172   : > { %v2141_v33 = vadd.f32 %v2140_v27, %v2139_v31  ;;  %v2162_v34 = vrot.slane %v2161_v38, 4 }
 0x174   : > { %v2142_v35 = vrot.slane %v2141_v33, 2  ;;  %v2163_v36 = vadd.f32 %v2162_v34, %v2161_v38 }
 0x176   : > { %v2143_v37 = vadd.f32 %v2142_v35, %v2141_v33  ;;  %v2164_v40 = vrot.slane %v2163_v36, 2 }
 0x178   : > { %v2144_v29 = vrot.slane %v2143_v37, 1  ;;  %v2165_v42 = vadd.f32 %v2164_v40, %v2163_v36 }
 0x17a   : > { %v2145_v11 = vadd.f32 %v2144_v29, %v2143_v37  ;;  %v2166_v45 = vrot.slane %v2165_v42, 1 }
 0x17c   : > { %2146 = vst [vmem:[%s301_s19] sm:$0x1] %v2145_v11  ;;  %v2167_v46 = vadd.f32 %v2166_v45, %v2165_v42 }
 0x17e   : > { %2168 = vst [vmem:[%s301_s19 + $0x1] sm:$0x1] %v2167_v46 }
 0x17f PF: > { %s18_s24 = sadd.s32 1, %s3026_s24  }
 0x180   : > { %p15_p4 = scmp.ge.s32.totalorder %s18_s24, 4  }
 0x182   :  { %17 = sbr.rel (!%p15_p4) target bundleno = 1 (0x1), region = 100 }

// kernel: _lambda_.5
= control target key start
LH: loop header
LB: loop body
LE: loop exit
PB: predicated region body
PF: predicated region fallthrough
CT: control target
= control target key end

     0   :  { %s3523_s18 = smov 0   ;;  %s4200_s0 = inlined_call_operand.vmem [shape: bf16[2,8,8,128], index: 0, kind: input, shape index: {}]   ;;  %s4201_s1 = inlined_call_operand.vmem [shape: bf16[2,8,8,128], index: 1, kind: input, shape index: {}]   ;;  %s4202_s2 = inlined_call_operand.vmem [shape: bf16[9,128,128], index: 2, kind: input, shape index: {}]   ;;  %s4203_s3 = inlined_call_operand.vmem [shape: f32[1,128], index: 3, kind: input, shape index: {}]   ;;  %s4204_s4 = inlined_call_operand.vmem [shape: f32[1,128], index: 4, kind: input, shape index: {}]   ;;  %s4205_s5 = inlined_call_operand.vmem [shape: bf16[2,8,8,128], index: 5, kind: output, shape index: {}]  }
   0x1 LB: > { %s2624_s19 = sadd.s32 4294967295, %s3490_s18   ;;  %p2628_p0 = scmp.ge.s32.totalorder %s3490_s18, 1  ;;  %s3490_s18 = sphi %s3523_s18, %s15_s18  }
   0x2   : > { %p197_p1 = scmp.lt.s32.totalorder %s3490_s18, 3 }
   0x4   : > { %p198_p2 = pnand %p2628_p0, %p197_p1 }
   0x5   : > { %v3400_v0 = vld [vmem:[%s4202_s2] sm:$0xff] (!%p198_p2)   ;;  %p230_p3 = scmp.lt.s32.totalorder (!%p198_p2), %s2624_s19, 1  ;;  %v3401_v1 = vld [vmem:[%s4202_s2 + $0x8] sm:$0xff] (!%p198_p2)   ;;  %v3492_v2 = vmov (!%p198_p2), 0   ;;  %v3402_v4 = vld [vmem:[%s4202_s2 + $0x10] sm:$0xff] (!%p198_p2)   ;;  %vm305_vm0 = vcmask (!%p198_p2), 1040384  }
   0x6   : > { %201 = sbr.rel (%p198_p2) target bundleno = 427 (0x1ab), region = 40  ;;  %3087 = vmatprep.subr.bf16.mxu1 (!%p198_p2), %v3400_v0  ;;  %300 = vst [vmem:[#allocation2] sm:$0xf] (!%p198_p2), %v3492_v2  ;;  %301 = vst [vmem:[#allocation2 + $0x4] sm:$0x1] (!%p198_p2), %v3492_v2  ;;  %v3403_v3 = vld [vmem:[%s4202_s2 + $0x100] sm:$0xff] (!%p198_p2)  }
   0x7   : > { %304 = vst [vmem:[#allocation2 + $0x4c] sm:$0x1] (!%p198_p2), %v3492_v2  ;;  %303 = vst [vmem:[#allocation2 + $0x48] sm:$0xf] (!%p198_p2), %v3492_v2  ;;  %3088 = vmatpush3.bf16.msra.mxu1 (!%p198_p2), %v3400_v0  ;;  %3183 = vmatprep.subr.bf16.mxu0 (!%p198_p2), %v3403_v3  ;;  %v3405_v5 = vld [vmem:[%s4202_s2 + $0x108] sm:$0xff] (!%p198_p2)   ;;  %v3407_v6 = vld [vmem:[%s4202_s2 + $0x110] sm:$0xff] (!%p198_p2)  }
   0x8   : > { %3089 = vmatprep.subr.bf16.mxu1 (!%p198_p2), %v3401_v1  ;;  %3184 = vmatpush3.bf16.msra.mxu0 (!%p198_p2), %v3403_v3  ;;  %v3404_v7 = vld [vmem:[%s4202_s2 + $0x18] sm:$0xff] (!%p198_p2)   ;;  %v3406_v9 = vld [vmem:[%s4202_s2 + $0x20] sm:$0xff] (!%p198_p2)   ;;  %v3408_v11 = vld [vmem:[%s4202_s2 + $0x28] sm:$0xff] (!%p198_p2)   ;;  %vm306_vm1 = vsmask.f32 (!%p198_p2), 256  ;;  %vm483_vm5 = vcmask (!%p198_p2), 1043456  }
   0x9   : > { %3185 = vmatprep.subr.bf16.mxu0 (!%p198_p2), %v3405_v5  ;;  %v3409_v8 = vld [vmem:[%s4202_s2 + $0x118] sm:$0xff] (!%p198_p2)   ;;  %v3411_v10 = vld [vmem:[%s4202_s2 + $0x120] sm:$0xff] (!%p198_p2)   ;;  %v311_v18 = vld [vmem:[#allocation2 + $0x8] sm:$0x1] (!%p198_p2)  ;;  %vm338_vm3 = vsmask.f32 (!%p198_p2), 7938 }
   0xa   : > { %v3575_v12 = vld [vmem:[%s4203_s3] ss:$0 sm:$0xff] (!%p198_p2)  ;;  %vm3584_vm2 = vmand (!%p198_p2), %vm305_vm0, %vm306_vm1  ;;  %v3410_v24 = vld [vmem:[%s4202_s2 + $0x30] sm:$0xff] (!%p198_p2)   ;;  %vm734_vm7 = vsmask.f32 (!%p198_p2), 3328  ;;  %vm1027_vm10 = vcmask (!%p198_p2), 1042432  }
   0xb   : > { %3090 = vmatpush3.bf16.msra.mxu1 (!%p198_p2), %v3401_v1  ;;  %v3580_v13 = vld [vmem:[%s4204_s4] ss:$0 sm:$0xff] (!%p198_p2)  ;;  %v312_v22 = vsel (!%p198_p2), %vm3584_vm2, 0, %v311_v18  ;;  %v3413_v25 = vld [vmem:[%s4202_s2 + $0x128] sm:$0xff] (!%p198_p2)   ;;  %v314_v29 = vld [vmem:[#allocation2 + $0x10] sm:$0x1] (!%p198_p2) }
   0xc   : > { %3091 = vmatprep.subr.bf16.mxu1 (!%p198_p2), %v3402_v4  ;;  %3186 = vmatpush3.bf16.msra.mxu0 (!%p198_p2), %v3405_v5  ;;  %313 = vst [vmem:[#allocation2 + $0x8] sm:$0x1] (!%p198_p2), %v312_v22  ;;  %v317_v30 = vld [vmem:[#allocation2 + $0x18] sm:$0x1] (!%p198_p2)  ;;  %v315_v33 = vsel (!%p198_p2), %vm3584_vm2, 0, %v314_v29  ;;  %vm3609_vm4 = vmand (!%p198_p2), %vm305_vm0, %vm338_vm3  ;;  %v3416_v41 = vld [vmem:[%s4202_s2 + $0x130] sm:$0xff] (!%p198_p2)  }
   0xd   : > { %s4217_s19 = smov (!%p230_p3, %s2624_s19), 1  ;;  %3187 = vmatprep.subr.bf16.mxu0 %v3407_v6  ;;  %v308_v17 = vld [vmem:[#allocation2] sm:$0x1]  ;;  %v318_v34 = vsel %vm3584_vm2, 0, %v317_v30  ;;  %316 = vst [vmem:[#allocation2 + $0x10] sm:$0x1] %v315_v33  ;;  %vm3637_vm6 = vmand %vm483_vm5, %vm338_vm3 }
   0xe   : > { %s3552_s9 = sshll.u32 %s4217_s19, 5  ;;  %v309_v21 = vsel %vm3584_vm2, 0, %v308_v17  ;;  %319 = vst [vmem:[#allocation2 + $0x18] sm:$0x1] %v318_v34  ;;  %v343_v43 = vld [vmem:[#allocation2 + $0xc] sm:$0x1] }
   0xf   : > { %3092 = vmatpush3.bf16.msra.mxu1 %v3402_v4  ;;  %s3561_s14 = scalar_lea.vmem %s4200_s0, %s3552_s9  ;;  %310 = vst [vmem:[#allocation2] sm:$0x1] %v309_v21  ;;  %v346_v44 = vld [vmem:[#allocation2 + $0x14] sm:$0x1]  ;;  %v3412_v45 = vld [vmem:[%s4202_s2 + $0x38] sm:$0xff]   ;;  %v344_v47 = vsel %vm3609_vm4, 0, %v343_v43  ;;  %s4187_s11 = scalar_lea.vmem %s4201_s1, %s3552_s9 }
  0x10   : > { %3093 = vmatprep.subr.bf16.mxu1 %v3404_v7  ;;  %3188 = vmatpush3.bf16.msra.mxu0 %v3407_v6  ;;  %v2919_v14 = vld [vmem:[%s3561_s14] sm:$0xff]   ;;  %v2970_v27 = vld [vmem:[%s3561_s14 + $0x8] sm:$0xff]   ;;  %v347_v48 = vsel %vm3609_vm4, 0, %v346_v44  ;;  %345 = vst [vmem:[#allocation2 + $0xc] sm:$0x1] %v344_v47  ;;  %v3419_v56 = vld [vmem:[%s4202_s2 + $0x138] sm:$0xff]   ;;  %s244_s15 = scalar_lea.vmem %s4205_s5, %s3552_s9 }
  0x11   : > { %3189 = vmatprep.subr.bf16.mxu0 %v3409_v8  ;;  %v2920_v15 = vunpack.c.l.bf16 %v2919_v14  ;;  %v2921_v16 = vunpack.c.h.bf16 %v2919_v14  ;;  %v2924_v31 = vunpack.c.l.bf16 %v2970_v27  ;;  %v2925_v32 = vunpack.c.h.bf16 %v2970_v27  ;;  %348 = vst [vmem:[#allocation2 + $0x14] sm:$0x1] %v347_v48  ;;  %v3630_v52 = vld [vmem:[%s4202_s2 + $0x40] sm:$0xff]   ;;  %v349_v60 = vld [vmem:[#allocation2 + $0x1c] sm:$0x1] }
  0x12   : > { %v320_v59 = vld [vmem:[#allocation2 + $0x20] sm:$0x1]  ;;  %v350_v5 = vsel %vm3609_vm4, 0, %v349_v60  ;;  %v352_v6 = vld [vmem:[#allocation2 + $0x24] sm:$0x1]  ;;  %vm1028_vm11 = vcmask 1046532  }
  0x13   : > { %3094 = vmatpush3.bf16.msra.mxu1 %v3404_v7  ;;  %v270_v20 = vmul.f32 %v2920_v15, %v3575_v12  ;;  %v271_v23 = vmul.f32 %v2921_v16, %v3575_v12  ;;  %v272_v38 = vmul.f32 %v2924_v31, %v3575_v12  ;;  %v273_v39 = vmul.f32 %v2925_v32, %v3575_v12  ;;  %v485_v62 = vld [vmem:[#allocation2 + $0x8] sm:$0xf]  ;;  %v3650_v16 = vld [vmem:[%s4202_s2 + $0x140] sm:$0xff]   ;;  %vm3868_vm12 = vmor %vm1027_vm10, %vm1028_vm11 }
  0x14   : > { %3095 = vmatprep.subr.bf16.mxu1 %v3406_v9  ;;  %3190 = vmatpush3.bf16.msra.mxu0 %v3409_v8  ;;  %v491_v1 = vld [vmem:[#allocation2 + $0x10] sm:$0xf]  ;;  %v321_v2 = vsel %vm3584_vm2, 0, %v320_v59  ;;  %351 = vst [vmem:[#allocation2 + $0x1c] sm:$0x1] %v350_v5  ;;  %v353_v17 = vsel %vm3609_vm4, 0, %v352_v6 }
  0x15   : > { %3191 = vmatprep.subr.bf16.mxu0 %v3411_v10  ;;  %v284_v26 = vadd.f32 %v3580_v13, %v270_v20  ;;  %v285_v28 = vadd.f32 %v3580_v13, %v271_v23  ;;  %v286_v46 = vadd.f32 %v3580_v13, %v272_v38  ;;  %v287_v51 = vadd.f32 %v3580_v13, %v273_v39  ;;  %v497_v15 = vld [vmem:[#allocation2 + $0x18] sm:$0xf]  ;;  %v3418_v59 = vld [vmem:[%s4202_s2 + $0x48] sm:$0xff]  }
  0x16   : > { %322 = vst [vmem:[#allocation2 + $0x20] sm:$0x1] %v321_v2  ;;  %354 = vst [vmem:[#allocation2 + $0x24] sm:$0x1] %v353_v17  ;;  %vm735_vm8 = vsmask.f32 7440 }
  0x17   : > { %3096 = vmatpush3.bf16.msra.mxu1 %v3406_v9  ;;  %v292_v35 = vmax.f32 %v284_v26, 0.0  ;;  %v293_v37 = vmax.f32 %v285_v28, 0.0  ;;  %v294_v53 = vmax.f32 %v286_v46, 0.0  ;;  %v295_v58 = vmax.f32 %v287_v51, 0.0  ;;  %v488_v23 = vld [vmem:[#allocation2 + $0xc] sm:$0x1]  ;;  %vm3684_vm9 = vmor %vm734_vm7, %vm735_vm8 }
  0x18   : > { %3097 = vmatprep.subr.bf16.mxu1 %v3408_v11  ;;  %3192 = vmatpush3.bf16.msra.mxu0 %v3411_v10  ;;  %v323_v46 = vld [vmem:[#allocation2 + $0x28] sm:$0x1]  ;;  %v2975_v61 = vld [vmem:[%s4187_s11 + $0x18] sm:$0xff]  }
  0x19   : > { %3193 = vmatprep.subr.bf16.mxu0 %v3413_v25  ;;  %v2910_v40 = vpack.c.bf16 %v292_v35, %v292_v35  ;;  %v2911_v42 = vpack.c.bf16 %v293_v37, %v293_v37  ;;  %v2912_v63 = vpack.c.bf16 %v294_v53, %v294_v53  ;;  %v2913_v7 = vpack.c.bf16 %v295_v58, %v295_v58  ;;  %v2971_v35 = vld [vmem:[%s3561_s14 + $0x10] sm:$0xff]  }
  0x1a   : > { %v2928_v39 = vunpack.c.l.bf16 %v2971_v35 }
  0x1b   : > { %3098 = vmatpush3.bf16.msra.mxu1 %v3408_v11  ;;  %v403_v49 = vshrl.u32 %v2910_v40, 16  ;;  %v406_v50 = vshll.u32 %v2910_v40, 16  ;;  %v411_v54 = vshrl.u32 %v2911_v42, 16  ;;  %v414_v55 = vshll.u32 %v2911_v42, 16  ;;  %v500_v33 = vld [vmem:[#allocation2 + $0x1c] sm:$0x1] }
  0x1c   : > { %3099 = vmatprep.subr.bf16.mxu1 %v3410_v24  ;;  %3194 = vmatpush3.bf16.msra.mxu0 %v3413_v25  ;;  %v419_v9 = vshrl.u32 %v2912_v63, 16  ;;  %v422_v10 = vshll.u32 %v2912_v63, 16  ;;  %v427_v18 = vshrl.u32 %v2913_v7, 16  ;;  %v430_v20 = vshll.u32 %v2913_v7, 16 }
  0x1d   : > { %v405_v57 = vrot.slane %v403_v49, 7  ;;  %3195 = vmatprep.subr.bf16.mxu0 %v3416_v41  ;;  %v413_v0 = vrot.slane %v411_v54, 7  ;;  %v503_v32 = vld [vmem:[#allocation2 + $0x20] sm:$0xf]  ;;  %v2929_v40 = vunpack.c.h.bf16 %v2971_v35  ;;  %v274_v51 = vmul.f32 %v2928_v39, %v3575_v12  ;;  %v506_v58 = vld [vmem:[#allocation2 + $0x24] sm:$0x1] }
  0x1e   : > { %v421_v21 = vrot.slane %v419_v9, 7  ;;  %v429_v27 = vrot.slane %v427_v18, 7 }
  0x1f   : > { %3100 = vmatpush3.bf16.msra.mxu1 %v3410_v24  ;;  %v408_v3 = vor.u32 %v406_v50, %v405_v57  ;;  %v409_v4 = vrot.slane %v405_v57, 4  ;;  %v416_v8 = vor.u32 %v414_v55, %v413_v0  ;;  %v417_v11 = vrot.slane %v413_v0, 4  ;;  %v494_v24 = vld [vmem:[#allocation2 + $0x14] sm:$0x1] }
  0x20   : > { %3101 = vmatprep.subr.bf16.mxu1 %v3412_v45  ;;  %3196 = vmatpush3.bf16.msra.mxu0 %v3416_v41  ;;  %v424_v28 = vor.u32 %v422_v10, %v421_v21  ;;  %v425_v29 = vrot.slane %v421_v21, 4  ;;  %v432_v30 = vor.u32 %v430_v20, %v429_v27  ;;  %v433_v37 = vrot.slane %v429_v27, 4  ;;  %v3420_v27 = vld [vmem:[%s4202_s2 + $0x50] sm:$0xff]  }
  0x21   : > { %v486_v14 = vsel %vm3637_vm6, %v408_v3, %v485_v62  ;;  %3197 = vmatprep.subr.bf16.mxu0 %v3419_v56  ;;  %v492_v22 = vsel %vm3637_vm6, %v416_v8, %v491_v1  ;;  %v489_v25 = vsel %vm3584_vm2, %v409_v4, %v488_v23  ;;  %v495_v26 = vsel %vm3584_vm2, %v417_v11, %v494_v24 }
  0x22   : > { %487 = vst [vmem:[#allocation2 + $0x8] sm:$0xf] %v486_v14  ;;  %493 = vst [vmem:[#allocation2 + $0x10] sm:$0xf] %v492_v22  ;;  %v498_v31 = vsel %vm3637_vm6, %v424_v28, %v497_v15  ;;  %v504_v34 = vsel %vm3637_vm6, %v432_v30, %v503_v32  ;;  %v501_v38 = vsel %vm3584_vm2, %v425_v29, %v500_v33  ;;  %v324_v11 = vsel %vm3584_vm2, 0, %v323_v46  ;;  %v3694_v14 = vld [vmem:[%s3561_s14 + $0x18] sm:$0xff]  }
  0x23   : > { %3102 = vmatpush3.bf16.msra.mxu1 %v3412_v45  ;;  %490 = vst [vmem:[#allocation2 + $0xc] sm:$0x1] %v489_v25  ;;  %496 = vst [vmem:[#allocation2 + $0x14] sm:$0x1] %v495_v26  ;;  %v275_v53 = vmul.f32 %v2929_v40, %v3575_v12  ;;  %v507_v6 = vsel %vm3584_vm2, %v433_v37, %v506_v58  ;;  %v288_v10 = vadd.f32 %v3580_v13, %v274_v51  ;;  %v326_v40 = vld [vmem:[#allocation2 + $0x30] sm:$0x1] }
  0x24   : > { %3111 = vmatprep.subr.bf16.mxu1 %v3630_v52  ;;  %3198 = vmatpush3.bf16.msra.mxu0 %v3419_v56  ;;  %499 = vst [vmem:[#allocation2 + $0x18] sm:$0xf] %v498_v31  ;;  %505 = vst [vmem:[#allocation2 + $0x20] sm:$0xf] %v504_v34  ;;  %v2932_v39 = vunpack.c.l.bf16 %v3694_v14  ;;  %v3424_v58 = vld [vmem:[%s4202_s2 + $0x60] sm:$0xff]  }
  0x25   : > { %3207 = vmatprep.subr.bf16.mxu0 %v3650_v16  ;;  %502 = vst [vmem:[#allocation2 + $0x1c] sm:$0x1] %v501_v38  ;;  %508 = vst [vmem:[#allocation2 + $0x24] sm:$0x1] %v507_v6  ;;  %v289_v15 = vadd.f32 %v3580_v13, %v275_v53  ;;  %v296_v34 = vmax.f32 %v288_v10, 0.0  ;;  %v3422_v38 = vld [vmem:[%s4202_s2 + $0x58] sm:$0xff]  }
  0x26   : > { %325 = vst [vmem:[#allocation2 + $0x28] sm:$0x1] %v324_v11  ;;  %v3423_v10 = vld [vmem:[%s4202_s2 + $0x148] sm:$0xff]  }
  0x29   : > { %v3414_v41 = vld [vmem:[#allocation2] ss:$8 sps:$4 sm:$0xff]   ;;  %v1388_v43 = vld [vmem:[#allocation2 + $0x10] sm:$0xf] }
  0x2a   : > { %v1386_v42 = vld [vmem:[#allocation2 + $0x8] sm:$0xf]  ;;  %3103 = vmatprep.mubr.bf16.mxu1 %v3414_v41  ;;  %v3669_v47 = vld [vmem:[#allocation2 + $0xc] sm:$0x1]  ;;  %v3671_v48 = vld [vmem:[#allocation2 + $0x14] sm:$0x1] }
  0x2b   : > { %v1403_v44 = vshrl.u32 %v1386_v42, 16  ;;  %v1406_v45 = vshll.u32 %v1386_v42, 16  ;;  %v1417_v49 = vshrl.u32 %v1388_v43, 16  ;;  %v1420_v50 = vshll.u32 %v1388_v43, 16  ;;  %v3417_v1 = vld [vmem:[#allocation2 + $0x10] ss:$8 sps:$4 sm:$0xff]  }
  0x2c   : > { %v1412_v56 = vshll.u32 %v3669_v47, 16  ;;  %v1426_v57 = vshll.u32 %v3671_v48, 16  ;;  %v1694_v63 = vrot.slane %v3669_v47, 5  ;;  %v1698_v0 = vrot.slane %v3671_v48, 5  ;;  %v1390_v8 = vld [vmem:[#allocation2 + $0x18] sm:$0xf]  ;;  %3104 = vmatmul.mubr.bf16.vlgmr.msra.gmra.mrb[0].mxu1 %v3417_v1 }
  0x2d   : > { %v1405_v54 = vrot.slane %v1403_v44, 4  ;;  %v1408_v55 = vrot.slane %v1406_v45, 5  ;;  %v1419_v60 = vrot.slane %v1417_v49, 4  ;;  %v1422_v62 = vrot.slane %v1420_v50, 5  ;;  %v1392_v9 = vld [vmem:[#allocation2 + $0x20] sm:$0xf]  ;;  %3112 = vmatpush3.bf16.msra.mxu1 %v3630_v52 }
  0x2e   : > { %v1414_v4 = vrot.slane %v1412_v56, 5  ;;  %v1428_v5 = vrot.slane %v1426_v57, 5  ;;  %v3697_v18 = vld [vmem:[#allocation2 + $0x1c] sm:$0x1]  ;;  %v1431_v20 = vshrl.u32 %v1390_v8, 16  ;;  %v1434_v21 = vshll.u32 %v1390_v8, 16  ;;  %3113 = vmatprep.subr.bf16.mxu1 %v3418_v59 }
  0x2f   : > { %v1409_v3 = vor.u32 %v1408_v55, %v1405_v54  ;;  %v1423_v7 = vor.u32 %v1422_v62, %v1419_v60  ;;  %v1445_v22 = vshrl.u32 %v1392_v9, 16  ;;  %v1440_v24 = vshll.u32 %v3697_v18, 16  ;;  %v329_v41 = vld [vmem:[#allocation2 + $0x38] sm:$0x1]  ;;  %v3715_v46 = vld [vmem:[#allocation2 + $0x24] sm:$0x1] }
  0x30   : > { %v1448_v25 = vshll.u32 %v1392_v9, 16  ;;  %v1702_v26 = vrot.slane %v3697_v18, 5  ;;  %v1433_v29 = vrot.slane %v1431_v20, 4  ;;  %v1436_v30 = vrot.slane %v1434_v21, 5  ;;  %v509_v60 = vld [vmem:[#allocation2 + $0x28] sm:$0xf] }
  0x31   : > { %v1410_v17 = vrot.slane %v1409_v3, 4  ;;  %v1424_v23 = vrot.slane %v1423_v7, 4  ;;  %v1447_v31 = vrot.slane %v1445_v22, 4  ;;  %v1442_v32 = vrot.slane %v1440_v24, 5  ;;  %3114 = vmatpush3.bf16.msra.mxu1 %v3418_v59  ;;  %v340_v3 = vld [vmem:[#allocation2 + $0x4] sm:$0x1] }
  0x32   : > { %v1450_v33 = vrot.slane %v1448_v25, 5  ;;  %v1437_v37 = vor.u32 %v1436_v30, %v1433_v29  ;;  %v2914_v43 = vpack.c.bf16 %v296_v34, %v296_v34  ;;  %v297_v44 = vmax.f32 %v289_v15, 0.0  ;;  %3115 = vmatprep.subr.bf16.mxu1 %v3420_v27  ;;  %v720_v8 = vld [vmem:[#allocation2 + $0x8] sm:$0xf]  ;;  %v355_v30 = vld [vmem:[#allocation2 + $0x2c] sm:$0x1] }
  0x33   : > { %v1415_v28 = vsel %vm3684_vm9, %v1410_v17, %v1414_v4  ;;  %v1429_v52 = vsel %vm3684_vm9, %v1424_v23, %v1428_v5  ;;  %v327_v45 = vsel %vm3584_vm2, 0, %v326_v40  ;;  %v276_v50 = vmul.f32 %v2932_v39, %v3575_v12  ;;  %v718_v4 = vld [vmem:[#allocation2] sm:$0xf]  ;;  %v3735_v17 = vld [vmem:[#allocation2 + $0xc] sm:$0x1] }
  0x34   : > { %v2765_v35 = vcombine.low %v1415_v28, %v1429_v52  ;;  %v1451_v42 = vor.u32 %v1450_v33, %v1447_v31  ;;  %v1438_v49 = vrot.slane %v1437_v37, 4  ;;  %328 = vst [vmem:[#allocation2 + $0x30] sm:$0x1] %v327_v45  ;;  %v330_v51 = vsel %vm3584_vm2, 0, %v329_v41  ;;  %v358_v31 = vld [vmem:[#allocation2 + $0x34] sm:$0x1] }
  0x35   : > { %v1454_v54 = vshll.u32 %v3715_v46, 16  ;;  %v435_v55 = vshrl.u32 %v2914_v43, 16  ;;  %v2933_v56 = vunpack.c.h.bf16 %v3694_v14  ;;  %331 = vst [vmem:[#allocation2 + $0x38] sm:$0x1] %v330_v51  ;;  %v438_v59 = vshll.u32 %v2914_v43, 16  ;;  %3116 = vmatpush3.bf16.msra.mxu1 %v3420_v27  ;;  %v3425_v37 = vld [vmem:[%s4202_s2 + $0x150] sm:$0xff]  }
  0x36   : > { %3199 = vmatprep.mubr.bf16.mxu0 %v2765_v35  ;;  %v1452_v53 = vrot.slane %v1451_v42, 4  ;;  %v1443_v57 = vsel %vm3684_vm9, %v1438_v49, %v1442_v32  ;;  %v290_v62 = vadd.f32 %v3580_v13, %v276_v50  ;;  %v2915_v1 = vpack.c.bf16 %v297_v44, %v297_v44  ;;  %3117 = vmatprep.subr.bf16.mxu1 %v3422_v38  ;;  %v3426_v39 = vld [vmem:[%s4202_s2 + $0x68] sm:$0xff]   ;;  %v3429_v50 = vld [vmem:[%s4202_s2 + $0x70] sm:$0xff]   ;;  %v3442_v18 = vld [vmem:[%s4202_s2 + $0xa0] sm:$0xff]  }
  0x37   : > { %v1456_v5 = vrot.slane %v1454_v54, 5  ;;  %v3728_v6 = vrot.slane %v435_v55, 7  ;;  %v341_v7 = vsel %vm3609_vm4, 0, %v340_v3  ;;  %v738_v9 = vshrl.u32 %v718_v4, 16  ;;  %v2049_v19 = vld [vmem:[#allocation2 + $0x10] sm:$0xf] }
  0x38   : > { %v298_v11 = vmax.f32 %v290_v62, 0.0  ;;  %v443_v14 = vshrl.u32 %v2915_v1, 16  ;;  %v446_v15 = vshll.u32 %v2915_v1, 16  ;;  %342 = vst [vmem:[#allocation2 + $0x4] sm:$0x1] %v341_v7  ;;  %v741_v20 = vshll.u32 %v718_v4, 16 }
  0x39   : > { %v1457_v21 = vsel %vm3684_vm9, %v1452_v53, %v1456_v5  ;;  %v1706_v22 = vrot.slane %v3715_v46, 5  ;;  %v440_v23 = vor.u32 %v438_v59, %v3728_v6  ;;  %v740_v24 = vrot.slane %v738_v9, 4  ;;  %3118 = vmatpush3.bf16.msra.mxu1 %v3422_v38  ;;  %v722_v1 = vld [vmem:[#allocation2 + $0x10] sm:$0xf]  ;;  %v3772_v7 = vld [vmem:[#allocation2 + $0x14] sm:$0x1] }
  0x3a   : > { %v2766_v25 = vcombine.low %v1443_v57, %v1457_v21  ;;  %v2916_v27 = vpack.c.bf16 %v298_v11, %v298_v11  ;;  %v3741_v28 = vrot.slane %v443_v14, 7  ;;  %v743_v29 = vrot.slane %v741_v20, 5  ;;  %3119 = vmatprep.subr.bf16.mxu1 %v3424_v58  ;;  %v3427_v11 = vld [vmem:[%s4202_s2 + $0x158] sm:$0xff]   ;;  %v3444_v46 = vld [vmem:[%s4202_s2 + $0xa8] sm:$0xff]   ;;  %v2333_v2 = vld [vmem:[#allocation2 + $0x20] sm:$0xe] }
  0x3b   : > { %v510_v52 = vsel %vm3637_vm6, %v440_v23, %v509_v60  ;;  %v515_v32 = vld [vmem:[#allocation2 + $0x30] sm:$0xf]  ;;  %v752_v33 = vshrl.u32 %v720_v8, 16  ;;  %v755_v34 = vshll.u32 %v720_v8, 16  ;;  %v761_v35 = vshll.u32 %v3735_v17, 16 }
  0x3c   : > { %3200 = vmatmul.mubr.bf16.vlgmr.msra.gmra.mrb[0].mxu0 %v2766_v25  ;;  %v441_v38 = vrot.slane %v3728_v6, 4  ;;  %511 = vst [vmem:[#allocation2 + $0x28] sm:$0xf] %v510_v52  ;;  %v448_v40 = vor.u32 %v446_v15, %v3741_v28  ;;  %v451_v41 = vshrl.u32 %v2916_v27, 16  ;;  %v454_v42 = vshll.u32 %v2916_v27, 16  ;;  %v3430_v27 = vld [vmem:[%s4202_s2 + $0x160] sm:$0xff]  }
  0x3d   : > { %3208 = vmatpush3.bf16.msra.mxu0 %v3650_v16  ;;  %v521_v43 = vld [vmem:[#allocation2 + $0x38] sm:$0xf]  ;;  %v744_v44 = vor.u32 %v743_v29, %v740_v24  ;;  %v754_v45 = vrot.slane %v752_v33, 4  ;;  %v757_v49 = vrot.slane %v755_v34, 5  ;;  %v356_v54 = vsel %vm3609_vm4, 0, %v355_v30  ;;  %3120 = vmatpush3.bf16.msra.mxu1 %v3424_v58 }
  0x3e   : > { %3209 = vmatprep.subr.bf16.mxu0 %v3423_v10  ;;  %v3758_v51 = vrot.slane %v451_v41, 7  ;;  %v516_v53 = vsel %vm3637_vm6, %v448_v40, %v515_v32  ;;  %v359_v16 = vsel %vm3609_vm4, 0, %v358_v31  ;;  %v277_v55 = vmul.f32 %v2933_v56, %v3575_v12  ;;  %357 = vst [vmem:[#allocation2 + $0x2c] sm:$0x1] %v356_v54  ;;  %3121 = vmatprep.subr.bf16.mxu1 %v3426_v39  ;;  %v724_v58 = vld [vmem:[#allocation2 + $0x18] sm:$0xf] }
  0x3f   : > { %v449_v57 = vrot.slane %v3741_v28, 4  ;;  %517 = vst [vmem:[#allocation2 + $0x30] sm:$0xf] %v516_v53  ;;  %v3768_v59 = vld [vmem:[#allocation2 + $0x4] sm:$0x1]  ;;  %v758_v60 = vor.u32 %v757_v49, %v754_v45  ;;  %v763_v62 = vrot.slane %v761_v35, 5 }
  0x40   : > { %360 = vst [vmem:[#allocation2 + $0x34] sm:$0x1] %v359_v16  ;;  %v456_v3 = vor.u32 %v454_v42, %v3758_v51  ;;  %v745_v4 = vrot.slane %v744_v44, 4  ;;  %v747_v5 = vshll.u32 %v3768_v59, 16  ;;  %v766_v56 = vshrl.u32 %v722_v1, 16  ;;  %v3432_v28 = vld [vmem:[%s4202_s2 + $0x78] sm:$0xff]  }
  0x41   : > { %3210 = vmatpush3.bf16.msra.mxu0 %v3423_v10  ;;  %v759_v12 = vrot.slane %v758_v60, 4  ;;  %v769_v8 = vshll.u32 %v722_v1, 16  ;;  %v775_v9 = vshll.u32 %v3772_v7, 16  ;;  %v780_v20 = vshrl.u32 %v724_v58, 16  ;;  %3122 = vmatpush3.bf16.msra.mxu1 %v3426_v39  ;;  %v3793_v52 = vld [vmem:[#allocation2 + $0x1c] sm:$0x1] }
  0x42   : > { %3211 = vmatprep.subr.bf16.mxu0 %v3425_v37  ;;  %v522_v14 = vsel %vm3637_vm6, %v456_v3, %v521_v43  ;;  %v749_v15 = vrot.slane %v747_v5, 5  ;;  %v783_v21 = vshll.u32 %v724_v58, 16  ;;  %v3783_v25 = vadd.f32 %v3580_v13, %v277_v55  ;;  %3123 = vmatprep.subr.bf16.mxu1 %v3429_v50  ;;  %v332_v39 = vld [vmem:[#allocation2 + $0x40] sm:$0x1]  ;;  %v361_v43 = vld [vmem:[#allocation2 + $0x3c] sm:$0x1] }
  0x43   : > { %v3428_v23 = vld [vmem:[#allocation2 + $0x20] ss:$8 sps:$4 sm:$0xff]   ;;  %523 = vst [vmem:[#allocation2 + $0x38] sm:$0xf] %v522_v14  ;;  %v764_v10 = vsel %vm3684_vm9, %v759_v12, %v763_v62  ;;  %v768_v32 = vrot.slane %v766_v56, 4  ;;  %v457_v13 = vrot.slane %v3758_v51, 4 }
  0x44   : > { %v1394_v24 = vld [vmem:[#allocation2 + $0x28] sm:$0xf]  ;;  %v750_v29 = vsel %vm3684_vm9, %v745_v4, %v749_v15  ;;  %3107 = vmatprep.mubr.bf16.mxu1 %v3428_v23  ;;  %v771_v33 = vrot.slane %v769_v8, 5  ;;  %v3796_v34 = vrot.slane %v775_v9, 5  ;;  %v782_v35 = vrot.slane %v780_v20, 4  ;;  %v3807_v16 = vld [vmem:[%s4202_s2 + $0x80] sm:$0xff]  }
  0x45   : > { %v1459_v30 = vshrl.u32 %v1394_v24, 16  ;;  %v1462_v31 = vshll.u32 %v1394_v24, 16  ;;  %3212 = vmatpush3.bf16.msra.mxu0 %v3425_v37  ;;  %v2673_v40 = vcombine.low %v750_v29, %v764_v10  ;;  %v512_v41 = vld [vmem:[#allocation2 + $0x2c] sm:$0x1]  ;;  %3124 = vmatpush3.bf16.msra.mxu1 %v3429_v50  ;;  %v364_v54 = vld [vmem:[#allocation2 + $0x44] sm:$0x1] }
  0x46   : > { %3213 = vmatprep.subr.bf16.mxu0 %v3427_v11  ;;  %v513_v44 = vsel %vm3584_vm2, %v441_v38, %v512_v41  ;;  %v1396_v45 = vld [vmem:[#allocation2 + $0x30] sm:$0xf]  ;;  %3125 = vmatprep.subr.bf16.mxu1 %v3432_v28  ;;  %v772_v55 = vor.u32 %v771_v33, %v768_v32  ;;  %v785_v60 = vrot.slane %v783_v21, 5  ;;  %v3433_v38 = vld [vmem:[%s4202_s2 + $0x168] sm:$0xff]   ;;  %v789_v62 = vshll.u32 %v3793_v52, 16 }
  0x47   : > { %v518_v42 = vld [vmem:[#allocation2 + $0x34] sm:$0x1]  ;;  %v1461_v49 = vrot.slane %v1459_v30, 4  ;;  %v1464_v53 = vrot.slane %v1462_v31, 5  ;;  %514 = vst [vmem:[#allocation2 + $0x2c] sm:$0x1] %v513_v44 }
  0x48   : > { %v519_v37 = vsel %vm3584_vm2, %v449_v57, %v518_v42  ;;  %v1473_v50 = vshrl.u32 %v1396_v45, 16  ;;  %v1476_v6 = vshll.u32 %v1396_v45, 16  ;;  %v299_v1 = vmax.f32 %v3783_v25, 0.0  ;;  %v3435_v30 = vld [vmem:[%s4202_s2 + $0x170] sm:$0xff]  }
  0x49   : > { %520 = vst [vmem:[#allocation2 + $0x34] sm:$0x1] %v519_v37  ;;  %3214 = vmatpush3.bf16.msra.mxu0 %v3427_v11  ;;  %v1465_v57 = vor.u32 %v1464_v53, %v1461_v49  ;;  %v333_v3 = vsel %vm3584_vm2, 0, %v332_v39  ;;  %v786_v12 = vor.u32 %v785_v60, %v782_v35  ;;  %3126 = vmatpush3.bf16.msra.mxu1 %v3432_v28  ;;  %v773_v8 = vrot.slane %v772_v55, 4  ;;  %v1668_v28 = vld [vmem:[#allocation2 + $0x8] sm:$0xe] }
  0x4a   : > { %3215 = vmatprep.subr.bf16.mxu0 %v3430_v27  ;;  %v3431_v4 = vld [vmem:[#allocation2 + $0x30] ss:$8 sps:$4 sm:$0xff]   ;;  %v1475_v5 = vrot.slane %v1473_v50, 4  ;;  %v1478_v58 = vrot.slane %v1476_v6, 5  ;;  %334 = vst [vmem:[#allocation2 + $0x40] sm:$0x1] %v333_v3  ;;  %3135 = vmatprep.subr.bf16.mxu1 %v3807_v16  ;;  %v2917_v23 = vpack.c.bf16 %v299_v1, %v299_v1 }
  0x4b   : > { %v1466_v56 = vrot.slane %v1465_v57, 4  ;;  %v791_v9 = vrot.slane %v789_v62, 5  ;;  %v362_v11 = vsel %vm3609_vm4, 0, %v361_v43  ;;  %v1398_v14 = vld [vmem:[#allocation2 + $0x38] sm:$0xf]  ;;  %3108 = vmatmul.mubr.bf16.gmra.mrb[4].mxu1 %v3431_v4  ;;  %v787_v20 = vrot.slane %v786_v12, 4 }
  0x4c   : > { %v1479_v15 = vor.u32 %v1478_v58, %v1475_v5  ;;  %363 = vst [vmem:[#allocation2 + $0x3c] sm:$0x1] %v362_v11  ;;  %v365_v21 = vsel %vm3609_vm4, 0, %v364_v54  ;;  %3127 = vmatprep.mubr.bf16.mxu1 %v2673_v40  ;;  %v778_v10 = vsel %vm3684_vm9, %v773_v8, %v3796_v34  ;;  %v1487_v24 = vshrl.u32 %v1398_v14, 16  ;;  %v1669_v33 = vld [vmem:[#allocation2 + $0x10] sm:$0xe] }
  0x4d   : > { %3216 = vmatpush3.bf16.msra.mxu0 %v3430_v27  ;;  %366 = vst [vmem:[#allocation2 + $0x44] sm:$0x1] %v365_v21  ;;  %v1490_v25 = vshll.u32 %v1398_v14, 16  ;;  %v792_v31 = vsel %vm3684_vm9, %v787_v20, %v791_v9  ;;  %v459_v32 = vshrl.u32 %v2917_v23, 16  ;;  %v462_v27 = vshll.u32 %v2917_v23, 16  ;;  %v3436_v49 = vld [vmem:[%s4202_s2 + $0x88] sm:$0xff]  }
  0x4e   : > { %3217 = vmatprep.subr.bf16.mxu0 %v3433_v38  ;;  %v1480_v29 = vrot.slane %v1479_v15, 4  ;;  %v3829_v35 = vld [vmem:[#allocation2 + $0x2c] sm:$0x1]  ;;  %v1489_v34 = vrot.slane %v1487_v24, 4  ;;  %v2674_v43 = vcombine.low %v778_v10, %v792_v31  ;;  %v2777_v53 = vrot.slane %v1668_v28, 9  ;;  %v3437_v60 = vld [vmem:[%s4202_s2 + $0x178] sm:$0xff]  }
  0x4f   : > { %v1492_v40 = vrot.slane %v1490_v25, 5  ;;  %v1468_v41 = vshll.u32 %v3829_v35, 16  ;;  %v461_v44 = vrot.slane %v459_v32, 7  ;;  %v1670_v57 = vld [vmem:[#allocation2 + $0x18] sm:$0xe]  ;;  %v3438_v9 = vld [vmem:[%s4202_s2 + $0x90] sm:$0xff]  }
  0x50   : > { %v3831_v39 = vld [vmem:[#allocation2 + $0x34] sm:$0x1]  ;;  %v3843_v3 = vld [vmem:[#allocation2 + $0x20] sm:$0xe]  ;;  %v3880_v20 = vsel %vm3868_vm12, %v2777_v53, %v1694_v63  ;;  %v3888_v23 = vld [vmem:[#allocation2 + $0x24] sm:$0x1] }
  0x51   : > { %v1482_v42 = vshll.u32 %v3831_v39, 16  ;;  %3218 = vmatpush3.bf16.msra.mxu0 %v3433_v38  ;;  %v527_v37 = vld [vmem:[#allocation2 + $0x40] sm:$0xf]  ;;  %v1493_v45 = vor.u32 %v1492_v40, %v1489_v34  ;;  %v1470_v54 = vrot.slane %v1468_v41, 5  ;;  %v464_v6 = vor.u32 %v462_v27, %v461_v44  ;;  %v728_v10 = vld [vmem:[#allocation2 + $0x28] sm:$0xf] }
  0x52   : > { %3219 = vmatprep.subr.bf16.mxu0 %v3435_v30  ;;  %v465_v55 = vrot.slane %v461_v44, 4  ;;  %v2778_v38 = vrot.slane %v1669_v33, 9  ;;  %v2780_v14 = vrot.slane %v3843_v3, 9  ;;  %v726_v15 = vld [vmem:[#allocation2 + $0x20] sm:$0xf]  ;;  %v803_v28 = vshll.u32 %v3888_v23, 16 }
  0x53   : > { %v1484_v50 = vrot.slane %v1482_v42, 5  ;;  %v524_v62 = vld [vmem:[#allocation2 + $0x3c] sm:$0x1]  ;;  %v3841_v1 = vrot.slane %v1493_v45, 4  ;;  %v1471_v4 = vsel %vm3684_vm9, %v1466_v56, %v1470_v54  ;;  %3128 = vmatmul.mubr.bf16.vlgmr.msra.gmra.mrb[0].mxu1 %v2674_v43  ;;  %v528_v12 = vsel %vm3637_vm6, %v464_v6, %v527_v37  ;;  %v3861_v56 = vld [vmem:[%s4202_s2 + $0x180] sm:$0xff]  }
  0x54   : > { %v525_v58 = vsel %vm3584_vm2, %v457_v13, %v524_v62  ;;  %v530_v8 = vld [vmem:[#allocation2 + $0x44] sm:$0x1]  ;;  %3136 = vmatpush3.bf16.msra.mxu1 %v3807_v16  ;;  %529 = vst [vmem:[#allocation2 + $0x40] sm:$0xf] %v528_v12  ;;  %v2779_v13 = vrot.slane %v1670_v57, 9  ;;  %v3440_v16 = vld [vmem:[%s4202_s2 + $0x98] sm:$0xff]   ;;  %v3886_v21 = vsel %vm3868_vm12, %v2778_v38, %v1698_v0 }
  0x55   : > { %v1485_v5 = vsel %vm3684_vm9, %v1480_v29, %v1484_v50  ;;  %526 = vst [vmem:[#allocation2 + $0x3c] sm:$0x1] %v525_v58  ;;  %v531_v51 = vsel %vm3584_vm2, %v465_v55, %v530_v8  ;;  %3220 = vmatpush3.bf16.msra.mxu0 %v3435_v30  ;;  %3137 = vmatprep.subr.bf16.mxu1 %v3436_v49  ;;  %v3890_v24 = vld [vmem:[#allocation2 + $0x2c] sm:$0x1]  ;;  %v794_v25 = vshrl.u32 %v726_v15, 16  ;;  %v797_v47 = vshll.u32 %v726_v15, 16 }
  0x56   : > { %v2767_v11 = vcombine.low %v1471_v4, %v1485_v5  ;;  %532 = vst [vmem:[#allocation2 + $0x44] sm:$0x1] %v531_v51  ;;  %3221 = vmatprep.subr.bf16.mxu0 %v3437_v60  ;;  %v808_v63 = vshrl.u32 %v728_v10, 16  ;;  %v811_v29 = vshll.u32 %v728_v10, 16  ;;  %v817_v48 = vshll.u32 %v3890_v24, 16 }
  0x57   : > { %v2801_v31 = vcombine.low %v3880_v20, %v3886_v21  ;;  %v3903_v32 = vsel %vm3868_vm12, %v2779_v13, %v1702_v26  ;;  %v796_v27 = vrot.slane %v794_v25, 4  ;;  %v799_v33 = vrot.slane %v797_v47, 5  ;;  %v730_v6 = vld [vmem:[#allocation2 + $0x30] sm:$0xf]  ;;  %v3918_v38 = vld [vmem:[#allocation2 + $0x34] sm:$0x1] }
  0x58   : > { %3203 = vmatprep.mubr.bf16.mxu0 %v2767_v11  ;;  %3138 = vmatpush3.bf16.msra.mxu1 %v3436_v49  ;;  %v805_v43 = vrot.slane %v803_v28, 5  ;;  %v810_v26 = vrot.slane %v808_v63, 4  ;;  %v813_v45 = vrot.slane %v811_v29, 5  ;;  %v819_v50 = vrot.slane %v817_v48, 5  ;;  %v732_v3 = vld [vmem:[#allocation2 + $0x38] sm:$0xf] }
  0x59   : > { %3222 = vmatpush3.bf16.msra.mxu0 %v3437_v60  ;;  %3139 = vmatprep.subr.bf16.mxu1 %v3438_v9  ;;  %v800_v37 = vor.u32 %v799_v33, %v796_v27  ;;  %v3916_v60 = vsel %vm3868_vm12, %v2780_v14, %v1706_v22  ;;  %v822_v12 = vshrl.u32 %v730_v6, 16  ;;  %v825_v8 = vshll.u32 %v730_v6, 16  ;;  %v1004_v27 = vld [vmem:[#allocation2 + $0x8] sm:$0xe] }
  0x5a   : > { %3231 = vmatprep.subr.bf16.mxu0 %v3861_v56  ;;  %v814_v62 = vor.u32 %v813_v45, %v810_v26  ;;  %v831_v11 = vshll.u32 %v3918_v38, 16  ;;  %v836_v51 = vshrl.u32 %v732_v3, 16  ;;  %v2686_v26 = vrot.slane %v1004_v27, 9  ;;  %v3448_v45 = vld [vmem:[%s4202_s2 + $0xb8] sm:$0xff]  }
  0x5b   : > { %v1400_v0 = vld [vmem:[#allocation2 + $0x40] sm:$0xf]  ;;  %v801_v57 = vrot.slane %v800_v37, 4  ;;  %v827_v14 = vrot.slane %v825_v8, 5  ;;  %v1040_v20 = vrot.slane %v3772_v7, 5  ;;  %v1044_v7 = vrot.slane %v3793_v52, 5 }
  0x5c   : > { %v3895_v30 = vld [vmem:[#allocation2 + $0x3c] sm:$0x1]  ;;  %v1501_v41 = vshrl.u32 %v1400_v0, 16  ;;  %v1504_v42 = vshll.u32 %v1400_v0, 16  ;;  %3140 = vmatpush3.bf16.msra.mxu1 %v3438_v9  ;;  %v815_v9 = vrot.slane %v814_v62, 4  ;;  %v833_v10 = vrot.slane %v831_v11, 5 }
  0x5d   : > { %v3905_v34 = vld [vmem:[#allocation2 + $0x44] sm:$0x1]  ;;  %v1496_v40 = vshll.u32 %v3895_v30, 16  ;;  %3141 = vmatprep.subr.bf16.mxu1 %v3440_v16  ;;  %v3923_v58 = vld [vmem:[#allocation2 + $0x3c] sm:$0x1]  ;;  %v806_v22 = vsel %vm3684_vm9, %v801_v57, %v805_v43  ;;  %v838_v25 = vrot.slane %v836_v51, 4  ;;  %v2802_v62 = vcombine.low %v3903_v32, %v3916_v60 }
  0x5e   : > { %v1510_v44 = vshll.u32 %v3905_v34, 16  ;;  %v1503_v53 = vrot.slane %v1501_v41, 4  ;;  %v1506_v54 = vrot.slane %v1504_v42, 5  ;;  %v820_v15 = vsel %vm3684_vm9, %v815_v9, %v819_v50  ;;  %v1003_v0 = vld [vmem:[#allocation2] sm:$0xe]  ;;  %v3441_v32 = vld [vmem:[%s4202_s2 + $0x188] sm:$0xff]  }
  0x5f   : > { %v1498_v49 = vrot.slane %v1496_v40, 5  ;;  %v845_v47 = vshll.u32 %v3923_v58, 16  ;;  %v2675_v63 = vcombine.low %v806_v22, %v820_v15  ;;  %v3446_v40 = vld [vmem:[%s4202_s2 + $0xb0] sm:$0xff]   ;;  %v2685_v42 = vrot.slane %v1003_v0, 9  ;;  %v1674_v8 = vld [vmem:[#allocation2 + $0x38] sm:$0xe] }
  0x60   : > { %v1512_v55 = vrot.slane %v1510_v44, 5  ;;  %v1507_v5 = vor.u32 %v1506_v54, %v1503_v53  ;;  %3142 = vmatpush3.bf16.msra.mxu1 %v3440_v16  ;;  %v839_v16 = vshll.u32 %v732_v3, 16  ;;  %v1032_v43 = vrot.slane %v3768_v59, 5  ;;  %v1672_v53 = vld [vmem:[#allocation2 + $0x28] sm:$0xe] }
  0x61   : > { %v1499_v4 = vsel %vm3684_vm9, %v3841_v1, %v1498_v49  ;;  %3143 = vmatprep.subr.bf16.mxu1 %v3442_v18  ;;  %v824_v1 = vrot.slane %v822_v12, 4  ;;  %v847_v41 = vrot.slane %v845_v47, 5  ;;  %3131 = vmatprep.mubr.bf16.mxu1 %v2675_v63  ;;  %v1673_v54 = vld [vmem:[#allocation2 + $0x30] sm:$0xe]  ;;  %v1710_v50 = vrot.slane %v3829_v35, 5  ;;  %v3452_v47 = vld [vmem:[%s4202_s2 + $0xc8] sm:$0xff]  }
  0x62   : > { %v1508_v13 = vrot.slane %v1507_v5, 4  ;;  %v841_v48 = vrot.slane %v839_v16, 5  ;;  %v1033_v49 = vsel %vm3868_vm12, %v2685_v42, %v1032_v43  ;;  %v1714_v59 = vrot.slane %v3831_v39, 5  ;;  %v1005_v39 = vld [vmem:[#allocation2 + $0x10] sm:$0xe] }
  0x63   : > { %v828_v29 = vor.u32 %v827_v14, %v824_v1  ;;  %v2781_v57 = vrot.slane %v1672_v53, 9  ;;  %v2782_v3 = vrot.slane %v1673_v54, 9  ;;  %v2687_v5 = vrot.slane %v1005_v39, 9  ;;  %v3454_v63 = vld [vmem:[%s4202_s2 + $0xd0] sm:$0xff]   ;;  %v3449_v53 = vld [vmem:[%s4202_s2 + $0x1a8] sm:$0xff]  }
  0x64   : > { %v1513_v28 = vsel %vm3684_vm9, %v1508_v13, %v1512_v55  ;;  %3144 = vmatpush3.bf16.msra.mxu1 %v3442_v18  ;;  %v842_v37 = vor.u32 %v841_v48, %v838_v25  ;;  %v1036_v18 = vrot.slane %v3735_v17, 5  ;;  %v2783_v9 = vrot.slane %v1674_v8, 9  ;;  %v3450_v13 = vld [vmem:[%s4202_s2 + $0xc0] sm:$0xff]   ;;  %v3445_v25 = vld [vmem:[%s4202_s2 + $0x198] sm:$0xff]  }
  0x65   : > { %v2768_v33 = vcombine.low %v1499_v4, %v1513_v28  ;;  %3145 = vmatprep.subr.bf16.mxu1 %v3444_v46  ;;  %v829_v44 = vrot.slane %v828_v29, 4  ;;  %v1006_v4 = vld [vmem:[#allocation2 + $0x18] sm:$0xe]  ;;  %v1715_v22 = vsel %vm3868_vm12, %v2782_v3, %v1714_v59  ;;  %v1718_v11 = vrot.slane %v3895_v30, 5  ;;  %v1007_v48 = vld [vmem:[#allocation2 + $0x20] sm:$0xe] }
  0x66   : > { %v843_v6 = vrot.slane %v842_v37, 4  ;;  %v1037_v55 = vsel %vm3868_vm12, %v2686_v26, %v1036_v18  ;;  %v2688_v12 = vrot.slane %v1006_v4, 9  ;;  %v1722_v1 = vrot.slane %v3905_v34, 5  ;;  %v3443_v34 = vld [vmem:[%s4202_s2 + $0x190] sm:$0xff]   ;;  %v3458_v18 = vld [vmem:[%s4202_s2 + $0xd8] sm:$0xff]   ;;  %v3460_v59 = vld [vmem:[%s4202_s2 + $0xe0] sm:$0xff]  }
  0x67   : > { %3204 = vmatmul.mubr.bf16.gmra.mrb[4].mxu0 %v2768_v33  ;;  %v834_v17 = vsel %vm3684_vm9, %v829_v44, %v833_v10  ;;  %v2709_v35 = vcombine.low %v1033_v49, %v1037_v55  ;;  %v1041_v16 = vsel %vm3868_vm12, %v2687_v5, %v1040_v20  ;;  %v1719_v30 = vsel %vm3868_vm12, %v2783_v9, %v1718_v11  ;;  %v3455_v28 = vld [vmem:[#allocation2 + $0x10] ss:$8 sps:$4 sm:$0xff]   ;;  %v1008_v33 = vld [vmem:[#allocation2 + $0x28] sm:$0xe]  ;;  %v4031_v39 = vld [vmem:[#allocation2 + $0x1c] sm:$0x1] }
  0x68   : > { %3223 = vmatprep.mubr.bf16.mxu0 %v2801_v31  ;;  %3146 = vmatpush3.bf16.msra.mxu1 %v3444_v46  ;;  %v848_v21 = vsel %vm3684_vm9, %v843_v6, %v847_v41  ;;  %v1711_v31 = vsel %vm3868_vm12, %v2781_v57, %v1710_v50  ;;  %v1675_v46 = vld [vmem:[#allocation2 + $0x40] sm:$0xe]  ;;  %v1045_v52 = vsel %vm3868_vm12, %v2688_v12, %v1044_v7  ;;  %v1048_v29 = vrot.slane %v3888_v23, 5  ;;  %v1009_v41 = vld [vmem:[#allocation2 + $0x30] sm:$0xe]  ;;  %v3462_v57 = vld [vmem:[%s4202_s2 + $0xe8] sm:$0xff]  }
  0x69   : > { %3147 = vmatprep.subr.bf16.mxu1 %v3446_v40  ;;  %v2676_v60 = vcombine.low %v834_v17, %v848_v21  ;;  %v2784_v51 = vrot.slane %v1675_v46, 9  ;;  %v2803_v14 = vcombine.low %v1711_v31, %v1715_v22  ;;  %v2710_v10 = vcombine.low %v1041_v16, %v1045_v52  ;;  %v1010_v44 = vld [vmem:[#allocation2 + $0x38] sm:$0xe]  ;;  %v3447_v23 = vld [vmem:[%s4202_s2 + $0x1a0] sm:$0xff]   ;;  %v3468_v50 = vld [vmem:[#allocation2 + $0x8] ss:$8 sps:$4 sm:$0xff]  }
  0x6a   : > { %v1052_v0 = vrot.slane %v3890_v24, 5  ;;  %v1056_v27 = vrot.slane %v3918_v38, 5  ;;  %v1060_v42 = vrot.slane %v3923_v58, 5  ;;  %v2690_v43 = vrot.slane %v1008_v33, 9  ;;  %v335_v17 = vld [vmem:[#allocation2 + $0x48] sm:$0x1] }
  0x6b   : > { %3132 = vmatmul.mubr.bf16.gmra.mrb[4].mxu1 %v2676_v60  ;;  %v1723_v15 = vsel %vm3868_vm12, %v2784_v51, %v1722_v1  ;;  %v2691_v37 = vrot.slane %v1009_v41, 9  ;;  %v2692_v38 = vrot.slane %v1010_v44, 9  ;;  %v336_v6 = vsel %vm3584_vm2, 0, %v335_v17  ;;  %v3451_v55 = vld [vmem:[%s4202_s2 + $0x1b0] sm:$0xff]   ;;  %v2051_v3 = vld [vmem:[#allocation2 + $0x18] sm:$0xf] }
  0x6c   : > { %3148 = vmatpush3.bf16.msra.mxu1 %v3446_v40  ;;  %3151 = vmatprep.mubr.bf16.mxu1 %v2709_v35  ;;  %v2689_v40 = vrot.slane %v1007_v48, 9  ;;  %v1053_v26 = vsel %vm3868_vm12, %v2690_v43, %v1052_v0  ;;  %337 = vst [vmem:[#allocation2 + $0x48] sm:$0x1] %v336_v6  ;;  %v4029_v35 = vld [vmem:[#allocation2 + $0x14] sm:$0x1]  ;;  %v2066_v4 = vshrl.u32 %v2049_v19, 16 }
  0x6d   : > { %3149 = vmatprep.subr.bf16.mxu1 %v3448_v45  ;;  %v1057_v58 = vsel %vm3868_vm12, %v2691_v37, %v1056_v27  ;;  %v1061_v49 = vsel %vm3868_vm12, %v2692_v38, %v1060_v42  ;;  %v2069_v20 = vshll.u32 %v2049_v19, 16  ;;  %v2080_v21 = vshrl.u32 %v2051_v3, 16  ;;  %v3464_v31 = vld [vmem:[%s4202_s2 + $0xf0] sm:$0xff]   ;;  %v3456_v46 = vld [vmem:[%s4202_s2 + $0x1c0] sm:$0xff]   ;;  %v3466_v51 = vld [vmem:[%s4202_s2 + $0xf8] sm:$0xff]  }
  0x6e   : > { %v1049_v24 = vsel %vm3868_vm12, %v2689_v40, %v1048_v29  ;;  %v2712_v54 = vcombine.low %v1057_v58, %v1061_v49  ;;  %v2083_v5 = vshll.u32 %v2051_v3, 16  ;;  %v2068_v12 = vrot.slane %v2066_v4, 4  ;;  %v3457_v11 = vld [vmem:[#allocation2 + $0x20] ss:$8 sps:$4 sm:$0xff]   ;;  %v3463_v41 = vld [vmem:[%s4202_s2 + $0x1d8] sm:$0xff]   ;;  %v4074_v38 = vld [vmem:[%s4202_s2 + $0x210] sm:$0xff]  }
  0x6f   : > { %3224 = vmatmul.mubr.bf16.vlgmr.msra.gmra.mrb[0].mxu0 %v2802_v62  ;;  %v3453_v62 = vld [vmem:[%s4202_s2 + $0x1b8] sm:$0xff]   ;;  %v2071_v8 = vrot.slane %v2069_v20, 5  ;;  %v2082_v60 = vrot.slane %v2080_v21, 4  ;;  %v2089_v7 = vshll.u32 %v4031_v39, 16  ;;  %v3459_v1 = vld [vmem:[%s4202_s2 + $0x1c8] sm:$0xff]  }
  0x70   : > { %3232 = vmatpush3.bf16.msra.mxu0 %v3861_v56  ;;  %3150 = vmatpush3.bf16.msra.mxu1 %v3448_v45  ;;  %v2804_v56 = vcombine.low %v1719_v30, %v1723_v15  ;;  %v2711_v45 = vcombine.low %v1049_v24, %v1053_v26  ;;  %v2085_v22 = vrot.slane %v2083_v5, 5  ;;  %v4062_v29 = vld [vmem:[%s4202_s2 + $0x208] sm:$0xff]   ;;  %v2057_v43 = vld [vmem:[#allocation2 + $0x30] sm:$0xf]  ;;  %v2059_v37 = vld [vmem:[#allocation2 + $0x38] sm:$0xf] }
  0x71   : > { %3233 = vmatprep.subr.bf16.mxu0 %v3441_v32  ;;  %3159 = vmatprep.subr.bf16.mxu1 %v3450_v13  ;;  %v2072_v9 = vor.u32 %v2071_v8, %v2068_v12  ;;  %v2091_v15 = vrot.slane %v2089_v7, 5  ;;  %v3476_v48 = vld [vmem:[#allocation2 + $0x28] ss:$8 sps:$4 sm:$0xff]   ;;  %v3465_v26 = vld [vmem:[%s4202_s2 + $0x1e0] sm:$0xff]   ;;  %v4082_v49 = vld [vmem:[#allocation2 + $0x3c] sm:$0x1] }
  0x72   : > { %3227 = vmatprep.mubr.bf16.mxu0 %v2803_v14  ;;  %v3469_v14 = vld [vmem:[#allocation2 + $0x30] ss:$8 sps:$4 sm:$0xff]   ;;  %v2055_v27 = vld [vmem:[#allocation2 + $0x28] sm:$0xf]  ;;  %v4084_v17 = vld [vmem:[#allocation2 + $0x24] sm:$0x1] }
  0x73   : > { %3152 = vmatmul.mubr.bf16.vlgmr.msra.gmra.mrb[0].mxu1 %v2710_v10  ;;  %v2073_v16 = vrot.slane %v2072_v9, 4  ;;  %v2053_v10 = vld [vmem:[#allocation2 + $0x20] sm:$0xf]  ;;  %v2111_v24 = vshll.u32 %v2055_v27, 16  ;;  %v2335_v6 = vld [vmem:[#allocation2 + $0x30] sm:$0xe] }
  0x74   : > { %3234 = vmatpush3.bf16.msra.mxu0 %v3441_v32  ;;  %3160 = vmatpush3.bf16.msra.mxu1 %v3450_v13  ;;  %v2075_v32 = vshll.u32 %v4029_v35, 16  ;;  %v2086_v13 = vor.u32 %v2085_v22, %v2082_v60  ;;  %v3471_v0 = vld [vmem:[#allocation2 + $0x40] ss:$8 sps:$4 sm:$0xff]   ;;  %v2094_v33 = vshrl.u32 %v2053_v10, 16  ;;  %v2097_v40 = vshll.u32 %v2053_v10, 16  ;;  %v4093_v4 = vld [vmem:[%s4202_s2 + $0x218] sm:$0xff]  }
  0x75   : > { %3235 = vmatprep.subr.bf16.mxu0 %v3443_v34  ;;  %3161 = vmatprep.subr.bf16.mxu1 %v3452_v47  ;;  %v3477_v36 = vld [vmem:[#allocation2 + $0x38] ss:$8 sps:$4 sm:$0xff]   ;;  %v2113_v3 = vrot.slane %v2111_v24, 5  ;;  %v2873_v20 = vrot.slane %v2335_v6, 9  ;;  %v4098_v5 = vld [vmem:[#allocation2 + $0x2c] sm:$0x1] }
  0x76   : > { %3155 = vmatprep.mubr.bf16.mxu1 %v2711_v45  ;;  %v2077_v52 = vrot.slane %v2075_v32, 5  ;;  %v2087_v30 = vrot.slane %v2086_v13, 4  ;;  %v2096_v58 = vrot.slane %v2094_v33, 4  ;;  %v4080_v45 = vld [vmem:[#allocation2 + $0x34] sm:$0x1]  ;;  %v2103_v9 = vshll.u32 %v4084_v17, 16 }
  0x77   : > { %3228 = vmatmul.mubr.bf16.gmra.mrb[4].mxu0 %v2804_v56  ;;  %v3470_v56 = vld [vmem:[#allocation2 + $0x18] ss:$8 sps:$4 sm:$0xff]   ;;  %v2063_v22 = vld [vmem:[#allocation2 + $0x48] sm:$0xf] }
  0x78   : > { %3236 = vmatpush3.bf16.msra.mxu0 %v3443_v34  ;;  %3247 = vmatprep.mubr.bf16.mxu0 %v3455_v28  ;;  %v4050_v34 = vld [vmem:[%s4202_s2 + $0x200] sm:$0xff]   ;;  %v2092_v28 = vsel %vm3684_vm9, %v2087_v30, %v2091_v15  ;;  %v2164_v15 = vshrl.u32 %v2063_v22, 16  ;;  %v2167_v10 = vshll.u32 %v2063_v22, 16 }
  0x79   : > { %3237 = vmatprep.subr.bf16.mxu0 %v3445_v25  ;;  %3162 = vmatpush3.bf16.msra.mxu1 %v3452_v47  ;;  %v2078_v47 = vsel %vm3684_vm9, %v2073_v16, %v2077_v52  ;;  %v2061_v60 = vld [vmem:[#allocation2 + $0x40] sm:$0xf] }
  0x7a   : > { %3163 = vmatprep.subr.bf16.mxu1 %v3454_v63  ;;  %v2857_v42 = vcombine.low %v2078_v47, %v2092_v28  ;;  %v2150_v52 = vshrl.u32 %v2061_v60, 16  ;;  %v2153_v30 = vshll.u32 %v2061_v60, 16  ;;  %v2131_v47 = vshll.u32 %v4080_v45, 16  ;;  %v3483_v60 = vld [vmem:[%s4202_s2 + $0x238] sm:$0xff]  }
  0x7b   : > { %3156 = vmatmul.mubr.bf16.gmra.mrb[4].mxu1 %v2712_v54  ;;  %v2125_v54 = vshll.u32 %v2057_v43, 16 }
  0x7c   : > { %3238 = vmatpush3.bf16.msra.mxu0 %v3445_v25  ;;  %3175 = vmatprep.mubr.bf16.mxu1 %v3468_v50  ;;  %v3461_v25 = vld [vmem:[%s4202_s2 + $0x1d0] sm:$0xff]   ;;  %v2136_v50 = vshrl.u32 %v2059_v37, 16 }
  0x7d   : > { %3239 = vmatprep.subr.bf16.mxu0 %v3447_v23  ;;  %3164 = vmatpush3.bf16.msra.mxu1 %v3454_v63  ;;  %v367_v63 = vld [vmem:[#allocation2 + $0x4c] sm:$0x1]  ;;  %v2127_v8 = vrot.slane %v2125_v54, 5  ;;  %v4135_v54 = vld [vmem:[%s4202_s2 + $0x230] sm:$0xff]  }
  0x7e   : > { %3165 = vmatprep.subr.bf16.mxu1 %v3458_v18  ;;  %v368_v44 = vsel %vm3609_vm4, 0, %v367_v63  ;;  %v2145_v63 = vshll.u32 %v4082_v49, 16 }
  0x7f   : > { %369 = vst [vmem:[#allocation2 + $0x4c] sm:$0x1] %v368_v44  ;;  %v2155_v44 = vrot.slane %v2153_v30, 5 }
  0x80   : > { %3240 = vmatpush3.bf16.msra.mxu0 %v3447_v23  ;;  %v2108_v23 = vshrl.u32 %v2055_v27, 16  ;;  %v2105_v27 = vrot.slane %v2103_v9, 5 }
  0x81   : > { %3241 = vmatprep.subr.bf16.mxu0 %v3449_v53  ;;  %3166 = vmatpush3.bf16.msra.mxu1 %v3458_v18  ;;  %v2099_v18 = vrot.slane %v2097_v40, 5 }
  0x82   : > { %3167 = vmatprep.subr.bf16.mxu1 %v3460_v59  ;;  %v2110_v19 = vrot.slane %v2108_v23, 4  ;;  %v2169_v23 = vrot.slane %v2167_v10, 5 }
  0x84   : > { %3242 = vmatpush3.bf16.msra.mxu0 %v3449_v53  ;;  %v2122_v53 = vshrl.u32 %v2057_v43, 16  ;;  %v2114_v13 = vor.u32 %v2113_v3, %v2110_v19  ;;  %v2152_v43 = vrot.slane %v2150_v52, 4 }
  0x85   : > { %3243 = vmatprep.subr.bf16.mxu0 %v3451_v55  ;;  %3168 = vmatpush3.bf16.msra.mxu1 %v3460_v59  ;;  %v2139_v59 = vshll.u32 %v2059_v37, 16  ;;  %v2166_v37 = vrot.slane %v2164_v15, 4 }
  0x86   : > { %3169 = vmatprep.subr.bf16.mxu1 %v3462_v57  ;;  %v2124_v12 = vrot.slane %v2122_v53, 4  ;;  %v2115_v33 = vrot.slane %v2114_v13, 4  ;;  %v2156_v6 = vor.u32 %v2155_v44, %v2152_v43  ;;  %v2357_v13 = vrot.slane %v4029_v35, 5  ;;  %v2974_v43 = vld [vmem:[%s4187_s11 + $0x10] sm:$0xff]  }
  0x87   : > { %v2141_v32 = vrot.slane %v2139_v59, 5  ;;  %v2948_v44 = vunpack.c.l.bf16 %v2975_v61 }
  0x88   : > { %3244 = vmatpush3.bf16.msra.mxu0 %v3451_v55  ;;  %v2336_v55 = vld [vmem:[#allocation2 + $0x38] sm:$0xe] }
  0x89   : > { %3245 = vmatprep.subr.bf16.mxu0 %v3453_v62  ;;  %3170 = vmatpush3.bf16.msra.mxu1 %v3462_v57  ;;  %v2373_v57 = vrot.slane %v4080_v45, 5  ;;  %v2874_v21 = vrot.slane %v2336_v55, 9  ;;  %v2337_v45 = vld [vmem:[#allocation2 + $0x40] sm:$0xe]  ;;  %v2170_v55 = vor.u32 %v2169_v23, %v2166_v37  ;;  %v2944_v37 = vunpack.c.l.bf16 %v2974_v43 }
  0x8a   : > { %3171 = vmatprep.subr.bf16.mxu1 %v3464_v31  ;;  %v2949_v23 = vunpack.c.h.bf16 %v2975_v61 }
  0x8b   : > { %v2374_v7 = vsel %vm3868_vm12, %v2873_v20, %v2373_v57  ;;  %v2875_v20 = vrot.slane %v2337_v45, 9  ;;  %v2171_v9 = vrot.slane %v2170_v55, 4 }
  0x8c   : > { %3246 = vmatpush3.bf16.msra.mxu0 %v3453_v62  ;;  %v2377_v62 = vrot.slane %v4082_v49, 5 }
  0x8d   : > { %3255 = vmatprep.subr.bf16.mxu0 %v3456_v46  ;;  %3172 = vmatpush3.bf16.msra.mxu1 %v3464_v31  ;;  %v3467_v31 = vld [vmem:[%s4202_s2 + $0x1e8] sm:$0xff]  }
  0x8e   : > { %3173 = vmatprep.subr.bf16.mxu1 %v3466_v51 }
  0x8f   : > { %3248 = vmatmul.mubr.bf16.vlgmr.msra.gmra.mrb[0].mxu0 %v3457_v11  ;;  %v2378_v11 = vsel %vm3868_vm12, %v2874_v21, %v2377_v62 }
  0x90   : > { %3256 = vmatpush3.bf16.msra.mxu0 %v3456_v46  ;;  %3251 = vmatprep.mubr.bf16.mxu0 %v3469_v14  ;;  %v2138_v46 = vrot.slane %v2136_v50, 4  ;;  %v4111_v14 = vld [vmem:[%s4202_s2 + $0x220] sm:$0xff]   ;;  %v2895_v16 = vcombine.low %v2374_v7, %v2378_v11  ;;  %v2338_v50 = vld [vmem:[#allocation2 + $0x48] sm:$0xe]  ;;  %v2157_v7 = vrot.slane %v2156_v6, 4 }
  0x91   : > { %3257 = vmatprep.subr.bf16.mxu0 %v3459_v1  ;;  %3174 = vmatpush3.bf16.msra.mxu1 %v3466_v51  ;;  %v2100_v51 = vor.u32 %v2099_v18, %v2096_v58  ;;  %v2147_v58 = vrot.slane %v2145_v63, 5  ;;  %v2064_v18 = vld [vmem:[#allocation2 + $0x4c] sm:$0x1] }
  0x92   : > { %3303 = vmatprep.subr.bf16.mxu1 %v4050_v34  ;;  %v2142_v28 = vor.u32 %v2141_v32, %v2138_v46  ;;  %v2173_v57 = vshll.u32 %v2064_v18, 16  ;;  %v2385_v21 = vrot.slane %v2064_v18, 5 }
  0x94   : > { %3258 = vmatpush3.bf16.msra.mxu0 %v3459_v1  ;;  %3176 = vmatmul.mubr.bf16.vlgmr.msra.gmra.mrb[0].mxu1 %v3470_v56  ;;  %v2117_v1 = vshll.u32 %v4098_v5, 16  ;;  %v2128_v56 = vor.u32 %v2127_v8, %v2124_v12  ;;  %v2331_v12 = vld [vmem:[#allocation2 + $0x10] sm:$0xe]  ;;  %v2332_v8 = vld [vmem:[#allocation2 + $0x18] sm:$0xe]  ;;  %v2175_v11 = vrot.slane %v2173_v57, 5 }
  0x95   : > { %3259 = vmatprep.subr.bf16.mxu0 %v3461_v25  ;;  %3311 = vmatpush3.bf16.msra.mxu1 %v4050_v34 }
  0x96   : > { %3179 = vmatprep.mubr.bf16.mxu1 %v3476_v48  ;;  %3304 = vmatprep.subr.bf16.mxu1 %v4062_v29  ;;  %v3474_v48 = vld [vmem:[%s4202_s2 + $0x1f8] sm:$0xff]   ;;  %v2119_v40 = vrot.slane %v2117_v1, 5  ;;  %v2129_v24 = vrot.slane %v2128_v56, 4  ;;  %v2870_v1 = vrot.slane %v2332_v8, 9  ;;  %v2176_v35 = vsel %vm3684_vm9, %v2171_v9, %v2175_v11 }
  0x97   : > { %3252 = vmatmul.mubr.bf16.gmra.mrb[4].mxu0 %v3471_v0  ;;  %v2101_v0 = vrot.slane %v2100_v51, 4  ;;  %v2869_v51 = vrot.slane %v2331_v12, 9 }
  0x98   : > { %3260 = vmatpush3.bf16.msra.mxu0 %v3461_v25  ;;  %3271 = vmatprep.mubr.bf16.mxu0 %v2857_v42  ;;  %v3472_v25 = vld [vmem:[%s4202_s2 + $0x1f0] sm:$0xff]   ;;  %v2062_v42 = vld [vmem:[#allocation2 + $0x44] sm:$0x1]  ;;  %v2120_v59 = vsel %vm3684_vm9, %v2115_v33, %v2119_v40 }
  0x99   : > { %3261 = vmatprep.subr.bf16.mxu0 %v3463_v41  ;;  %3312 = vmatpush3.bf16.msra.mxu1 %v4062_v29  ;;  %v2106_v49 = vsel %vm3684_vm9, %v2101_v0, %v2105_v27  ;;  %v2159_v53 = vshll.u32 %v2062_v42, 16  ;;  %v2381_v3 = vrot.slane %v2062_v42, 5  ;;  %v2358_v10 = vsel %vm3868_vm12, %v2869_v51, %v2357_v13 }
  0x9a   : > { %3305 = vmatprep.subr.bf16.mxu1 %v4074_v38  ;;  %v2858_v46 = vcombine.low %v2106_v49, %v2120_v59 }
  0x9b   : > { %v2161_v32 = vrot.slane %v2159_v53, 5  ;;  %v2382_v52 = vsel %vm3868_vm12, %v2875_v20, %v2381_v3 }
  0x9c   : > { %3262 = vmatpush3.bf16.msra.mxu0 %v3463_v41  ;;  %3180 = vmatmul.mubr.bf16.gmra.mrb[4].mxu1 %v3477_v36  ;;  %v4126_v41 = vld [vmem:[%s4202_s2 + $0x228] sm:$0xff]   ;;  %v2143_v36 = vrot.slane %v2142_v28, 4  ;;  %v2365_v28 = vrot.slane %v4084_v17, 5 }
  0x9d   : > { %3263 = vmatprep.subr.bf16.mxu0 %v3465_v26  ;;  %3313 = vmatpush3.bf16.msra.mxu1 %v4074_v38  ;;  %v2162_v15 = vsel %vm3684_vm9, %v2157_v7, %v2161_v32  ;;  %v2973_v32 = vld [vmem:[%s4187_s11 + $0x8] sm:$0xff]  }
  0x9e   : > { %3306 = vmatprep.subr.bf16.mxu1 %v4093_v4  ;;  %3299 = vmatprep.mubr.bf16.mxu1 %v2895_v16  ;;  %v2148_v19 = vsel %vm3684_vm9, %v2143_v36, %v2147_v58  ;;  %v2361_v16 = vrot.slane %v4031_v39, 5  ;;  %v2860_v56 = vcombine.low %v2162_v15, %v2176_v35  ;;  %v2941_v9 = vunpack.c.h.bf16 %v2973_v32 }
  0xa0   : > { %3264 = vmatpush3.bf16.msra.mxu0 %v3465_v26  ;;  %v2133_v26 = vrot.slane %v2131_v47, 5  ;;  %v2871_v47 = vrot.slane %v2333_v2, 9 }
  0xa1   : > { %3265 = vmatprep.subr.bf16.mxu0 %v3467_v31  ;;  %3314 = vmatpush3.bf16.msra.mxu1 %v4093_v4 }
  0xa2   : > { %3307 = vmatprep.subr.bf16.mxu1 %v4111_v14  ;;  %v2134_v62 = vsel %vm3684_vm9, %v2129_v24, %v2133_v26  ;;  %v2945_v24 = vunpack.c.h.bf16 %v2974_v43 }
  0xa3   : > { %v2859_v22 = vcombine.low %v2134_v62, %v2148_v19 }
  0xa4   : > { %3266 = vmatpush3.bf16.msra.mxu0 %v3467_v31  ;;  %v2876_v31 = vrot.slane %v2338_v50, 9 }
  0xa5   : > { %3267 = vmatprep.subr.bf16.mxu0 %v3472_v25  ;;  %3315 = vmatpush3.bf16.msra.mxu1 %v4111_v14 }
  0xa6   : > { %3308 = vmatprep.subr.bf16.mxu1 %v4126_v41  ;;  %v2386_v30 = vsel %vm3868_vm12, %v2876_v31, %v2385_v21 }
  0xa7   : > { %v2896_v39 = vcombine.low %v2382_v52, %v2386_v30 }
  0xa8   : > { %3268 = vmatpush3.bf16.msra.mxu0 %v3472_v25  ;;  %v2362_v25 = vsel %vm3868_vm12, %v2870_v1, %v2361_v16 }
  0xa9   : > { %3269 = vmatprep.subr.bf16.mxu0 %v3474_v48  ;;  %3316 = vmatpush3.bf16.msra.mxu1 %v4126_v41 }
  0xaa   : > { %3309 = vmatprep.subr.bf16.mxu1 %v4135_v54 }
  0xac   : > { %3270 = vmatpush3.bf16.msra.mxu0 %v3474_v48 }
  0xad   : > { %3279 = vmatprep.subr.bf16.mxu0 %v4050_v34  ;;  %3317 = vmatpush3.bf16.msra.mxu1 %v4135_v54 }
  0xae   : > { %3310 = vmatprep.subr.bf16.mxu1 %v3483_v60 }
  0xaf   : > { %3272 = vmatmul.mubr.bf16.vlgmr.msra.gmra.mrb[0].mxu0 %v2858_v46 }
  0xb0   : > { %3280 = vmatpush3.bf16.msra.mxu0 %v4050_v34  ;;  %3275 = vmatprep.mubr.bf16.mxu0 %v2859_v22  ;;  %v2893_v34 = vcombine.low %v2358_v10, %v2362_v25  ;;  %v2940_v22 = vunpack.c.l.bf16 %v2973_v32 }
  0xb1   : > { %3281 = vmatprep.subr.bf16.mxu0 %v4062_v29  ;;  %3318 = vmatpush3.bf16.msra.mxu1 %v3483_v60 }
  0xb4   : > { %3282 = vmatpush3.bf16.msra.mxu0 %v4062_v29  ;;  %3300 = vmatmul.mubr.bf16.vlgmr.msra.gmra.mrb[8].mxu1 %v2896_v39  ;;  %v2334_v29 = vld [vmem:[#allocation2 + $0x28] sm:$0xe] }
  0xb5   : > { %3283 = vmatprep.subr.bf16.mxu0 %v4074_v38  ;;  %v2872_v63 = vrot.slane %v2334_v29, 9 }
  0xb7   : > { %3276 = vmatmul.mubr.bf16.gmra.mrb[4].mxu0 %v2860_v56 }
  0xb8   : > { %3284 = vmatpush3.bf16.msra.mxu0 %v4074_v38  ;;  %3295 = vmatprep.mubr.bf16.mxu0 %v2893_v34  ;;  %v2369_v38 = vrot.slane %v4098_v5, 5 }
  0xb9   : > { %3285 = vmatprep.subr.bf16.mxu0 %v4093_v4 }
  0xbc   : > { %3286 = vmatpush3.bf16.msra.mxu0 %v4093_v4  ;;  %v2366_v4 = vsel %vm3868_vm12, %v2871_v47, %v2365_v28 }
  0xbd   : > { %3287 = vmatprep.subr.bf16.mxu0 %v4111_v14 }
  0xc0   : > { %3288 = vmatpush3.bf16.msra.mxu0 %v4111_v14  ;;  %v2370_v14 = vsel %vm3868_vm12, %v2872_v63, %v2369_v38 }
  0xc1   : > { %3289 = vmatprep.subr.bf16.mxu0 %v4126_v41  ;;  %v2894_v48 = vcombine.low %v2366_v4, %v2370_v14 }
  0xc4   : > { %3290 = vmatpush3.bf16.msra.mxu0 %v4126_v41 }
  0xc5   : > { %3291 = vmatprep.subr.bf16.mxu0 %v4135_v54 }
  0xc8   : > { %3292 = vmatpush3.bf16.msra.mxu0 %v4135_v54 }
  0xc9   : > { %3293 = vmatprep.subr.bf16.mxu0 %v3483_v60 }
  0xcc   : > { %3294 = vmatpush3.bf16.msra.mxu0 %v3483_v60  ;;  %v2935_v60 = vld [vmem:[%s4187_s11] sm:$0xff]  }
  0xcd   : > { %v2936_v7 = vunpack.c.l.bf16 %v2935_v60  ;;  %v2937_v11 = vunpack.c.h.bf16 %v2935_v60 }
  0xcf   : > { %3296 = vmatmul.mubr.bf16.vlgmr.msra.gmra.mrb[0].mxu0 %v2894_v48 }
 0x167   : > { %v3177_v0 = vpop.f32.mrb[0].mxu1 }
 0x168   : > { %v1347_v17 = vpop.f32.mrb[1].mxu1  ;;  %v3319_v51 = vadd.f32 %v3177_v0, %v2940_v22 }
 0x169   : > { %v3178_v27 = vpop.f32.mrb[2].mxu1  ;;  %v3321_v13 = vadd.f32 %v2936_v7, %v1347_v17 }
 0x16a   : > { %v1350_v33 = vpop.f32.mrb[3].mxu1  ;;  %v3323_v16 = vadd.f32 %v3178_v27, %v2941_v9 }
 0x16b   : > { %v3325_v15 = vadd.f32 %v2937_v11, %v1350_v33 }
 0x16f   : > { %v3181_v5 = vpop.f32.mrb[4].mxu1 }
 0x170   : > { %v1363_v40 = vpop.f32.mrb[5].mxu1  ;;  %v3327_v36 = vadd.f32 %v3181_v5, %v2948_v44 }
 0x171   : > { %v3182_v41 = vpop.f32.mrb[6].mxu1  ;;  %v3330_v18 = vadd.f32 %v2944_v37, %v1363_v40 }
 0x172   : > { %v1366_v42 = vpop.f32.mrb[7].mxu1  ;;  %v3333_v53 = vadd.f32 %v3182_v41, %v2949_v23 }
 0x173   : > { %v3336_v6 = vadd.f32 %v2945_v24, %v1366_v42 }
 0x187   : > { %v3301_v26 = vpop.f32.mrb[8].mxu1 }
 0x188   : > { %v2518_v58 = vpop.f32.mrb[9].mxu1 }
 0x189   : > { %v3302_v49 = vpop.f32.mrb[10].mxu1 }
 0x18a   : > { %v3277_v45 = vpop.f32.mrb[4].mxu0  ;;  %v2521_v59 = vpop.f32.mrb[11].mxu1 }
 0x18b   : > { %v3328_v54 = vadd.f32 %v3327_v36, %v3277_v45  ;;  %v2308_v50 = vpop.f32.mrb[5].mxu0 }
 0x18c   : > { %v3331_v55 = vadd.f32 %v3330_v18, %v2308_v50  ;;  %v3278_v57 = vpop.f32.mrb[6].mxu0 }
 0x18d   : > { %v3334_v62 = vadd.f32 %v3333_v53, %v3278_v57  ;;  %v2311_v19 = vpop.f32.mrb[7].mxu0  ;;  %v3329_v3 = vadd.f32 %v3328_v54, %v3301_v26 }
 0x18e   : > { %v3337_v20 = vadd.f32 %v3336_v6, %v2311_v19  ;;  %v3332_v21 = vadd.f32 %v3331_v55, %v2518_v58 }
 0x18f   : > { %v3335_v31 = vadd.f32 %v3334_v62, %v3302_v49 }
 0x190   : > { %v3338_v12 = vadd.f32 %v3337_v20, %v2521_v59 }
 0x191   : > { %v2968_v8 = vpack.c.bf16 %v3335_v31, %v3329_v3 }
 0x192   : > { %v2963_v46 = vpack.c.bf16 %v3338_v12, %v3332_v21 }
 0x193   : > { %2978 = vst [vmem:[%s244_s15 + $0x18] sm:$0xff] %v2968_v8  }
 0x194   : > { %2977 = vst [vmem:[%s244_s15 + $0x10] sm:$0xff] %v2963_v46  }
 0x1a2   : > { %v3297_v1 = vpop.f32.mrb[0].mxu0 }
 0x1a3   : > { %v3320_v52 = vadd.f32 %v3319_v51, %v3297_v1  ;;  %v2502_v30 = vpop.f32.mrb[1].mxu0 }
 0x1a4   : > { %v3322_v35 = vadd.f32 %v3321_v13, %v2502_v30  ;;  %v3298_v39 = vpop.f32.mrb[2].mxu0 }
 0x1a5   : > { %v3324_v10 = vadd.f32 %v3323_v16, %v3298_v39  ;;  %v2505_v25 = vpop.f32.mrb[3].mxu0 }
 0x1a6   : > { %v3326_v56 = vadd.f32 %v3325_v15, %v2505_v25 }
 0x1a7   : > { %v2958_v34 = vpack.c.bf16 %v3324_v10, %v3320_v52 }
 0x1a8   : > { %v2953_v2 = vpack.c.bf16 %v3326_v56, %v3322_v35 }
 0x1a9   : > { %2976 = vst [vmem:[%s244_s15 + $0x8] sm:$0xff] %v2958_v34  }
 0x1aa   : > { %2954 = vst [vmem:[%s244_s15] sm:$0xff] %v2953_v2  }
 0x1ab PF: > { %s15_s18 = sadd.s32 1, %s3490_s18  }
 0x1ac   : > { %p12_p4 = scmp.ge.s32.totalorder %s15_s18, 4  }
 0x1ae   :  { %14 = sbr.rel (!%p12_p4) target bundleno = 1 (0x1), region = 84 }

</bundles_post_ra>
